<compile_context>
chip_gen: v6e
topology: v6e:2x2x1
jax: 0.10.0
libtpu: 0.0.40
codegen_flags: <defaults>
</compile_context>

<pallas_src>
import functools

import jax
import jax.numpy as jnp
from jax import lax
from jax.experimental import pallas as pl
from jax.experimental.pallas import tpu as pltpu


# ----------------------------- Pallas kernel ------------------------------- #

def _matmul_bias_kernel(x_ref, w_ref, b_ref, o_ref, acc_ref):
    """One (tm, tk) x (tk, N) MXU step of out = lhs @ rhs + bias."""
    @pl.when(pl.program_id(1) == 0)
    def _():
        acc_ref[...] = jnp.zeros_like(acc_ref)

    acc_ref[...] += jnp.dot(x_ref[...], w_ref[...],
                            preferred_element_type=jnp.float32,
                            precision=lax.Precision.HIGHEST)

    @pl.when(pl.program_id(1) == pl.num_programs(1) - 1)
    def _():
        o_ref[...] = (acc_ref[...] + b_ref[...]).astype(o_ref.dtype)


def fused_matmul_bias(lhs, rhs, bias_row, *, tm_max=512, tk_max=2048):
    """out = lhs @ rhs + bias_row.  M tiled ("parallel"), K tiled ("arbitrary")."""
    M, K = lhs.shape
    K2, N = rhs.shape
    assert K == K2 and bias_row.shape == (1, N)

    # --- M tiling (sublane axis of the GEMM) --------------------------------
    if M <= tm_max:
        tm, Mp = M, M                              # full-dim block, no padding
    else:
        tm = tm_max                                # multiple of 8
        Mp = pl.cdiv(M, tm) * tm
        if Mp != M:
            lhs = jnp.pad(lhs, ((0, Mp - M), (0, 0)))

    # --- K tiling (contraction axis) -----------------------------------------
    if K <= tk_max:
        tk, Kp = K, K                              # single full-K block
    else:
        tk = 512                                   # multiple of 128
        Kp = pl.cdiv(K, tk) * tk
        if Kp != K:                                # zero padding: exact result
            lhs = jnp.pad(lhs, ((0, 0), (0, Kp - K)))
            rhs = jnp.pad(rhs, ((0, Kp - K), (0, 0)))

    grid = (Mp // tm, Kp // tk)                    # reduction axis last

    out = pl.pallas_call(
        _matmul_bias_kernel,
        out_shape=jax.ShapeDtypeStruct((Mp, N), lhs.dtype),
        grid_spec=pltpu.PrefetchScalarGridSpec(
            num_scalar_prefetch=0,
            grid=grid,
            in_specs=[pl.BlockSpec((tm, tk), lambda i, j: (i, j)),
                      pl.BlockSpec((tk, N), lambda i, j: (j, 0)),
                      pl.BlockSpec((1, N), lambda i, j: (0, 0))],
            out_specs=pl.BlockSpec((tm, N), lambda i, j: (i, 0)),
            scratch_shapes=[pltpu.VMEM((tm, N), jnp.float32)]),
        compiler_params=pltpu.CompilerParams(
            dimension_semantics=("parallel", "arbitrary")),
    )(lhs, rhs, bias_row)
    return out[:M] if Mp != M else out


# ------------------------------- JAX glue ---------------------------------- #

def upsample_conv_layer(x_nchw, weight_oihw, bias=None, *,
                        kernel_size, stride, upsample=None):
    """Pallas forward of UpsampleConvLayer (PyTorch layouts in/out).

    x_nchw:      (B, Cin, H, W)     float32
    weight_oihw: (Cout, Cin, k, k)  float32  (nn.Conv2d layout)
    bias:        (Cout,) or None
    """
    B, Cin, H, W = x_nchw.shape
    Cout, Cin2, k, k2 = weight_oihw.shape
    assert Cin2 == Cin and k == k2 == kernel_size
    pad = kernel_size // 2
    s_up = int(upsample) if upsample else 1

    Hu, Wu = H * s_up, W * s_up                    # after nearest upsample
    Hp, Wp = Hu + 2 * pad, Wu + 2 * pad            # after reflection pad
    Ho = (Hp - k) // stride + 1
    Wo = (Wp - k) // stride + 1

    x = jnp.transpose(x_nchw, (0, 2, 3, 1))        # NHWC (channels on lanes)

    # ---- fused (nearest upsample + reflection pad) index maps --------------
    # TODO(synk): this data-dependent gather is done as XLA indexing glue; it
    # is not expressible as rectangular BlockSpec tiles.
    def src_index(n_orig):
        n_up = n_orig * s_up
        j = jnp.arange(n_up + 2 * pad) - pad                 # padded coord
        j = jnp.where(j < 0, -j, j)                          # reflect low
        j = jnp.where(j > n_up - 1, 2 * (n_up - 1) - j, j)   # reflect high
        return j // s_up                                     # undo nearest up

    h_src = src_index(H)                           # (Hp,) -> original H index
    w_src = src_index(W)                           # (Wp,) -> original W index

    # ---- im2col: lhs[(b,ho,wo), (kh,kw,ci)] = x[b, h_src[ho*s+kh], w_src[wo*s+kw], ci]
    h_idx = h_src[jnp.arange(Ho)[:, None] * stride + jnp.arange(k)[None, :]]  # (Ho, k)
    w_idx = w_src[jnp.arange(Wo)[:, None] * stride + jnp.arange(k)[None, :]]  # (Wo, k)
    patches = x[:, h_idx[:, None, :, None], w_idx[None, :, None, :], :]
    #                                               -> (B, Ho, Wo, k, k, Cin)
    Kdim = k * k * Cin
    lhs = patches.reshape(B * Ho * Wo, Kdim)

    # ---- weight: rhs[(kh,kw,ci), co] = w[co, ci, kh, kw] --------------------
    rhs = jnp.transpose(weight_oihw, (2, 3, 1, 0)).reshape(Kdim, Cout)

    bias_row = (bias if bias is not None
                else jnp.zeros((Cout,), x.dtype)).reshape(1, Cout)

    out = fused_matmul_bias(lhs, rhs, bias_row)    # (B*Ho*Wo, Cout)
    out = out.reshape(B, Ho, Wo, Cout)
    return jnp.transpose(out, (0, 3, 1, 2))        # NCHW


# --------------------------- pure-JAX reference ----------------------------- #

def ref_upsample_conv_layer(x_nchw, weight_oihw, bias=None, *,
                            kernel_size, stride, upsample=None):
    x = x_nchw
    if upsample:
        x = jnp.repeat(jnp.repeat(x, upsample, axis=2), upsample, axis=3)
    pad = kernel_size // 2
    x = jnp.pad(x, ((0, 0), (0, 0), (pad, pad), (pad, pad)), mode='reflect')
    out = lax.conv_general_dilated(
        x, weight_oihw, window_strides=(stride, stride), padding='VALID',
        dimension_numbers=('NCHW', 'OIHW', 'NCHW'),
        precision=lax.Precision.HIGHEST)
    if bias is not None:
        out = out + bias[None, :, None, None]
    return out


# ---------------------------------- main ------------------------------------ #

if __name__ == "__main__":
    key = jax.random.PRNGKey(0)

    configs = [
        # upsample=2 branch, 3x3 stride-1 conv with bias (the common use)
        dict(B=2, Cin=4, H=16, W=16, Cout=8, k=3, stride=1, upsample=2, bias=True),
        # no-upsample branch, 5x5 stride-2 conv, no bias
        dict(B=2, Cin=4, H=16, W=16, Cout=16, k=5, stride=2, upsample=None, bias=False),
    ]

    for idx, cfg in enumerate(configs):
        xk, wk, bk, key = jax.random.split(key, 4)
        B, Cin, H, W = cfg["B"], cfg["Cin"], cfg["H"], cfg["W"]
        Cout, k, stride, ups = cfg["Cout"], cfg["k"], cfg["stride"], cfg["upsample"]

        x = jax.random.normal(xk, (B, Cin, H, W), jnp.float32)
        w = jax.random.normal(wk, (Cout, Cin, k, k), jnp.float32) / (Cin * k * k) ** 0.5
        b = 0.1 * jax.random.normal(bk, (Cout,), jnp.float32) if cfg["bias"] else None

        fwd = jax.jit(functools.partial(upsample_conv_layer,
                                        kernel_size=k, stride=stride, upsample=ups))
        out = jax.block_until_ready(fwd(x, w, b) if b is not None else fwd(x, w))

        ref = ref_upsample_conv_layer(x, w, b, kernel_size=k, stride=stride,
                                      upsample=ups)
        assert out.shape == ref.shape, (out.shape, ref.shape)
        err = jnp.max(jnp.abs(out - ref))
        assert jnp.allclose(out, ref, atol=1e-5, rtol=1e-5), (
            f"config {idx}: max abs err {err}")

    print("KERNEL_OK")
</pallas_src>

<mosaic_0001>
module attributes {stable_mosaic.version = 11 : i64} {
  func.func @_matmul_bias_kernel(%arg0: i32, %arg1: i32, %arg2: memref<512x36xf32, #tpu.memory_space<vmem>>, %arg3: memref<36x8xf32, #tpu.memory_space<vmem>>, %arg4: memref<1x8xf32, #tpu.memory_space<vmem>>, %arg5: memref<512x8xf32, #tpu.memory_space<vmem>>, %arg6: memref<512x8xf32, #tpu.memory_space<vmem>>) attributes {dimension_semantics = [#tpu.dimension_semantics<parallel>, #tpu.dimension_semantics<arbitrary>], iteration_bounds = array<i64: 4, 1>, scalar_prefetch = 0 : i64, scratch_operands = 1 : i64, tpu.core_type = #tpu.core_type<tc>, window_params = [{transform_indices = @transform_0, window_bounds = array<i64: 512, 36>}, {transform_indices = @transform_1, window_bounds = array<i64: 36, 8>}, {pipeline_mode = #tpu.pipeline_mode<synchronous>, transform_indices = @transform_2, window_bounds = array<i64: 1, 8>}, {transform_indices = @transform_3, window_bounds = array<i64: 512, 8>}]} {
    %c0_i32 = arith.constant 0 : i32
    %0 = arith.cmpi eq, %arg1, %c0_i32 : i32
    %1 = arith.extui %0 : i1 to i32
    %c0_i32_0 = arith.constant 0 : i32
    %2 = arith.cmpi ne, %1, %c0_i32_0 : i32
    scf.if %2 {
      %cst_10 = arith.constant 0.000000e+00 : f32
      %12 = vector.broadcast %cst_10 : f32 to vector<512x8xf32>
      %c0_11 = arith.constant 0 : index
      %c0_12 = arith.constant 0 : index
      %13 = vector.load %arg6[%c0_11, %c0_12] : memref<512x8xf32, #tpu.memory_space<vmem>>, vector<512x8xf32>
      tpu.vector_store %arg6[%c0_11, %c0_12], %12 {strides = array<i32>} : memref<512x8xf32, #tpu.memory_space<vmem>>, vector<512x8xf32>,
    } else {
    }
    %c0 = arith.constant 0 : index
    %c0_1 = arith.constant 0 : index
    %3 = vector.load %arg6[%c0, %c0_1] : memref<512x8xf32, #tpu.memory_space<vmem>>, vector<512x8xf32>
    %c0_2 = arith.constant 0 : index
    %c0_3 = arith.constant 0 : index
    %4 = vector.load %arg2[%c0_2, %c0_3] : memref<512x36xf32, #tpu.memory_space<vmem>>, vector<512x36xf32>
    %c0_4 = arith.constant 0 : index
    %c0_5 = arith.constant 0 : index
    %5 = vector.load %arg3[%c0_4, %c0_5] : memref<36x8xf32, #tpu.memory_space<vmem>>, vector<36x8xf32>
    %cst = arith.constant dense<0.000000e+00> : vector<512x8xf32>
    %6 = tpu.matmul %4, %5, %cst {dimension_numbers = #tpu.dot_dimension_numbers<[1], [0], [0], [1], [0, 0, 1, 1], [], []>, precision = #tpu.contract_precision<fp32>} : vector<512x36xf32>, vector<36x8xf32>, vector<512x8xf32> -> vector<512x8xf32>
    %7 = arith.addf %3, %6 : vector<512x8xf32>
    %c0_6 = arith.constant 0 : index
    %c0_7 = arith.constant 0 : index
    %8 = vector.load %arg6[%c0_6, %c0_7] : memref<512x8xf32, #tpu.memory_space<vmem>>, vector<512x8xf32>
    tpu.vector_store %arg6[%c0_6, %c0_7], %7 {strides = array<i32>} : memref<512x8xf32, #tpu.memory_space<vmem>>, vector<512x8xf32>,
    %c0_i32_8 = arith.constant 0 : i32
    %9 = arith.cmpi eq, %arg1, %c0_i32_8 : i32
    %10 = arith.extui %9 : i1 to i32
    %c0_i32_9 = arith.constant 0 : i32
    %11 = arith.cmpi ne, %10, %c0_i32_9 : i32
    scf.if %11 {
      %c0_10 = arith.constant 0 : index
      %c0_11 = arith.constant 0 : index
      %12 = vector.load %arg6[%c0_10, %c0_11] : memref<512x8xf32, #tpu.memory_space<vmem>>, vector<512x8xf32>
      %c0_12 = arith.constant 0 : index
      %c0_13 = arith.constant 0 : index
      %13 = vector.load %arg4[%c0_12, %c0_13] : memref<1x8xf32, #tpu.memory_space<vmem>>, vector<1x8xf32>
      %14 = vector.broadcast %13 : vector<1x8xf32> to vector<512x8xf32>
      %15 = arith.addf %12, %14 : vector<512x8xf32>
      %c0_14 = arith.constant 0 : index
      %c0_15 = arith.constant 0 : index
      %16 = vector.load %arg5[%c0_14, %c0_15] : memref<512x8xf32, #tpu.memory_space<vmem>>, vector<512x8xf32>
      tpu.vector_store %arg5[%c0_14, %c0_15], %15 {strides = array<i32>} : memref<512x8xf32, #tpu.memory_space<vmem>>, vector<512x8xf32>,
    } else {
    }
    return
  }
  func.func @transform_0(%arg0: i32, %arg1: i32) -> (i32, i32) {
    %c0_i32 = arith.constant 0 : i32
    return %arg0, %arg1 : i32, i32
  }
  func.func @transform_1(%arg0: i32, %arg1: i32) -> (i32, i32) {
    %c0_i32 = arith.constant 0 : i32
    %c0_i32_0 = arith.constant 0 : i32
    return %arg1, %c0_i32 : i32, i32
  }
  func.func @transform_2(%arg0: i32, %arg1: i32) -> (i32, i32) {
    %c0_i32 = arith.constant 0 : i32
    %c0_i32_0 = arith.constant 0 : i32
    %c0_i32_1 = arith.constant 0 : i32
    return %c0_i32, %c0_i32_0 : i32, i32
  }
  func.func @transform_3(%arg0: i32, %arg1: i32) -> (i32, i32) {
    %c0_i32 = arith.constant 0 : i32
    %c0_i32_0 = arith.constant 0 : i32
    return %arg0, %c0_i32 : i32, i32
  }
}

</mosaic_0001>

<bundles_post_ra>
// kernel: upsample_conv_layer.1
= control target key start
LH: loop header
LB: loop body
LE: loop exit
PB: predicated region body
PF: predicated region fallthrough
CT: control target
= control target key end

     0   :  { %s5373_s12 = smov 0   ;;  %s5375_s13 = smov 0   ;;  %s7401_s0 = inlined_call_operand.vmem [shape: f32[2048,36], index: 0, kind: input, shape index: {}]   ;;  %s7402_s1 = inlined_call_operand.vmem [shape: f32[36,8], index: 1, kind: input, shape index: {}]   ;;  %s7403_s2 = inlined_call_operand.vmem [shape: f32[1,8], index: 2, kind: input, shape index: {}]   ;;  %s7404_s3 = inlined_call_operand.vmem [shape: f32[2048,8], index: 3, kind: output, shape index: {}]  }
   0x1   :  { %s5377_s14 = smov 0  }
   0x2 LB: > { %s25_s15 = sadd.s32 1, %s5346_s13  ;;  %p4244_p0 = scmp.ge.s32.totalorder %s5350_s14, 1  ;;  %s5350_s14 = sphi %s5377_s14, %s13_s14   ;;  %s5346_s13 = sphi %s5375_s13, %s7962_s13   ;;  %s5342_s12 = sphi %s5373_s12, %s7961_s12  }
   0x3   : > { %p27_p1 = scmp.ge.s32.totalorder %s25_s15, 4  ;;  %p166_p2 = scmp.lt.s32.totalorder %s5350_s14, 5 }
   0x5   : > { %s7964_s15 = smov (%p27_p1, %s25_s15), 0  ;;  %p167_p3 = pnand %p4244_p0, %p166_p2 }
   0x7   : > { %170 = sbr.rel (%p167_p3) target bundleno = 649 (0x289), region = 32 }
   0xc   : > { %v420_v0 = vld [vmem:[%s7402_s1 + $0x20] sm:$0xf]  ;;  %vm614_vm0 = vcmask 1043456   ;;  %v419_v1 = vld [vmem:[%s7402_s1 + $0x18] sm:$0xff]  ;;  %v418_v2 = vld [vmem:[%s7402_s1 + $0x10] sm:$0xff]  ;;  %s4245_s22 = sshll.u32 %s5342_s12, 6 }
   0xd   : > { %v616_v3 = vsel %vm614_vm0, %v420_v0, 0  ;;  %v5400_v4 = vand.u32 4294901760, %v419_v1  ;;  %v5402_v5 = vand.u32 4294901760, %v418_v2  ;;  %v417_v6 = vld [vmem:[%s7402_s1 + $0x8] sm:$0xff]  ;;  %v416_v7 = vld [vmem:[%s7402_s1] sm:$0xff]  ;;  %p199_p4 = scmp.lt.s32.totalorder %s4245_s22, 255 }
   0xe   : > { %v5410_v8 = vand.u32 4294901760, %v616_v3  ;;  %v5412_v9 = vand.u32 4294901760, %v417_v6  ;;  %v5414_v10 = vand.u32 4294901760, %v416_v7  ;;  %vm421_vm1 = vcmask 293888  }
   0xf   : > { %v5417_v11 = vsub.f32 %v419_v1, %v5400_v4  ;;  %v5420_v12 = vsub.f32 %v418_v2, %v5402_v5  ;;  %s7966_s22 = smov (!%p199_p4, %s4245_s22), 255  ;;  %vm223_vm2 = vcmask 64512  }
  0x10   : > { %4666 = vmatprep.subr.mxu0 %v5410_v8  ;;  %v5426_v13 = vsub.f32 %v616_v3, %v5410_v8  ;;  %v5429_v14 = vsub.f32 %v417_v6, %v5412_v9  ;;  %v5432_v15 = vsub.f32 %v416_v7, %v5414_v10  ;;  %s4246_s27 = sshll.u32 %s7966_s22, 3 }
  0x11   : > { %4667 = vmatpush3.msra.mxu0 %v5410_v8  ;;  %v5436_v16 = vand.u32 4294901760, %v5417_v11  ;;  %v5439_v17 = vand.u32 4294901760, %v5420_v12  ;;  %s5454_s30 = scalar_lea.vmem %s7401_s0, %s4246_s27  ;;  %s7076_s8 = scalar_lea.vmem %s7404_s3, %s4246_s27 }
  0x12   : > { %4668 = vmatprep.subr.mxu0 %v5400_v4  ;;  %v5444_v18 = vand.u32 4294901760, %v5426_v13  ;;  %v5447_v19 = vand.u32 4294901760, %v5429_v14  ;;  %v5457_v20 = vand.u32 4294901760, %v5432_v15  ;;  %v352_v23 = vld [vmem:[%s5454_s30] sm:$0xff]  ;;  %v353_v24 = vld [vmem:[%s5454_s30 + $0x8] sm:$0xff]  ;;  %v354_v25 = vld [vmem:[%s5454_s30 + $0x10] sm:$0xff] }
  0x13   : > { %4669 = vmatpush3.msra.mxu0 %v5400_v4  ;;  %v1361_v21 = vsub.f32 %v5417_v11, %v5436_v16  ;;  %v1368_v22 = vsub.f32 %v5420_v12, %v5439_v17  ;;  %v423_v28 = vsel %vm421_vm1, %v352_v23, 0  ;;  %v426_v29 = vsel %vm421_vm1, %v353_v24, 0  ;;  %v355_v30 = vld [vmem:[%s5454_s30 + $0x18] sm:$0xff]  ;;  %v356_v35 = vld [vmem:[%s5454_s30 + $0x20] sm:$0xff]  ;;  %v357_v36 = vld [vmem:[%s5454_s30 + $0x28] sm:$0xff] }
  0x14   : > { %v1354_v26 = vsub.f32 %v5426_v13, %v5444_v18  ;;  %4670 = vmatprep.subr.mxu0 %v5402_v5  ;;  %v1375_v27 = vsub.f32 %v5429_v14, %v5447_v19  ;;  %v5476_v33 = vand.u32 4294901760, %v423_v28  ;;  %v5478_v34 = vand.u32 4294901760, %v426_v29  ;;  %v358_v45 = vld [vmem:[%s5454_s30 + $0x30] sm:$0xff]  ;;  %v359_v46 = vld [vmem:[%s5454_s30 + $0x38] sm:$0xff]  ;;  %v360_v3 = vld [vmem:[%s5454_s30 + $0x40] sm:$0xff] }
  0x15   : > { %v1362_v31 = vand.u32 4294901760, %v1361_v21  ;;  %4671 = vmatpush3.msra.mxu0 %v5402_v5  ;;  %v1369_v32 = vand.u32 4294901760, %v1368_v22  ;;  %v1382_v39 = vsub.f32 %v5432_v15, %v5457_v20  ;;  %v429_v40 = vsel %vm421_vm1, %v354_v25, 0  ;;  %v361_v6 = vld [vmem:[%s5454_s30 + $0x48] sm:$0xff] }
  0x16   : > { %7604 = vst [vmem:[#allocation3_spill] sm:$0xff] %v5476_v33  ;;  %7605 = vst [vmem:[#allocation4_spill] sm:$0xff] %v5478_v34  ;;  %v1355_v37 = vand.u32 4294901760, %v1354_v26  ;;  %4672 = vmatprep.subr.mxu0 %v5412_v9  ;;  %v1376_v38 = vand.u32 4294901760, %v1375_v27  ;;  %v5488_v41 = vsub.f32 %v423_v28, %v5476_v33  ;;  %v5491_v42 = vsub.f32 %v426_v29, %v5478_v34  ;;  %v362_v28 = vld [vmem:[%s5454_s30 + $0x50] sm:$0xff] }
  0x17   : > { %4673 = vmatpush3.msra.mxu0 %v5412_v9  ;;  %4782 = vmatprep.mubr.f32.mxu1 %v5476_v33  ;;  %v5494_v43 = vand.u32 4294901760, %v429_v40  ;;  %v432_v44 = vsel %vm421_vm1, %v355_v30, 0  ;;  %v1383_v47 = vand.u32 4294901760, %v1382_v39  ;;  %v435_v49 = vsel %vm421_vm1, %v356_v35, 0  ;;  %v363_v39 = vld [vmem:[%s5454_s30 + $0x58] sm:$0xff]  ;;  %v381_v33 = vld [vmem:[%s5454_s30 + $0xe8] sm:$0xff] }
  0x18   : > { %4772 = vmatprep.subr.mxu1 %v1355_v37  ;;  %4674 = vmatprep.subr.mxu0 %v5414_v10  ;;  %v5500_v48 = vand.u32 4294901760, %v432_v44  ;;  %v438_v50 = vsel %vm421_vm1, %v357_v36, 0  ;;  %v7417_v51 = vand.u32 4294901760, %v5488_v41  ;;  %v7416_v52 = vand.u32 4294901760, %v5491_v42 }
  0x19   : > { %7606 = vst [vmem:[#allocation5_spill] sm:$0xff] %v5494_v43  ;;  %4773 = vmatpush3.msra.mxu1 %v1355_v37  ;;  %4675 = vmatpush3.msra.mxu0 %v5414_v10  ;;  %v5508_v53 = vsub.f32 %v429_v40, %v5494_v43  ;;  %v5510_v54 = vand.u32 4294901760, %v435_v49  ;;  %v5516_v56 = vand.u32 4294901760, %v438_v50  ;;  %v441_v57 = vsel %vm421_vm1, %v358_v45, 0  ;;  %v364_v40 = vld [vmem:[%s5454_s30 + $0x60] sm:$0xff] }
  0x1a   : > { %7607 = vst [vmem:[#allocation6_spill] sm:$0xff] %v5500_v48  ;;  %4774 = vmatprep.subr.mxu1 %v1362_v31  ;;  %4878 = vmatprep.subr.mxu0 %v5426_v13  ;;  %v5514_v55 = vsub.f32 %v432_v44, %v5500_v48  ;;  %v444_v58 = vsel %vm421_vm1, %v359_v46, 0  ;;  %v691_v59 = vsub.f32 %v5488_v41, %v7417_v51  ;;  %v5534_v1 = vand.u32 4294901760, %v441_v57  ;;  %v373_v51 = vld [vmem:[%s5454_s30 + $0xa8] sm:$0xff] }
  0x1b   : > { %7608 = vst [vmem:[#allocation7_spill] sm:$0xff] %v5510_v54  ;;  %7609 = vst [vmem:[#allocation8_spill] sm:$0xff] %v5516_v56  ;;  %4775 = vmatpush3.msra.mxu1 %v1362_v31  ;;  %v701_v60 = vsub.f32 %v5491_v42, %v7416_v52  ;;  %v7414_v61 = vand.u32 4294901760, %v5508_v53  ;;  %v5528_v62 = vsub.f32 %v435_v49, %v5510_v54  ;;  %v5536_v2 = vand.u32 4294901760, %v444_v58 }
  0x1c   : > { %4776 = vmatprep.subr.mxu1 %v1369_v32  ;;  %v7413_v63 = vand.u32 4294901760, %v5514_v55  ;;  %v5532_v0 = vsub.f32 %v438_v50, %v5516_v56  ;;  %7610 = vst [vmem:[#allocation9_spill] sm:$0xff] %v5534_v1  ;;  %v692_v7 = vand.u32 4294901760, %v691_v59  ;;  %v5549_v26 = vsub.f32 %v441_v57, %v5534_v1  ;;  %v365_v57 = vld [vmem:[%s5454_s30 + $0x68] sm:$0xff] }
  0x1d   : > { %7611 = vst [vmem:[#allocation10_spill] sm:$0xff] %v5536_v2  ;;  %4777 = vmatpush3.msra.mxu1 %v1369_v32  ;;  %v702_v21 = vand.u32 4294901760, %v701_v60  ;;  %v711_v22 = vsub.f32 %v5508_v53, %v7414_v61  ;;  %v7412_v23 = vand.u32 4294901760, %v5528_v62  ;;  %v5552_v27 = vsub.f32 %v444_v58, %v5536_v2  ;;  %v372_v61 = vld [vmem:[%s5454_s30 + $0xa0] sm:$0xff] }
  0x1e   : > { %4778 = vmatprep.subr.mxu1 %v1376_v38  ;;  %v721_v24 = vsub.f32 %v5514_v55, %v7413_v63  ;;  %v7410_v25 = vand.u32 4294901760, %v5532_v0  ;;  %4676 = vmatprep.mubr.f32.mxu0 %v692_v7  ;;  %v447_v31 = vsel %vm421_vm1, %v360_v3, 0  ;;  %v450_v32 = vsel %vm421_vm1, %v361_v6, 0  ;;  %v366_v6 = vld [vmem:[%s5454_s30 + $0x70] sm:$0xff]  ;;  %v371_v63 = vld [vmem:[%s5454_s30 + $0x98] sm:$0xff] }
  0x1f   : > { %4779 = vmatpush3.msra.mxu1 %v1376_v38  ;;  %v712_v29 = vand.u32 4294901760, %v711_v22  ;;  %v731_v30 = vsub.f32 %v5528_v62, %v7412_v23  ;;  %4677 = vmatmul.mubr.f32.vlgmr.msra.gmra.mxu0 %v702_v21  ;;  %v7408_v37 = vand.u32 4294901760, %v5549_v26  ;;  %v7406_v38 = vand.u32 4294901760, %v5552_v27 }
  0x20   : > { %4780 = vmatprep.subr.mxu1 %v1383_v47  ;;  %v722_v35 = vand.u32 4294901760, %v721_v24  ;;  %v741_v36 = vsub.f32 %v5532_v0, %v7410_v25  ;;  %4879 = vmatpush3.msra.mxu0 %v5426_v13  ;;  %v5568_v45 = vand.u32 4294901760, %v447_v31  ;;  %v5570_v46 = vand.u32 4294901760, %v450_v32 }
  0x21   : > { %4781 = vmatpush3.msra.mxu1 %v1383_v47  ;;  %v732_v44 = vand.u32 4294901760, %v731_v30  ;;  %v453_v49 = vsel %vm421_vm1, %v362_v28, 0  ;;  %v751_v50 = vsub.f32 %v5549_v26, %v7408_v37  ;;  %v761_v13 = vsub.f32 %v5552_v27, %v7406_v38  ;;  %4679 = vmatprep.mubr.f32.mxu0 %v712_v29 }
  0x22   : > { %7612 = vst [vmem:[#allocation11_spill] sm:$0xff] %v5568_v45  ;;  %7613 = vst [vmem:[#allocation12_spill] sm:$0xff] %v5570_v46  ;;  %4783 = vmatmul.mubr.f32.vlgmr.msra.gmra.mxu1 %v5478_v34  ;;  %4984 = vmatprep.subr.mxu1 %v5410_v8  ;;  %v5581_v47 = vand.u32 4294901760, %v453_v49  ;;  %v5586_v58 = vsub.f32 %v447_v31, %v5568_v45  ;;  %v5589_v59 = vsub.f32 %v450_v32, %v5570_v46  ;;  %v367_v32 = vld [vmem:[%s5454_s30 + $0x78] sm:$0xff]  ;;  %v382_v34 = vld [vmem:[%s5454_s30 + $0xf0] sm:$0xff] }
  0x23   : > { %4985 = vmatpush3.msra.mxu1 %v5410_v8  ;;  %v456_v60 = vsel %vm421_vm1, %v363_v39, 0  ;;  %v459_v3 = vsel %vm421_vm1, %v364_v40, 0  ;;  %4680 = vmatmul.mubr.f32.gmra.mxu0 %v722_v35  ;;  %v742_v7 = vand.u32 4294901760, %v741_v36  ;;  %v752_v21 = vand.u32 4294901760, %v751_v50 }
  0x24   : > { %7614 = vst [vmem:[#allocation13_spill] sm:$0xff] %v5581_v47  ;;  %4785 = vmatprep.mubr.f32.mxu1 %v5494_v43  ;;  %v5596_v22 = vsub.f32 %v453_v49, %v5581_v47  ;;  %v5598_v24 = vand.u32 4294901760, %v456_v60  ;;  %4682 = vmatprep.mubr.f32.mxu0 %v732_v44  ;;  %v7405_v28 = vand.u32 4294901760, %v5586_v58  ;;  %v7407_v29 = vand.u32 4294901760, %v5589_v59 }
  0x25   : > { %v5602_v30 = vand.u32 4294901760, %v459_v3  ;;  %v462_v31 = vsel %vm421_vm1, %v365_v57, 0  ;;  %4880 = vmatprep.subr.mxu0 %v5417_v11  ;;  %v465_v40 = vsel %vm421_vm1, %v366_v6, 0  ;;  %v762_v44 = vand.u32 4294901760, %v761_v13  ;;  %4986 = vmatprep.subr.mxu1 %v5400_v4 }
  0x26   : > { %7615 = vst [vmem:[#allocation14_spill] sm:$0xff] %v5598_v24  ;;  %4786 = vmatmul.mubr.f32.gmra.mxu1 %v5500_v48  ;;  %v7409_v35 = vand.u32 4294901760, %v5596_v22  ;;  %v5610_v36 = vsub.f32 %v456_v60, %v5598_v24  ;;  %v5612_v39 = vand.u32 4294901760, %v462_v31  ;;  %4881 = vmatpush3.msra.mxu0 %v5417_v11  ;;  %v771_v49 = vsub.f32 %v5586_v58, %v7405_v28  ;;  %v369_v28 = vld [vmem:[%s5454_s30 + $0x88] sm:$0xff] }
  0x27   : > { %7616 = vst [vmem:[#allocation15_spill] sm:$0xff] %v5602_v30  ;;  %4788 = vmatprep.mubr.f32.mxu1 %v5510_v54  ;;  %v5621_v50 = vsub.f32 %v459_v3, %v5602_v30  ;;  %v5623_v57 = vand.u32 4294901760, %v465_v40  ;;  %4683 = vmatmul.mubr.f32.gmra.mxu0 %v742_v7  ;;  %v781_v60 = vsub.f32 %v5589_v59, %v7407_v29  ;;  %v468_v6 = vsel %vm421_vm1, %v367_v32, 0  ;;  %v368_v3 = vld [vmem:[%s5454_s30 + $0x80] sm:$0xff]  ;;  %v370_v32 = vld [vmem:[%s5454_s30 + $0x90] sm:$0xff]  ;;  %v377_v54 = vld [vmem:[%s5454_s30 + $0xc8] sm:$0xff] }
  0x28   : > { %7617 = vst [vmem:[#allocation16_spill] sm:$0xff] %v5612_v39  ;;  %v7411_v11 = vand.u32 4294901760, %v5610_v36  ;;  %v5631_v13 = vsub.f32 %v462_v31, %v5612_v39  ;;  %4987 = vmatpush3.msra.mxu1 %v5400_v4  ;;  %4685 = vmatprep.mubr.f32.mxu0 %v752_v21  ;;  %v772_v38 = vand.u32 4294901760, %v771_v49  ;;  %v791_v7 = vsub.f32 %v5596_v22, %v7409_v35 }
  0x29   : > { %7618 = vst [vmem:[#allocation17_spill] sm:$0xff] %v5623_v57  ;;  %v7415_v29 = vand.u32 4294901760, %v5621_v50  ;;  %v5642_v37 = vsub.f32 %v465_v40, %v5623_v57  ;;  %4882 = vmatprep.subr.mxu0 %v5420_v12  ;;  %v5649_v31 = vand.u32 4294901760, %v468_v6  ;;  %v471_v49 = vsel %vm421_vm1, %v368_v3, 0  ;;  %4988 = vmatprep.subr.mxu1 %v5402_v5 }
  0x2a   : > { %4789 = vmatmul.mubr.f32.gmra.mxu1 %v5516_v56  ;;  %v801_v21 = vsub.f32 %v5610_v36, %v7411_v11  ;;  %4883 = vmatpush3.msra.mxu0 %v5420_v12  ;;  %v7422_v40 = vand.u32 4294901760, %v5631_v13  ;;  %v474_v35 = vsel %vm421_vm1, %v369_v28, 0  ;;  %v782_v25 = vand.u32 4294901760, %v781_v60 }
  0x2b   : > { %7619 = vst [vmem:[#allocation18_spill] sm:$0xff] %v5649_v31  ;;  %4791 = vmatprep.mubr.f32.mxu1 %v5534_v1  ;;  %4686 = vmatmul.mubr.f32.gmra.mxu0 %v762_v44  ;;  %v811_v11 = vsub.f32 %v5621_v50, %v7415_v29  ;;  %v5662_v23 = vsub.f32 %v468_v6, %v5649_v31  ;;  %v5664_v12 = vand.u32 4294901760, %v471_v49  ;;  %v792_v28 = vand.u32 4294901760, %v791_v7 }
  0x2c   : > { %4989 = vmatpush3.msra.mxu1 %v5402_v5  ;;  %4688 = vmatprep.mubr.f32.mxu0 %v772_v38  ;;  %v5670_v60 = vand.u32 4294901760, %v474_v35  ;;  %v477_v3 = vsel %vm421_vm1, %v370_v32, 0  ;;  %v802_v6 = vand.u32 4294901760, %v801_v21  ;;  %v821_v38 = vsub.f32 %v5631_v13, %v7422_v40 }
  0x2d   : > { %7620 = vst [vmem:[#allocation19_spill] sm:$0xff] %v5664_v12  ;;  %4884 = vmatprep.subr.mxu0 %v5429_v14  ;;  %v5676_v29 = vsub.f32 %v471_v49, %v5664_v12  ;;  %v5678_v52 = vand.u32 4294901760, %v477_v3  ;;  %v7427_v7 = vand.u32 4294901760, %v5662_v23  ;;  %v480_v32 = vsel %vm421_vm1, %v371_v63, 0  ;;  %v374_v49 = vld [vmem:[%s5454_s30 + $0xb0] sm:$0xff]  ;;  %4990 = vmatprep.subr.mxu1 %v5412_v9 }
  0x2e   : > { %7621 = vst [vmem:[#allocation20_spill] sm:$0xff] %v5670_v60  ;;  %4792 = vmatmul.mubr.f32.gmra.mxu1 %v5536_v2  ;;  %4885 = vmatpush3.msra.mxu0 %v5429_v14  ;;  %v483_v21 = vsel %vm421_vm1, %v372_v61, 0  ;;  %v812_v44 = vand.u32 4294901760, %v811_v11  ;;  %v5695_v2 = vand.u32 4294901760, %v480_v32  ;;  %v7624_v63 = vand.u32 4294901760, %v5642_v37  ;;  %v375_v14 = vld [vmem:[%s5454_s30 + $0xb8] sm:$0xff] }
  0x2f   : > { %7622 = vst [vmem:[#allocation21_spill] sm:$0xff] %v5678_v52  ;;  %4794 = vmatprep.mubr.f32.mxu1 %v5568_v45  ;;  %4689 = vmatmul.mubr.f32.gmra.mxu0 %v782_v25  ;;  %v5693_v45 = vsub.f32 %v474_v35, %v5670_v60  ;;  %v5702_v40 = vsub.f32 %v477_v3, %v5678_v52  ;;  %v5704_v25 = vand.u32 4294901760, %v483_v21  ;;  %v486_v11 = vsel %vm421_vm1, %v373_v51, 0  ;;  %v376_v51 = vld [vmem:[%s5454_s30 + $0xc0] sm:$0xff] }
  0x30   : > { %7623 = vst [vmem:[#allocation22_spill] sm:$0xff] %v5695_v2  ;;  %4991 = vmatpush3.msra.mxu1 %v5412_v9  ;;  %4691 = vmatprep.mubr.f32.mxu0 %v792_v28  ;;  %v831_v61 = vsub.f32 %v5642_v37, %v7624_v63  ;;  %v489_v35 = vsel %vm421_vm1, %v374_v49, 0  ;;  %v822_v28 = vand.u32 4294901760, %v821_v38  ;;  %v841_v3 = vsub.f32 %v5662_v23, %v7427_v7 }
  0x31   : > { %7625 = vst [vmem:[#allocation23_spill] sm:$0xff] %v5704_v25  ;;  %4886 = vmatprep.subr.mxu0 %v5432_v15  ;;  %v5716_v63 = vand.u32 4294901760, %v486_v11  ;;  %4992 = vmatprep.subr.mxu1 %v5414_v10  ;;  %v5725_v38 = vsub.f32 %v480_v32, %v5695_v2  ;;  %v5733_v56 = vand.u32 4294901760, %v489_v35  ;;  %v495_v32 = vsel %vm421_vm1, %v376_v51, 0 }
  0x32   : > { %4795 = vmatmul.mubr.f32.gmra.mxu1 %v5570_v46  ;;  %4887 = vmatpush3.msra.mxu0 %v5432_v15  ;;  %v7627_v46 = vand.u32 4294901760, %v5676_v29  ;;  %v7442_v15 = vand.u32 4294901760, %v5693_v45  ;;  %v832_v7 = vand.u32 4294901760, %v831_v61  ;;  %v5747_v61 = vand.u32 4294901760, %v495_v32 }
  0x33   : > { %4797 = vmatprep.mubr.f32.mxu1 %v5581_v47  ;;  %7626 = vst [vmem:[#allocation24_spill] sm:$0xff] %v5716_v63  ;;  %4692 = vmatmul.mubr.f32.gmra.mxu0 %v802_v6  ;;  %7628 = vst [vmem:[#allocation25_spill] sm:$0xff] %v5725_v38  ;;  %v492_v47 = vsel %vm421_vm1, %v375_v14, 0  ;;  %v5731_v6 = vsub.f32 %v483_v21, %v5704_v25  ;;  %v378_v14 = vld [vmem:[%s5454_s30 + $0xd0] sm:$0xff]  ;;  %v7449_v51 = vand.u32 4294901760, %v5725_v38  ;;  %v7634_v48 = vand.u32 4294901760, %v5702_v40 }
  0x34   : > { %v851_v49 = vsub.f32 %v5676_v29, %v7627_v46  ;;  %4993 = vmatpush3.msra.mxu1 %v5414_v10  ;;  %4694 = vmatprep.mubr.f32.mxu0 %v812_v44  ;;  %7630 = vst [vmem:[#allocation27_spill] sm:$0xff] %v5733_v56  ;;  %v5739_v46 = vsub.f32 %v486_v11, %v5716_v63  ;;  %v842_v44 = vand.u32 4294901760, %v841_v3  ;;  %v5745_v21 = vand.u32 4294901760, %v492_v47 }
  0x35   : > { %7629 = vst [vmem:[#allocation26_spill] sm:$0xff] %v5731_v6  ;;  %5090 = vmatprep.subr.mxu0 %v5444_v18  ;;  %5196 = vmatprep.subr.mxu1 %v5410_v8  ;;  %7633 = vst [vmem:[#allocation30_spill] sm:$0xff] %v5747_v61  ;;  %v861_v11 = vsub.f32 %v5693_v45, %v7442_v15  ;;  %v871_v3 = vsub.f32 %v5702_v40, %v7634_v48 }
  0x36   : > { %4798 = vmatmul.mubr.f32.gmra.mxu1 %v5598_v24  ;;  %7631 = vst [vmem:[#allocation28_spill] sm:$0xff] %v5739_v46  ;;  %7632 = vst [vmem:[#allocation29_spill] sm:$0xff] %v5745_v21  ;;  %v852_v1 = vand.u32 4294901760, %v851_v49  ;;  %v498_v24 = vsel %vm421_vm1, %v377_v54, 0  ;;  %v5759_v43 = vsub.f32 %v489_v35, %v5733_v56  ;;  %v379_v49 = vld [vmem:[%s5454_s30 + $0xd8] sm:$0xff]  ;;  %v5767_v54 = vsub.f32 %v492_v47, %v5745_v21  ;;  %v380_v35 = vld [vmem:[%s5454_s30 + $0xe0] sm:$0xff] }
  0x37   : > { %4800 = vmatprep.mubr.f32.mxu1 %v5602_v30  ;;  %4695 = vmatmul.mubr.f32.gmra.mxu0 %v822_v28  ;;  %v501_v28 = vsel %vm421_vm1, %v378_v14, 0  ;;  %v5770_v48 = vsub.f32 %v495_v32, %v5747_v61  ;;  %v862_v30 = vand.u32 4294901760, %v861_v11  ;;  %v881_v14 = vsub.f32 %v5725_v38, %v7449_v51 }
  0x38   : > { %4697 = vmatprep.mubr.f32.mxu0 %v832_v7  ;;  %7635 = vst [vmem:[#allocation31_spill] sm:$0xff] %v5759_v43  ;;  %7636 = vst [vmem:[#allocation32_spill] sm:$0xff] %v5767_v54  ;;  %v5772_v7 = vand.u32 4294901760, %v498_v24  ;;  %v5778_v15 = vand.u32 4294901760, %v501_v28  ;;  %v872_v47 = vand.u32 4294901760, %v871_v3  ;;  %v507_v51 = vsel %vm421_vm1, %v380_v35, 0 }
  0x39   : > { %7637 = vst [vmem:[#allocation33_spill] sm:$0xff] %v5770_v48  ;;  %v510_v3 = vsel %vm421_vm1, %v381_v33, 0  ;;  %v386_v33 = vld [vmem:[%s5454_s30 + $0x110] sm:$0xff] }
  0x3a   : > { %4801 = vmatmul.mubr.f32.gmra.mxu1 %v5612_v39  ;;  %7638 = vst [vmem:[#allocation34_spill] sm:$0xff] %v5772_v7  ;;  %7639 = vst [vmem:[#allocation35_spill] sm:$0xff] %v5778_v15  ;;  %v7640_v39 = vand.u32 4294901760, %v5731_v6 }
  0x3b   : > { %4803 = vmatprep.mubr.f32.mxu1 %v5623_v57  ;;  %4698 = vmatmul.mubr.f32.gmra.mxu0 %v842_v44  ;;  %v504_v57 = vsel %vm421_vm1, %v379_v49, 0  ;;  %v7641_v44 = vand.u32 4294901760, %v5739_v46 }
  0x3c   : > { %4700 = vmatprep.mubr.f32.mxu0 %v852_v1  ;;  %v891_v32 = vsub.f32 %v5731_v6, %v7640_v39  ;;  %v5795_v39 = vsub.f32 %v498_v24, %v5772_v7  ;;  %v5797_v49 = vand.u32 4294901760, %v504_v57  ;;  %v5806_v1 = vand.u32 4294901760, %v507_v51  ;;  %v383_v24 = vld [vmem:[%s5454_s30 + $0xf8] sm:$0xff]  ;;  %v384_v6 = vld [vmem:[%s5454_s30 + $0x100] sm:$0xff] }
  0x3d   : > { %v901_v11 = vsub.f32 %v5739_v46, %v7641_v44  ;;  %v5801_v44 = vsub.f32 %v501_v28, %v5778_v15  ;;  %v7645_v46 = vand.u32 4294901760, %v5759_v43  ;;  %v7647_v28 = vand.u32 4294901760, %v5767_v54 }
  0x3e   : > { %4804 = vmatmul.mubr.f32.gmra.mxu1 %v5649_v31  ;;  %7642 = vst [vmem:[#allocation36_spill] sm:$0xff] %v5795_v39  ;;  %7643 = vst [vmem:[#allocation37_spill] sm:$0xff] %v5797_v49  ;;  %v882_v31 = vand.u32 4294901760, %v881_v14  ;;  %v892_v35 = vand.u32 4294901760, %v891_v32  ;;  %v5822_v32 = vsub.f32 %v504_v57, %v5797_v49  ;;  %v385_v57 = vld [vmem:[%s5454_s30 + $0x108] sm:$0xff] }
  0x3f   : > { %4806 = vmatprep.mubr.f32.mxu1 %v5664_v12  ;;  %4701 = vmatmul.mubr.f32.gmra.mxu0 %v862_v30  ;;  %7644 = vst [vmem:[#allocation38_spill] sm:$0xff] %v5801_v44  ;;  %v911_v12 = vsub.f32 %v5759_v43, %v7645_v46  ;;  %7646 = vst [vmem:[#allocation39_spill] sm:$0xff] %v5806_v1  ;;  %v902_v38 = vand.u32 4294901760, %v901_v11  ;;  %v513_v30 = vsel %vm421_vm1, %v382_v34, 0  ;;  %v7648_v46 = vand.u32 4294901760, %v5770_v48 }
  0x40   : > { %4703 = vmatprep.mubr.f32.mxu0 %v872_v47  ;;  %v921_v14 = vsub.f32 %v5767_v54, %v7647_v28  ;;  %7649 = vst [vmem:[#allocation40_spill] sm:$0xff] %v5822_v32  ;;  %v5825_v11 = vand.u32 4294901760, %v510_v3  ;;  %v5830_v54 = vsub.f32 %v507_v51, %v5806_v1 }
  0x41   : > { %v931_v47 = vsub.f32 %v5770_v48, %v7648_v46  ;;  %v912_v28 = vand.u32 4294901760, %v911_v12  ;;  %v5832_v46 = vand.u32 4294901760, %v513_v30 }
  0x42   : > { %4807 = vmatmul.mubr.f32.gmra.mxu1 %v5670_v60  ;;  %7650 = vst [vmem:[#allocation41_spill] sm:$0xff] %v5825_v11  ;;  %v519_v60 = vsel %vm421_vm1, %v384_v6, 0  ;;  %7651 = vst [vmem:[#allocation42_spill] sm:$0xff] %v5830_v54  ;;  %v922_v51 = vand.u32 4294901760, %v921_v14  ;;  %v387_v14 = vld [vmem:[%s5454_s30 + $0x118] sm:$0xff] }
  0x43   : > { %4809 = vmatprep.mubr.f32.mxu1 %v5678_v52  ;;  %4704 = vmatmul.mubr.f32.gmra.mxu0 %v882_v31  ;;  %v516_v52 = vsel %vm421_vm1, %v383_v24, 0  ;;  %7652 = vst [vmem:[#allocation43_spill] sm:$0xff] %v5832_v46  ;;  %v7653_v31 = vand.u32 4294901760, %v5795_v39  ;;  %v5844_v12 = vand.u32 4294901760, %v519_v60  ;;  %v932_v34 = vand.u32 4294901760, %v931_v47 }
  0x44   : > { %4706 = vmatprep.mubr.f32.mxu0 %v892_v35  ;;  %v5842_v35 = vand.u32 4294901760, %v516_v52  ;;  %v5854_v6 = vsub.f32 %v513_v30, %v5832_v46 }
  0x45   : > { %v941_v24 = vsub.f32 %v5795_v39, %v7653_v31  ;;  %7655 = vst [vmem:[#allocation45_spill] sm:$0xff] %v5844_v12  ;;  %v522_v39 = vsel %vm421_vm1, %v385_v57, 0  ;;  %v5868_v30 = vsub.f32 %v519_v60, %v5844_v12  ;;  %v388_v57 = vld [vmem:[%s5454_s30 + $0x120] sm:$0xff] }
  0x46   : > { %4810 = vmatmul.mubr.f32.gmra.mxu1 %v5695_v2  ;;  %7654 = vst [vmem:[#allocation44_spill] sm:$0xff] %v5842_v35  ;;  %v7656_v2 = vand.u32 4294901760, %v5801_v44  ;;  %7658 = vst [vmem:[#allocation47_spill] sm:$0xff] %v5854_v6  ;;  %v5872_v31 = vand.u32 4294901760, %v522_v39 }
  0x47   : > { %4812 = vmatprep.mubr.f32.mxu1 %v5704_v25  ;;  %4707 = vmatmul.mubr.f32.gmra.mxu0 %v902_v38  ;;  %v5850_v25 = vsub.f32 %v510_v3, %v5825_v11  ;;  %v525_v38 = vsel %vm421_vm1, %v386_v33, 0  ;;  %v7659_v3 = vand.u32 4294901760, %v5822_v32  ;;  %7661 = vst [vmem:[#allocation49_spill] sm:$0xff] %v5868_v30 }
  0x48   : > { %v951_v48 = vsub.f32 %v5801_v44, %v7656_v2  ;;  %4709 = vmatprep.mubr.f32.mxu0 %v912_v28  ;;  %v942_v2 = vand.u32 4294901760, %v941_v24  ;;  %v5865_v28 = vsub.f32 %v516_v52, %v5842_v35  ;;  %7662 = vst [vmem:[#allocation50_spill] sm:$0xff] %v5872_v31  ;;  %v528_v24 = vsel %vm421_vm1, %v387_v14, 0  ;;  %v390_v14 = vld [vmem:[%s5454_s30 + $0x130] sm:$0xff] }
  0x49   : > { %7657 = vst [vmem:[#allocation46_spill] sm:$0xff] %v5850_v25  ;;  %v961_v47 = vsub.f32 %v5822_v32, %v7659_v3  ;;  %v7664_v3 = vand.u32 4294901760, %v5830_v54  ;;  %v389_v32 = vld [vmem:[%s5454_s30 + $0x128] sm:$0xff] }
  0x4a   : > { %4813 = vmatmul.mubr.f32.gmra.mxu1 %v5716_v63  ;;  %7660 = vst [vmem:[#allocation48_spill] sm:$0xff] %v5865_v28  ;;  %v5874_v63 = vand.u32 4294901760, %v525_v38 }
  0x4b   : > { %4815 = vmatprep.mubr.f32.mxu1 %v5733_v56  ;;  %4710 = vmatmul.mubr.f32.gmra.mxu0 %v922_v51  ;;  %v952_v56 = vand.u32 4294901760, %v951_v48  ;;  %v971_v52 = vsub.f32 %v5830_v54, %v7664_v3  ;;  %v531_v51 = vsel %vm421_vm1, %v388_v57, 0  ;;  %v962_v33 = vand.u32 4294901760, %v961_v47 }
  0x4c   : > { %7663 = vst [vmem:[#allocation51_spill] sm:$0xff] %v5874_v63  ;;  %4712 = vmatprep.mubr.f32.mxu0 %v932_v34  ;;  %v5887_v48 = vand.u32 4294901760, %v528_v24  ;;  %v7666_v3 = vand.u32 4294901760, %v5850_v25  ;;  %v5897_v57 = vsub.f32 %v525_v38, %v5874_v63  ;;  %v534_v47 = vsel %vm421_vm1, %v389_v32, 0 }
  0x4d   : > { %v972_v44 = vand.u32 4294901760, %v971_v52  ;;  %v7669_v34 = vand.u32 4294901760, %v5854_v6 }
  0x4e   : > { %4816 = vmatmul.mubr.f32.gmra.mxu1 %v5745_v21  ;;  %7665 = vst [vmem:[#allocation52_spill] sm:$0xff] %v5887_v48  ;;  %v981_v60 = vsub.f32 %v5850_v25, %v7666_v3  ;;  %v5894_v21 = vsub.f32 %v522_v39, %v5872_v31  ;;  %7668 = vst [vmem:[#allocation54_spill] sm:$0xff] %v5897_v57  ;;  %v537_v3 = vsel %vm421_vm1, %v390_v14, 0  ;;  %v391_v25 = vld [vmem:[%s5454_s30 + $0x138] sm:$0xff]  ;;  %v7671_v39 = vand.u32 4294901760, %v5865_v28 }
  0x4f   : > { %4818 = vmatprep.mubr.f32.mxu1 %v5747_v61  ;;  %4713 = vmatmul.mubr.f32.gmra.mxu0 %v942_v2  ;;  %v991_v61 = vsub.f32 %v5854_v6, %v7669_v34  ;;  %v5903_v2 = vand.u32 4294901760, %v531_v51  ;;  %v5916_v52 = vsub.f32 %v528_v24, %v5887_v48  ;;  %v5918_v34 = vand.u32 4294901760, %v534_v47  ;;  %v393_v24 = vld [vmem:[%s5454_s30 + $0x148] sm:$0xff] }
  0x50   : > { %7667 = vst [vmem:[#allocation53_spill] sm:$0xff] %v5894_v21  ;;  %4715 = vmatprep.mubr.f32.mxu0 %v952_v56  ;;  %v1001_v32 = vsub.f32 %v5865_v28, %v7671_v39  ;;  %v7672_v56 = vand.u32 4294901760, %v5868_v30  ;;  %v982_v14 = vand.u32 4294901760, %v981_v60  ;;  %v7506_v6 = vand.u32 4294901760, %v5894_v21 }
  0x51   : > { %7670 = vst [vmem:[#allocation55_spill] sm:$0xff] %v5903_v2  ;;  %7673 = vst [vmem:[#allocation56_spill] sm:$0xff] %v5916_v52  ;;  %v992_v54 = vand.u32 4294901760, %v991_v61  ;;  %v5924_v39 = vsub.f32 %v531_v51, %v5903_v2  ;;  %v5926_v28 = vand.u32 4294901760, %v537_v3  ;;  %v7678_v51 = vand.u32 4294901760, %v5897_v57 }
  0x52   : > { %4819 = vmatmul.mubr.f32.gmra.mxu1 %v5772_v7  ;;  %v1011_v38 = vsub.f32 %v5868_v30, %v7672_v56  ;;  %7674 = vst [vmem:[#allocation57_spill] sm:$0xff] %v5918_v34  ;;  %v392_v7 = vld [vmem:[%s5454_s30 + $0x140] sm:$0xff]  ;;  %v540_v56 = vsel %vm421_vm1, %v391_v25, 0  ;;  %v1002_v60 = vand.u32 4294901760, %v1001_v32  ;;  %v1021_v25 = vsub.f32 %v5894_v21, %v7506_v6 }
  0x53   : > { %4821 = vmatprep.mubr.f32.mxu1 %v5778_v15  ;;  %4716 = vmatmul.mubr.f32.gmra.mxu0 %v962_v33  ;;  %7675 = vst [vmem:[#allocation58_spill] sm:$0xff] %v5924_v39  ;;  %7676 = vst [vmem:[#allocation59_spill] sm:$0xff] %v5926_v28  ;;  %v543_v30 = vsel %vm421_vm1, %v392_v7, 0  ;;  %v394_v33 = vld [vmem:[%s5454_s30 + $0x150] sm:$0xff]  ;;  %v1031_v7 = vsub.f32 %v5897_v57, %v7678_v51  ;;  %v546_v32 = vsel %vm421_vm1, %v393_v24, 0  ;;  %v7682_v51 = vand.u32 4294901760, %v5916_v52 }
  0x54   : > { %4718 = vmatprep.mubr.f32.mxu0 %v972_v44  ;;  %v1012_v15 = vand.u32 4294901760, %v1011_v38  ;;  %v5936_v44 = vsub.f32 %v534_v47, %v5918_v34  ;;  %v5949_v47 = vsub.f32 %v537_v3, %v5926_v28  ;;  %v549_v61 = vsel %vm421_vm1, %v394_v33, 0  ;;  %v396_v3 = vld [vmem:[%s5454_s30 + $0x160] sm:$0xff] }
  0x55   : > { %v5961_v6 = vand.u32 4294901760, %v546_v32  ;;  %v1022_v38 = vand.u32 4294901760, %v1021_v25  ;;  %v5967_v57 = vand.u32 4294901760, %v549_v61  ;;  %v7686_v21 = vand.u32 4294901760, %v5924_v39  ;;  %v398_v25 = vld [vmem:[%s5454_s30 + $0x170] sm:$0xff] }
  0x56   : > { %4822 = vmatmul.mubr.f32.gmra.mxu1 %v5797_v49  ;;  %7677 = vst [vmem:[#allocation60_spill] sm:$0xff] %v5936_v44  ;;  %v5944_v49 = vand.u32 4294901760, %v540_v56  ;;  %7680 = vst [vmem:[#allocation62_spill] sm:$0xff] %v5949_v47 }
  0x57   : > { %4824 = vmatprep.mubr.f32.mxu1 %v5806_v1  ;;  %4719 = vmatmul.mubr.f32.gmra.mxu0 %v982_v14  ;;  %v5951_v14 = vand.u32 4294901760, %v543_v30  ;;  %v395_v1 = vld [vmem:[%s5454_s30 + $0x158] sm:$0xff]  ;;  %7683 = vst [vmem:[#allocation64_spill] sm:$0xff] %v5961_v6  ;;  %7685 = vst [vmem:[#allocation66_spill] sm:$0xff] %v5967_v57 }
  0x58   : > { %7679 = vst [vmem:[#allocation61_spill] sm:$0xff] %v5944_v49  ;;  %4721 = vmatprep.mubr.f32.mxu0 %v992_v54  ;;  %v1041_v54 = vsub.f32 %v5916_v52, %v7682_v51  ;;  %v5965_v33 = vsub.f32 %v540_v56, %v5944_v49  ;;  %v1051_v51 = vsub.f32 %v5924_v39, %v7686_v21  ;;  %v555_v56 = vsel %vm421_vm1, %v396_v3, 0 }
  0x59   : > { %7681 = vst [vmem:[#allocation63_spill] sm:$0xff] %v5951_v14  ;;  %v5975_v52 = vsub.f32 %v543_v30, %v5951_v14  ;;  %v5986_v21 = vsub.f32 %v546_v32, %v5961_v6  ;;  %v6000_v39 = vand.u32 4294901760, %v555_v56 }
  0x5a   : > { %4825 = vmatmul.mubr.f32.gmra.mxu1 %v5825_v11  ;;  %7684 = vst [vmem:[#allocation65_spill] sm:$0xff] %v5965_v33  ;;  %v552_v11 = vsel %vm421_vm1, %v395_v1, 0  ;;  %v7688_v1 = vand.u32 4294901760, %v5936_v44  ;;  %v7533_v30 = vand.u32 4294901760, %v5965_v33 }
  0x5b   : > { %4827 = vmatprep.mubr.f32.mxu1 %v5832_v46  ;;  %4722 = vmatmul.mubr.f32.gmra.mxu0 %v1002_v60  ;;  %v1032_v46 = vand.u32 4294901760, %v1031_v7  ;;  %7687 = vst [vmem:[#allocation67_spill] sm:$0xff] %v5975_v52  ;;  %v397_v60 = vld [vmem:[%s5454_s30 + $0x168] sm:$0xff]  ;;  %7689 = vst [vmem:[#allocation68_spill] sm:$0xff] %v5986_v21  ;;  %v5988_v24 = vand.u32 4294901760, %v552_v11  ;;  %v6023_v43 = vsub.f32 %v555_v56, %v6000_v39  ;;  %v402_v56 = vld [vmem:[%s5454_s30 + $0x190] sm:$0xff] }
  0x5c   : > { %4724 = vmatprep.mubr.f32.mxu0 %v1012_v15  ;;  %v1042_v15 = vand.u32 4294901760, %v1041_v54  ;;  %v1061_v7 = vsub.f32 %v5936_v44, %v7688_v1  ;;  %v558_v3 = vsel %vm421_vm1, %v397_v60, 0  ;;  %v561_v54 = vsel %vm421_vm1, %v398_v25, 0  ;;  %7693 = vst [vmem:[#allocation71_spill] sm:$0xff] %v6000_v39  ;;  %v400_v25 = vld [vmem:[%s5454_s30 + $0x180] sm:$0xff] }
  0x5d   : > { %7690 = vst [vmem:[#allocation69_spill] sm:$0xff] %v5988_v24  ;;  %v7692_v1 = vand.u32 4294901760, %v5949_v47  ;;  %v6006_v60 = vsub.f32 %v552_v11, %v5988_v24  ;;  %v7540_v44 = vand.u32 4294901760, %v5986_v21  ;;  %7698 = vst [vmem:[#allocation75_spill] sm:$0xff] %v6023_v43 }
  0x5e   : > { %4828 = vmatmul.mubr.f32.gmra.mxu1 %v5842_v35  ;;  %v5992_v35 = vsub.f32 %v549_v61, %v5967_v57  ;;  %v1062_v61 = vand.u32 4294901760, %v1061_v7 }
  0x5f   : > { %4830 = vmatprep.mubr.f32.mxu1 %v5844_v12  ;;  %4725 = vmatmul.mubr.f32.gmra.mxu0 %v1022_v38  ;;  %v1052_v12 = vand.u32 4294901760, %v1051_v51  ;;  %v1071_v32 = vsub.f32 %v5949_v47, %v7692_v1  ;;  %v399_v38 = vld [vmem:[%s5454_s30 + $0x178] sm:$0xff]  ;;  %7694 = vst [vmem:[#allocation72_spill] sm:$0xff] %v6006_v60  ;;  %v6010_v51 = vand.u32 4294901760, %v561_v54  ;;  %v1081_v1 = vsub.f32 %v5965_v33, %v7533_v30  ;;  %v401_v30 = vld [vmem:[%s5454_s30 + $0x188] sm:$0xff] }
  0x60   : > { %7691 = vst [vmem:[#allocation70_spill] sm:$0xff] %v5992_v35  ;;  %4727 = vmatprep.mubr.f32.mxu0 %v1032_v46  ;;  %v6008_v46 = vand.u32 4294901760, %v558_v3  ;;  %v564_v7 = vsel %vm421_vm1, %v399_v38, 0 }
  0x61   : > { %7696 = vst [vmem:[#allocation74_spill] sm:$0xff] %v6010_v51  ;;  %v1072_v11 = vand.u32 4294901760, %v1071_v32  ;;  %v6034_v32 = vsub.f32 %v561_v54, %v6010_v51  ;;  %v1082_v38 = vand.u32 4294901760, %v1081_v1  ;;  %v403_v1 = vld [vmem:[%s5454_s30 + $0x198] sm:$0xff] }
  0x62   : > { %4831 = vmatmul.mubr.f32.gmra.mxu1 %v5872_v31  ;;  %7695 = vst [vmem:[#allocation73_spill] sm:$0xff] %v6008_v46  ;;  %v7697_v31 = vand.u32 4294901760, %v5975_v52 }
  0x63   : > { %4833 = vmatprep.mubr.f32.mxu1 %v5874_v63  ;;  %4728 = vmatmul.mubr.f32.gmra.mxu0 %v1042_v15  ;;  %v567_v15 = vsel %vm421_vm1, %v400_v25, 0  ;;  %7700 = vst [vmem:[#allocation77_spill] sm:$0xff] %v6034_v32  ;;  %v1101_v25 = vsub.f32 %v5986_v21, %v7540_v44  ;;  %v7704_v44 = vand.u32 4294901760, %v6006_v60 }
  0x64   : > { %4730 = vmatprep.mubr.f32.mxu0 %v1052_v12  ;;  %v1091_v47 = vsub.f32 %v5975_v52, %v7697_v31  ;;  %v6031_v12 = vsub.f32 %v558_v3, %v6008_v46  ;;  %v6036_v31 = vand.u32 4294901760, %v564_v7  ;;  %v6046_v54 = vand.u32 4294901760, %v567_v15 }
  0x65   : > { %v570_v52 = vsel %vm421_vm1, %v401_v30, 0  ;;  %v404_v30 = vld [vmem:[%s5454_s30 + $0x1a0] sm:$0xff] }
  0x66   : > { %4834 = vmatmul.mubr.f32.gmra.mxu1 %v5887_v48  ;;  %7699 = vst [vmem:[#allocation76_spill] sm:$0xff] %v6031_v12  ;;  %7701 = vst [vmem:[#allocation78_spill] sm:$0xff] %v6036_v31  ;;  %v1092_v3 = vand.u32 4294901760, %v1091_v47  ;;  %v6059_v48 = vsub.f32 %v564_v7, %v6036_v31  ;;  %v405_v7 = vld [vmem:[%s5454_s30 + $0x1a8] sm:$0xff] }
  0x67   : > { %4836 = vmatprep.mubr.f32.mxu1 %v5903_v2  ;;  %4731 = vmatmul.mubr.f32.gmra.mxu0 %v1062_v61  ;;  %v7702_v2 = vand.u32 4294901760, %v5992_v35  ;;  %7703 = vst [vmem:[#allocation79_spill] sm:$0xff] %v6046_v54  ;;  %v573_v61 = vsel %vm421_vm1, %v402_v56, 0 }
  0x68   : > { %4733 = vmatprep.mubr.f32.mxu0 %v1072_v11  ;;  %7705 = vst [vmem:[#allocation80_spill] sm:$0xff] %v6059_v48  ;;  %v6070_v47 = vand.u32 4294901760, %v573_v61  ;;  %v576_v11 = vsel %vm421_vm1, %v403_v1, 0  ;;  %v407_v1 = vld [vmem:[%s5454_s30 + $0x1b8] sm:$0xff] }
  0x69   : > { %v1111_v63 = vsub.f32 %v5992_v35, %v7702_v2  ;;  %v1121_v2 = vsub.f32 %v6006_v60, %v7704_v44  ;;  %v6062_v35 = vand.u32 4294901760, %v570_v52  ;;  %v6068_v44 = vsub.f32 %v567_v15, %v6046_v54  ;;  %v406_v60 = vld [vmem:[%s5454_s30 + $0x1b0] sm:$0xff] }
  0x6a   : > { %4837 = vmatmul.mubr.f32.gmra.mxu1 %v5918_v34  ;;  %v1102_v34 = vand.u32 4294901760, %v1101_v25  ;;  %7709 = vst [vmem:[#allocation83_spill] sm:$0xff] %v6070_v47  ;;  %v7710_v25 = vand.u32 4294901760, %v6031_v12  ;;  %v7711_v15 = vand.u32 4294901760, %v6034_v32 }
  0x6b   : > { %4839 = vmatprep.mubr.f32.mxu1 %v5926_v28  ;;  %4734 = vmatmul.mubr.f32.gmra.mxu0 %v1082_v38  ;;  %v1112_v56 = vand.u32 4294901760, %v1111_v63  ;;  %7706 = vst [vmem:[#allocation81_spill] sm:$0xff] %v6062_v35  ;;  %v7707_v28 = vand.u32 4294901760, %v6023_v43  ;;  %7708 = vst [vmem:[#allocation82_spill] sm:$0xff] %v6068_v44  ;;  %v579_v63 = vsel %vm421_vm1, %v404_v30, 0  ;;  %v1122_v38 = vand.u32 4294901760, %v1121_v2 }
  0x6c   : > { %4736 = vmatprep.mubr.f32.mxu0 %v1092_v3  ;;  %v1151_v3 = vsub.f32 %v6034_v32, %v7711_v15  ;;  %v6088_v30 = vand.u32 4294901760, %v576_v11  ;;  %v585_v2 = vsel %vm421_vm1, %v406_v60, 0  ;;  %v6096_v15 = vand.u32 4294901760, %v579_v63 }
  0x6d   : > { %v1131_v21 = vsub.f32 %v6023_v43, %v7707_v28  ;;  %v1141_v28 = vsub.f32 %v6031_v12, %v7710_v25  ;;  %v6094_v12 = vsub.f32 %v573_v61, %v6070_v47  ;;  %v6104_v60 = vand.u32 4294901760, %v585_v2 }
  0x6e   : > { %4840 = vmatmul.mubr.f32.gmra.mxu1 %v5944_v49  ;;  %v6086_v49 = vsub.f32 %v570_v52, %v6062_v35  ;;  %7712 = vst [vmem:[#allocation84_spill] sm:$0xff] %v6088_v30  ;;  %v408_v52 = vld [vmem:[%s5454_s30 + $0x1c0] sm:$0xff]  ;;  %v6111_v25 = vsub.f32 %v576_v11, %v6088_v30 }
  0x6f   : > { %4842 = vmatprep.mubr.f32.mxu1 %v5951_v14  ;;  %4737 = vmatmul.mubr.f32.gmra.mxu0 %v1102_v34  ;;  %v582_v14 = vsel %vm421_vm1, %v405_v7, 0  ;;  %v1132_v43 = vand.u32 4294901760, %v1131_v21  ;;  %7713 = vst [vmem:[#allocation85_spill] sm:$0xff] %v6094_v12  ;;  %v1142_v34 = vand.u32 4294901760, %v1141_v28  ;;  %v1152_v7 = vand.u32 4294901760, %v1151_v3 }
  0x70   : > { %4739 = vmatprep.mubr.f32.mxu0 %v1112_v56  ;;  %v6102_v32 = vand.u32 4294901760, %v582_v14  ;;  %v7715_v21 = vand.u32 4294901760, %v6059_v48  ;;  %v7575_v56 = vand.u32 4294901760, %v6086_v49  ;;  %7716 = vst [vmem:[#allocation87_spill] sm:$0xff] %v6111_v25  ;;  %v7717_v28 = vand.u32 4294901760, %v6068_v44 }
  0x71   : > { %v591_v33 = vsel %vm421_vm1, %v408_v52, 0 }
  0x72   : > { %4843 = vmatmul.mubr.f32.gmra.mxu1 %v5961_v6  ;;  %7714 = vst [vmem:[#allocation86_spill] sm:$0xff] %v6102_v32  ;;  %v1161_v61 = vsub.f32 %v6059_v48, %v7715_v21  ;;  %v1171_v3 = vsub.f32 %v6068_v44, %v7717_v28  ;;  %v409_v21 = vld [vmem:[%s5454_s30 + $0x1c8] sm:$0xff]  ;;  %v6126_v11 = vsub.f32 %v582_v14, %v6102_v32  ;;  %v410_v28 = vld [vmem:[%s5454_s30 + $0x1d0] sm:$0xff]  ;;  %v7580_v6 = vand.u32 4294901760, %v6111_v25  ;;  %v411_v48 = vld [vmem:[%s5454_s30 + $0x1d8] sm:$0xff] }
  0x73   : > { %4845 = vmatprep.mubr.f32.mxu1 %v5967_v57  ;;  %4740 = vmatmul.mubr.f32.gmra.mxu0 %v1122_v38  ;;  %v588_v57 = vsel %vm421_vm1, %v407_v1, 0  ;;  %v6119_v38 = vsub.f32 %v579_v63, %v6096_v15  ;;  %v1181_v52 = vsub.f32 %v6086_v49, %v7575_v56 }
  0x74   : > { %4742 = vmatprep.mubr.f32.mxu0 %v1132_v43  ;;  %7719 = vst [vmem:[#allocation89_spill] sm:$0xff] %v6126_v11  ;;  %v6129_v43 = vsub.f32 %v585_v2, %v6104_v60  ;;  %v6131_v1 = vand.u32 4294901760, %v588_v57  ;;  %v1162_v63 = vand.u32 4294901760, %v1161_v61  ;;  %v1172_v14 = vand.u32 4294901760, %v1171_v3 }
  0x75   : > { %7718 = vst [vmem:[#allocation88_spill] sm:$0xff] %v6119_v38  ;;  %v597_v61 = vsel %vm421_vm1, %v410_v28, 0  ;;  %v1182_v44 = vand.u32 4294901760, %v1181_v52 }
  0x76   : > { %4846 = vmatmul.mubr.f32.gmra.mxu1 %v5988_v24  ;;  %v7720_v24 = vand.u32 4294901760, %v6094_v12  ;;  %v6152_v3 = vsub.f32 %v588_v57, %v6131_v1 }
  0x77   : > { %4848 = vmatprep.mubr.f32.mxu1 %v6000_v39  ;;  %4743 = vmatmul.mubr.f32.gmra.mxu0 %v1142_v34  ;;  %v6138_v39 = vand.u32 4294901760, %v591_v33  ;;  %v594_v34 = vsel %vm421_vm1, %v409_v21, 0  ;;  %v1201_v21 = vsub.f32 %v6111_v25, %v7580_v6  ;;  %v413_v6 = vld [vmem:[%s5454_s30 + $0x1e8] sm:$0xff]  ;;  %v414_v25 = vld [vmem:[%s5454_s30 + $0x1f0] sm:$0xff] }
  0x78   : > { %4745 = vmatprep.mubr.f32.mxu0 %v1152_v7  ;;  %v1191_v2 = vsub.f32 %v6094_v12, %v7720_v24  ;;  %v412_v24 = vld [vmem:[%s5454_s30 + $0x1e0] sm:$0xff]  ;;  %v7721_v7 = vand.u32 4294901760, %v6119_v38 }
  0x79   : > { %v6159_v28 = vsub.f32 %v591_v33, %v6138_v39  ;;  %v603_v52 = vsel %vm421_vm1, %v412_v24, 0  ;;  %v7722_v33 = vand.u32 4294901760, %v6126_v11 }
  0x7a   : > { %4849 = vmatmul.mubr.f32.gmra.mxu1 %v6008_v46  ;;  %v1192_v56 = vand.u32 4294901760, %v1191_v2  ;;  %v1211_v57 = vsub.f32 %v6119_v38, %v7721_v7  ;;  %v6166_v46 = vand.u32 4294901760, %v597_v61  ;;  %v7723_v2 = vand.u32 4294901760, %v6129_v43 }
  0x7b   : > { %4851 = vmatprep.mubr.f32.mxu1 %v6010_v51  ;;  %4746 = vmatmul.mubr.f32.gmra.mxu0 %v1162_v63  ;;  %v6161_v51 = vand.u32 4294901760, %v594_v34  ;;  %v600_v63 = vsel %vm421_vm1, %v411_v48, 0  ;;  %v7597_v38 = vand.u32 4294901760, %v6152_v3  ;;  %v1202_v48 = vand.u32 4294901760, %v1201_v21  ;;  %v415_v21 = vld [vmem:[%s5454_s30 + $0x1f8] sm:$0xff] }
  0x7c   : > { %4748 = vmatprep.mubr.f32.mxu0 %v1172_v14  ;;  %v1221_v14 = vsub.f32 %v6126_v11, %v7722_v33  ;;  %v1231_v7 = vsub.f32 %v6129_v43, %v7723_v2  ;;  %v1212_v12 = vand.u32 4294901760, %v1211_v57  ;;  %v6188_v33 = vsub.f32 %v597_v61, %v6166_v46 }
  0x7d   : > { %v6183_v24 = vsub.f32 %v594_v34, %v6161_v51  ;;  %v6190_v11 = vand.u32 4294901760, %v603_v52  ;;  %v606_v2 = vsel %vm421_vm1, %v413_v6, 0  ;;  %v7724_v61 = vand.u32 4294901760, %v6159_v28 }
  0x7e   : > { %4852 = vmatmul.mubr.f32.gmra.mxu1 %v6036_v31  ;;  %v1222_v34 = vand.u32 4294901760, %v1221_v14  ;;  %v1232_v31 = vand.u32 4294901760, %v1231_v7 }
  0x7f   : > { %4854 = vmatprep.mubr.f32.mxu1 %v6046_v54  ;;  %4749 = vmatmul.mubr.f32.gmra.mxu0 %v1182_v44  ;;  %v6185_v54 = vand.u32 4294901760, %v600_v63  ;;  %v609_v44 = vsel %vm421_vm1, %v414_v25, 0  ;;  %v1251_v57 = vsub.f32 %v6159_v28, %v7724_v61  ;;  %v7600_v6 = vand.u32 4294901760, %v6183_v24 }
  0x80   : > { %4751 = vmatprep.mubr.f32.mxu0 %v1192_v56  ;;  %v1241_v56 = vsub.f32 %v6152_v3, %v7597_v38  ;;  %v6207_v25 = vand.u32 4294901760, %v606_v2  ;;  %v6211_v7 = vsub.f32 %v603_v52, %v6190_v11 }
  0x81   : > { %v1252_v14 = vand.u32 4294901760, %v1251_v57 }
  0x82   : > { %4855 = vmatmul.mubr.f32.gmra.mxu1 %v6062_v35  ;;  %v6205_v35 = vsub.f32 %v600_v63, %v6185_v54  ;;  %v1242_v61 = vand.u32 4294901760, %v1241_v56  ;;  %v1261_v63 = vsub.f32 %v6183_v24, %v7600_v6  ;;  %v6223_v38 = vsub.f32 %v606_v2, %v6207_v25 }
  0x83   : > { %4857 = vmatprep.mubr.f32.mxu1 %v6070_v47  ;;  %4752 = vmatmul.mubr.f32.gmra.mxu0 %v1202_v48  ;;  %v6213_v47 = vand.u32 4294901760, %v609_v44  ;;  %v612_v48 = vsel %vm421_vm1, %v415_v21, 0  ;;  %v7725_v21 = vand.u32 4294901760, %v6188_v33  ;;  %v7603_v56 = vand.u32 4294901760, %v6211_v7 }
  0x84   : > { %4754 = vmatprep.mubr.f32.mxu0 %v1212_v12  ;;  %v1280_v12 = vand.u32 4294901760, %v6205_v35  ;;  %v6225_v52 = vand.u32 4294901760, %v612_v48  ;;  %v1262_v2 = vand.u32 4294901760, %v1261_v63  ;;  %v1300_v57 = vand.u32 4294901760, %v6223_v38 }
  0x86   : > { %4858 = vmatmul.mubr.f32.gmra.mxu1 %v6088_v30  ;;  %v1271_v30 = vsub.f32 %v6188_v33, %v7725_v21  ;;  %v6241_v6 = vsub.f32 %v612_v48, %v6225_v52  ;;  %v1301_v63 = vsub.f32 %v6223_v38, %v1300_v57 }
  0x87   : > { %4860 = vmatprep.mubr.f32.mxu1 %v6096_v15  ;;  %4755 = vmatmul.mubr.f32.gmra.mxu0 %v1222_v34  ;;  %v6232_v34 = vsub.f32 %v609_v44, %v6213_v47  ;;  %v1291_v44 = vsub.f32 %v6211_v7, %v7603_v56 }
  0x88   : > { %4757 = vmatprep.mubr.f32.mxu0 %v1232_v31  ;;  %v1281_v31 = vsub.f32 %v6205_v35, %v1280_v12  ;;  %v1272_v21 = vand.u32 4294901760, %v1271_v30  ;;  %v1320_v48 = vand.u32 4294901760, %v6241_v6  ;;  %v1302_v56 = vand.u32 4294901760, %v1301_v63  ;;  %v7758_v63 = vld [vmem:[#allocation38_spill] sm:$0xff] }
  0x89   : > { %v1292_v30 = vand.u32 4294901760, %v1291_v44  ;;  %v7726_v44 = vand.u32 4294901760, %v5488_v41 }
  0x8a   : > { %4861 = vmatmul.mubr.f32.gmra.mxu1 %v6102_v32  ;;  %v1310_v32 = vand.u32 4294901760, %v6232_v34 }
  0x8b   : > { %4863 = vmatprep.mubr.f32.mxu1 %v6104_v60  ;;  %4758 = vmatmul.mubr.f32.gmra.mxu0 %v1242_v61  ;;  %v1282_v61 = vand.u32 4294901760, %v1281_v31 }
  0x8c   : > { %4760 = vmatprep.mubr.f32.mxu0 %v1252_v14  ;;  %v1311_v14 = vsub.f32 %v6232_v34, %v1310_v32 }
  0x8e   : > { %4864 = vmatmul.mubr.f32.gmra.mxu1 %v6131_v1  ;;  %v1312_v31 = vand.u32 4294901760, %v1311_v14  ;;  %v7760_v14 = vand.u32 4294901760, %v7758_v63 }
  0x8f   : > { %4866 = vmatprep.mubr.f32.mxu1 %v6138_v39  ;;  %4761 = vmatmul.mubr.f32.gmra.mxu0 %v1262_v2  ;;  %v1321_v2 = vsub.f32 %v6241_v6, %v1320_v48 }
  0x90   : > { %4763 = vmatprep.mubr.f32.mxu0 %v1272_v21 }
  0x91   : > { %v1322_v21 = vand.u32 4294901760, %v1321_v2  ;;  %v7761_v2 = vld [vmem:[#allocation40_spill] sm:$0xff] }
  0x92   : > { %4867 = vmatmul.mubr.f32.gmra.mxu1 %v6161_v51 }
  0x93   : > { %4869 = vmatprep.mubr.f32.mxu1 %v6166_v46  ;;  %4764 = vmatmul.mubr.f32.gmra.mxu0 %v1282_v61  ;;  %v7728_v61 = vand.u32 4294901760, %v5508_v53 }
  0x94   : > { %4766 = vmatprep.mubr.f32.mxu0 %v1292_v30 }
  0x96   : > { %4870 = vmatmul.mubr.f32.gmra.mxu1 %v6185_v54 }
  0x97   : > { %4872 = vmatprep.mubr.f32.mxu1 %v6190_v11  ;;  %4767 = vmatmul.mubr.f32.gmra.mxu0 %v1302_v56  ;;  %v7727_v56 = vand.u32 4294901760, %v5491_v42 }
  0x98   : > { %4769 = vmatprep.mubr.f32.mxu0 %v1312_v31  ;;  %v7762_v31 = vld [vmem:[#allocation42_spill] sm:$0xff] }
  0x9a   : > { %4873 = vmatmul.mubr.f32.gmra.mxu1 %v6207_v25 }
  0x9b   : > { %4875 = vmatprep.mubr.f32.mxu1 %v6213_v47  ;;  %4770 = vmatmul.mubr.f32.gmra.mxu0 %v1322_v21  ;;  %v7763_v21 = vand.u32 4294901760, %v7761_v2 }
  0x9c   : > { %4888 = vmatprep.mubr.f32.mxu0 %v5488_v41  ;;  %v7730_v41 = vand.u32 4294901760, %v5528_v62 }
  0x9e   : > { %4876 = vmatmul.mubr.f32.gmra.mxu1 %v6225_v52 }
  0x9f   : > { %4994 = vmatprep.mubr.f32.mxu1 %v7726_v44  ;;  %4889 = vmatmul.mubr.f32.vlgmr.msra.gmra.mxu0 %v5491_v42  ;;  %v7738_v42 = vand.u32 4294901760, %v5621_v50  ;;  %v7764_v44 = vand.u32 4294901760, %v7762_v31 }
  0xa0   : > { %5091 = vmatpush3.msra.mxu0 %v5444_v18  ;;  %4891 = vmatprep.mubr.f32.mxu0 %v5508_v53  ;;  %v7729_v18 = vand.u32 4294901760, %v5514_v55  ;;  %v7740_v53 = vand.u32 4294901760, %v5642_v37 }
  0xa1   : > { %5092 = vmatprep.subr.mxu0 %v5436_v16 }
  0xa2   : > { %4995 = vmatmul.mubr.f32.vlgmr.msra.gmra.mxu1 %v7727_v56  ;;  %5093 = vmatpush3.msra.mxu0 %v5436_v16  ;;  %v7732_v16 = vand.u32 4294901760, %v5549_v26  ;;  %v7765_v56 = vld [vmem:[#allocation46_spill] sm:$0xff] }
  0xa3   : > { %5197 = vmatpush3.msra.mxu1 %v5410_v8  ;;  %4997 = vmatprep.mubr.f32.mxu1 %v7728_v61  ;;  %v7731_v8 = vand.u32 4294901760, %v5532_v0  ;;  %v7766_v61 = vld [vmem:[#allocation47_spill] sm:$0xff] }
  0xa4   : > { %4892 = vmatmul.mubr.f32.gmra.mxu0 %v5514_v55  ;;  %5198 = vmatprep.subr.mxu1 %v5400_v4  ;;  %v7742_v55 = vand.u32 4294901760, %v5676_v29 }
  0xa5   : > { %4894 = vmatprep.mubr.f32.mxu0 %v5528_v62  ;;  %5094 = vmatprep.subr.mxu0 %v5439_v17  ;;  %v7743_v62 = vand.u32 4294901760, %v5693_v45 }
  0xa6   : > { %4998 = vmatmul.mubr.f32.gmra.mxu1 %v7729_v18  ;;  %5095 = vmatpush3.msra.mxu0 %v5439_v17  ;;  %v7734_v17 = vand.u32 4294901760, %v5586_v58  ;;  %v7767_v18 = vand.u32 4294901760, %v7765_v56 }
  0xa7   : > { %5000 = vmatprep.mubr.f32.mxu1 %v7730_v41  ;;  %5199 = vmatpush3.msra.mxu1 %v5400_v4  ;;  %v7733_v4 = vand.u32 4294901760, %v5552_v27  ;;  %v7768_v41 = vand.u32 4294901760, %v7766_v61 }
  0xa8   : > { %4895 = vmatmul.mubr.f32.gmra.mxu0 %v5532_v0  ;;  %5200 = vmatprep.subr.mxu1 %v5402_v5  ;;  %v7744_v0 = vand.u32 4294901760, %v5702_v40 }
  0xa9   : > { %4897 = vmatprep.mubr.f32.mxu0 %v5549_v26  ;;  %5096 = vmatprep.subr.mxu0 %v5447_v19  ;;  %v7745_v26 = vld [vmem:[#allocation25_spill] sm:$0xff] }
  0xaa   : > { %5001 = vmatmul.mubr.f32.gmra.mxu1 %v7731_v8  ;;  %5097 = vmatpush3.msra.mxu0 %v5447_v19  ;;  %v7736_v19 = vand.u32 4294901760, %v5596_v22  ;;  %v7769_v8 = vld [vmem:[#allocation48_spill] sm:$0xff] }
  0xab   : > { %5003 = vmatprep.mubr.f32.mxu1 %v7732_v16  ;;  %5201 = vmatpush3.msra.mxu1 %v5402_v5  ;;  %v7735_v5 = vand.u32 4294901760, %v5589_v59  ;;  %v7770_v16 = vld [vmem:[#allocation49_spill] sm:$0xff] }
  0xac   : > { %4898 = vmatmul.mubr.f32.gmra.mxu0 %v5552_v27  ;;  %5202 = vmatprep.subr.mxu1 %v5412_v9  ;;  %v7746_v27 = vld [vmem:[#allocation26_spill] sm:$0xff] }
  0xad   : > { %4900 = vmatprep.mubr.f32.mxu0 %v5586_v58  ;;  %5098 = vmatprep.subr.mxu0 %v5457_v20  ;;  %v7749_v58 = vld [vmem:[#allocation28_spill] sm:$0xff] }
  0xae   : > { %5004 = vmatmul.mubr.f32.gmra.mxu1 %v7733_v4  ;;  %5099 = vmatpush3.msra.mxu0 %v5457_v20  ;;  %v7739_v20 = vand.u32 4294901760, %v5631_v13  ;;  %v7771_v4 = vand.u32 4294901760, %v7769_v8 }
  0xaf   : > { %5006 = vmatprep.mubr.f32.mxu1 %v7734_v17  ;;  %5203 = vmatpush3.msra.mxu1 %v5412_v9  ;;  %v7737_v9 = vand.u32 4294901760, %v5610_v36  ;;  %v7772_v17 = vand.u32 4294901760, %v7770_v16 }
  0xb0   : > { %4901 = vmatmul.mubr.f32.gmra.mxu0 %v5589_v59  ;;  %5204 = vmatprep.subr.mxu1 %v5414_v10  ;;  %v7750_v59 = vld [vmem:[#allocation31_spill] sm:$0xff] }
  0xb1   : > { %4903 = vmatprep.mubr.f32.mxu0 %v5596_v22  ;;  %5205 = vmatpush3.msra.mxu1 %v5414_v10  ;;  %v7741_v10 = vand.u32 4294901760, %v5662_v23  ;;  %v7752_v22 = vand.u32 4294901760, %v7750_v59 }
  0xb2   : > { %5007 = vmatmul.mubr.f32.gmra.mxu1 %v7735_v5 }
  0xb3   : > { %5009 = vmatprep.mubr.f32.mxu1 %v7736_v19  ;;  %v7773_v19 = vld [vmem:[#allocation53_spill] sm:$0xff] }
  0xb4   : > { %4904 = vmatmul.mubr.f32.gmra.mxu0 %v5610_v36  ;;  %v7754_v36 = vld [vmem:[#allocation33_spill] sm:$0xff] }
  0xb5   : > { %4906 = vmatprep.mubr.f32.mxu0 %v5621_v50 }
  0xb6   : > { %5010 = vmatmul.mubr.f32.gmra.mxu1 %v7737_v9  ;;  %v7774_v9 = vld [vmem:[#allocation54_spill] sm:$0xff] }
  0xb7   : > { %5012 = vmatprep.mubr.f32.mxu1 %v7738_v42 }
  0xb8   : > { %4907 = vmatmul.mubr.f32.gmra.mxu0 %v5631_v13  ;;  %v7756_v13 = vand.u32 4294901760, %v7754_v36 }
  0xb9   : > { %4909 = vmatprep.mubr.f32.mxu0 %v5642_v37  ;;  %v7748_v37 = vand.u32 4294901760, %v7746_v27 }
  0xba   : > { %5013 = vmatmul.mubr.f32.gmra.mxu1 %v7739_v20 }
  0xbb   : > { %5015 = vmatprep.mubr.f32.mxu1 %v7740_v53  ;;  %v7775_v53 = vand.u32 4294901760, %v7773_v19 }
  0xbc   : > { %4910 = vmatmul.mubr.f32.gmra.mxu0 %v5662_v23  ;;  %v7747_v23 = vand.u32 4294901760, %v7745_v26 }
  0xbd   : > { %4912 = vmatprep.mubr.f32.mxu0 %v5676_v29  ;;  %v7753_v29 = vld [vmem:[#allocation32_spill] sm:$0xff] }
  0xbe   : > { %5016 = vmatmul.mubr.f32.gmra.mxu1 %v7741_v10  ;;  %v7755_v50 = vand.u32 4294901760, %v7753_v29 }
  0xbf   : > { %5018 = vmatprep.mubr.f32.mxu1 %v7742_v55  ;;  %v7776_v55 = vand.u32 4294901760, %v7774_v9 }
  0xc0   : > { %4913 = vmatmul.mubr.f32.gmra.mxu0 %v5693_v45  ;;  %v7751_v45 = vand.u32 4294901760, %v7749_v58 }
  0xc1   : > { %4915 = vmatprep.mubr.f32.mxu0 %v5702_v40  ;;  %v7757_v40 = vld [vmem:[#allocation36_spill] sm:$0xff] }
  0xc2   : > { %5019 = vmatmul.mubr.f32.gmra.mxu1 %v7743_v62  ;;  %v7759_v30 = vand.u32 4294901760, %v7757_v40 }
  0xc3   : > { %5021 = vmatprep.mubr.f32.mxu1 %v7744_v0 }
  0xc4   : > { %4916 = vmatmul.mubr.f32.gmra.mxu0 %v7745_v26  ;;  %v7777_v26 = vld [vmem:[#allocation56_spill] sm:$0xff] }
  0xc5   : > { %4918 = vmatprep.mubr.f32.mxu0 %v7746_v27 }
  0xc6   : > { %5022 = vmatmul.mubr.f32.gmra.mxu1 %v7747_v23  ;;  %v7778_v23 = vld [vmem:[#allocation58_spill] sm:$0xff] }
  0xc7   : > { %5024 = vmatprep.mubr.f32.mxu1 %v7748_v37 }
  0xc8   : > { %4919 = vmatmul.mubr.f32.gmra.mxu0 %v7749_v58 }
  0xc9   : > { %4921 = vmatprep.mubr.f32.mxu0 %v7750_v59  ;;  %v7779_v59 = vand.u32 4294901760, %v7777_v26 }
  0xca   : > { %5025 = vmatmul.mubr.f32.gmra.mxu1 %v7751_v45 }
  0xcb   : > { %5027 = vmatprep.mubr.f32.mxu1 %v7752_v22  ;;  %v7780_v22 = vand.u32 4294901760, %v7778_v23 }
  0xcc   : > { %4922 = vmatmul.mubr.f32.gmra.mxu0 %v7753_v29 }
  0xcd   : > { %4924 = vmatprep.mubr.f32.mxu0 %v7754_v36 }
  0xce   : > { %5028 = vmatmul.mubr.f32.gmra.mxu1 %v7755_v50  ;;  %v7781_v50 = vld [vmem:[#allocation60_spill] sm:$0xff] }
  0xcf   : > { %5030 = vmatprep.mubr.f32.mxu1 %v7756_v13 }
  0xd0   : > { %4925 = vmatmul.mubr.f32.gmra.mxu0 %v7757_v40  ;;  %v7782_v40 = vld [vmem:[#allocation62_spill] sm:$0xff] }
  0xd1   : > { %4927 = vmatprep.mubr.f32.mxu0 %v7758_v63 }
  0xd2   : > { %5031 = vmatmul.mubr.f32.gmra.mxu1 %v7759_v30 }
  0xd3   : > { %5033 = vmatprep.mubr.f32.mxu1 %v7760_v14  ;;  %v7783_v14 = vand.u32 4294901760, %v7781_v50 }
  0xd4   : > { %4928 = vmatmul.mubr.f32.gmra.mxu0 %v7761_v2 }
  0xd5   : > { %4930 = vmatprep.mubr.f32.mxu0 %v7762_v31  ;;  %v7784_v31 = vand.u32 4294901760, %v7782_v40 }
  0xd6   : > { %5034 = vmatmul.mubr.f32.gmra.mxu1 %v7763_v21 }
  0xd7   : > { %5036 = vmatprep.mubr.f32.mxu1 %v7764_v44 }
  0xd8   : > { %4931 = vmatmul.mubr.f32.gmra.mxu0 %v7765_v56  ;;  %v7785_v56 = vld [vmem:[#allocation65_spill] sm:$0xff] }
  0xd9   : > { %4933 = vmatprep.mubr.f32.mxu0 %v7766_v61 }
  0xda   : > { %5037 = vmatmul.mubr.f32.gmra.mxu1 %v7767_v18  ;;  %v7786_v18 = vld [vmem:[#allocation67_spill] sm:$0xff] }
  0xdb   : > { %5039 = vmatprep.mubr.f32.mxu1 %v7768_v41 }
  0xdc   : > { %4934 = vmatmul.mubr.f32.gmra.mxu0 %v7769_v8 }
  0xdd   : > { %4936 = vmatprep.mubr.f32.mxu0 %v7770_v16  ;;  %v7787_v16 = vand.u32 4294901760, %v7785_v56 }
  0xde   : > { %5040 = vmatmul.mubr.f32.gmra.mxu1 %v7771_v4 }
  0xdf   : > { %5042 = vmatprep.mubr.f32.mxu1 %v7772_v17  ;;  %v4678_v5 = vpop.f32.mrf.mxu0  ;;  %v7788_v17 = vand.u32 4294901760, %v7786_v18 }
  0xe0   : > { %4937 = vmatmul.mubr.f32.gmra.mxu0 %v7773_v19 }
  0xe1   : > { %4939 = vmatprep.mubr.f32.mxu0 %v7774_v9  ;;  %v694_v42 = vpop.f32.mrf.mxu0  ;;  %v7789_v9 = vld [vmem:[#allocation68_spill] sm:$0xff] }
  0xe2   : > { %v4784_v20 = vpop.f32.mrf.mxu1  ;;  %5043 = vmatmul.mubr.f32.gmra.mxu1 %v7775_v53 }
  0xe3   : > { %v6387_v10 = vadd.f32 %v4784_v20, %v4678_v5  ;;  %5045 = vmatprep.mubr.f32.mxu1 %v7776_v55  ;;  %v4681_v62 = vpop.f32.mrf.mxu0  ;;  %v7790_v20 = vld [vmem:[#allocation70_spill] sm:$0xff] }
  0xe4   : > { %v1420_v0 = vpop.f32.mrf.mxu1  ;;  %4940 = vmatmul.mubr.f32.gmra.mxu0 %v7777_v26  ;;  %v7792_v26 = vand.u32 4294901760, %v7790_v20 }
  0xe5   : > { %v6392_v27 = vadd.f32 %v1420_v0, %v694_v42  ;;  %4942 = vmatprep.mubr.f32.mxu0 %v7778_v23  ;;  %v714_v37 = vpop.f32.mrf.mxu0 }
  0xe6   : > { %v4787_v58 = vpop.f32.mrf.mxu1  ;;  %5046 = vmatmul.mubr.f32.gmra.mxu1 %v7779_v59 }
  0xe7   : > { %v6397_v45 = vadd.f32 %v4787_v58, %v4681_v62  ;;  %5048 = vmatprep.mubr.f32.mxu1 %v7780_v22  ;;  %v4684_v29 = vpop.f32.mrf.mxu0  ;;  %v7791_v62 = vand.u32 4294901760, %v7789_v9  ;;  %v7793_v58 = vld [vmem:[#allocation72_spill] sm:$0xff]  ;;  %v7794_v22 = vld [vmem:[#allocation75_spill] sm:$0xff] }
  0xe8   : > { %v1432_v36 = vpop.f32.mrf.mxu1  ;;  %4943 = vmatmul.mubr.f32.gmra.mxu0 %v7781_v50  ;;  %v7795_v50 = vand.u32 4294901760, %v7793_v58 }
  0xe9   : > { %v6402_v13 = vadd.f32 %v1432_v36, %v714_v37  ;;  %4945 = vmatprep.mubr.f32.mxu0 %v7782_v40  ;;  %v734_v63 = vpop.f32.mrf.mxu0 }
  0xea   : > { %v4790_v30 = vpop.f32.mrf.mxu1  ;;  %5049 = vmatmul.mubr.f32.gmra.mxu1 %v7783_v14 }
  0xeb   : > { %v6407_v2 = vadd.f32 %v4790_v30, %v4684_v29  ;;  %5051 = vmatprep.mubr.f32.mxu1 %v7784_v31  ;;  %v4687_v21 = vpop.f32.mrf.mxu0  ;;  %v7797_v31 = vld [vmem:[#allocation76_spill] sm:$0xff] }
  0xec   : > { %v1444_v44 = vpop.f32.mrf.mxu1  ;;  %4946 = vmatmul.mubr.f32.gmra.mxu0 %v7785_v56 }
  0xed   : > { %v6412_v61 = vadd.f32 %v1444_v44, %v734_v63  ;;  %4948 = vmatprep.mubr.f32.mxu0 %v7786_v18  ;;  %v754_v41 = vpop.f32.mrf.mxu0  ;;  %v7796_v63 = vand.u32 4294901760, %v7794_v22  ;;  %v7798_v44 = vld [vmem:[#allocation77_spill] sm:$0xff] }
  0xee   : > { %v4793_v8 = vpop.f32.mrf.mxu1  ;;  %5052 = vmatmul.mubr.f32.gmra.mxu1 %v7787_v16  ;;  %v7800_v16 = vand.u32 4294901760, %v7798_v44 }
  0xef   : > { %v6417_v4 = vadd.f32 %v4793_v8, %v4687_v21  ;;  %5054 = vmatprep.mubr.f32.mxu1 %v7788_v17  ;;  %v4690_v5 = vpop.f32.mrf.mxu0 }
  0xf0   : > { %v1456_v19 = vpop.f32.mrf.mxu1  ;;  %4949 = vmatmul.mubr.f32.gmra.mxu0 %v7789_v9 }
  0xf1   : > { %v6422_v42 = vadd.f32 %v1456_v19, %v754_v41  ;;  %4951 = vmatprep.mubr.f32.mxu0 %v7790_v20  ;;  %v774_v53 = vpop.f32.mrf.mxu0  ;;  %v7799_v41 = vand.u32 4294901760, %v7797_v31  ;;  %v7801_v19 = vld [vmem:[#allocation80_spill] sm:$0xff]  ;;  %v7802_v20 = vld [vmem:[#allocation82_spill] sm:$0xff] }
  0xf2   : > { %v4796_v55 = vpop.f32.mrf.mxu1  ;;  %5055 = vmatmul.mubr.f32.gmra.mxu1 %v7791_v62  ;;  %v7803_v62 = vand.u32 4294901760, %v7801_v19 }
  0xf3   : > { %v6427_v0 = vadd.f32 %v4796_v55, %v4690_v5  ;;  %5057 = vmatprep.mubr.f32.mxu1 %v7792_v26  ;;  %v4693_v23 = vpop.f32.mrf.mxu0 }
  0xf4   : > { %v1468_v37 = vpop.f32.mrf.mxu1  ;;  %4952 = vmatmul.mubr.f32.gmra.mxu0 %v7793_v58 }
  0xf5   : > { %v6432_v59 = vadd.f32 %v1468_v37, %v774_v53  ;;  %4954 = vmatprep.mubr.f32.mxu0 %v7794_v22  ;;  %v794_v29 = vpop.f32.mrf.mxu0 }
  0xf6   : > { %v4799_v36 = vpop.f32.mrf.mxu1  ;;  %5058 = vmatmul.mubr.f32.gmra.mxu1 %v7795_v50 }
  0xf7   : > { %v6437_v40 = vadd.f32 %v4799_v36, %v4693_v23  ;;  %5060 = vmatprep.mubr.f32.mxu1 %v7796_v63  ;;  %v4696_v30 = vpop.f32.mrf.mxu0  ;;  %v7804_v23 = vand.u32 4294901760, %v7802_v20  ;;  %v7806_v63 = vand.u32 4294901760, %v6086_v49 }
  0xf8   : > { %v1480_v14 = vpop.f32.mrf.mxu1  ;;  %4955 = vmatmul.mubr.f32.gmra.mxu0 %v7797_v31 }
  0xf9   : > { %v6442_v21 = vadd.f32 %v1480_v14, %v794_v29  ;;  %4957 = vmatprep.mubr.f32.mxu0 %v7798_v44  ;;  %v814_v56 = vpop.f32.mrf.mxu0  ;;  %v7805_v29 = vld [vmem:[#allocation85_spill] sm:$0xff] }
  0xfa   : > { %v4802_v18 = vpop.f32.mrf.mxu1  ;;  %5061 = vmatmul.mubr.f32.gmra.mxu1 %v7799_v41  ;;  %v7807_v14 = vand.u32 4294901760, %v7805_v29  ;;  %v7809_v41 = vld [vmem:[#allocation88_spill] sm:$0xff] }
  0xfb   : > { %v6447_v8 = vadd.f32 %v4802_v18, %v4696_v30  ;;  %5063 = vmatprep.mubr.f32.mxu1 %v7800_v16  ;;  %v4699_v17 = vpop.f32.mrf.mxu0 }
  0xfc   : > { %v1492_v5 = vpop.f32.mrf.mxu1  ;;  %4958 = vmatmul.mubr.f32.gmra.mxu0 %v7801_v19  ;;  %v7811_v19 = vand.u32 4294901760, %v7809_v41 }
  0xfd   : > { %v6452_v9 = vadd.f32 %v1492_v5, %v814_v56  ;;  %4960 = vmatprep.mubr.f32.mxu0 %v7802_v20  ;;  %v834_v53 = vpop.f32.mrf.mxu0  ;;  %v7808_v56 = vld [vmem:[#allocation87_spill] sm:$0xff] }
  0xfe   : > { %v4805_v55 = vpop.f32.mrf.mxu1  ;;  %5064 = vmatmul.mubr.f32.gmra.mxu1 %v7803_v62  ;;  %v7810_v5 = vand.u32 4294901760, %v7808_v56 }
  0xff   : > { %v6457_v26 = vadd.f32 %v4805_v55, %v4699_v17  ;;  %5066 = vmatprep.mubr.f32.mxu1 %v7804_v23  ;;  %v4702_v37 = vpop.f32.mrf.mxu0  ;;  %v7812_v55 = vld [vmem:[#allocation89_spill] sm:$0xff] }
 0x100   : > { %v1504_v58 = vpop.f32.mrf.mxu1  ;;  %4961 = vmatmul.mubr.f32.gmra.mxu0 %v6086_v49 }
 0x101   : > { %v6462_v22 = vadd.f32 %v1504_v58, %v834_v53  ;;  %4963 = vmatprep.mubr.f32.mxu0 %v7805_v29  ;;  %v854_v36 = vpop.f32.mrf.mxu0  ;;  %v7813_v58 = vand.u32 4294901760, %v7812_v55 }
 0x102   : > { %v4808_v50 = vpop.f32.mrf.mxu1  ;;  %5067 = vmatmul.mubr.f32.gmra.mxu1 %v7806_v63 }
 0x103   : > { %v6467_v30 = vadd.f32 %v4808_v50, %v4702_v37  ;;  %5069 = vmatprep.mubr.f32.mxu1 %v7807_v14  ;;  %v4705_v31 = vpop.f32.mrf.mxu0 }
 0x104   : > { %v1516_v44 = vpop.f32.mrf.mxu1  ;;  %4964 = vmatmul.mubr.f32.gmra.mxu0 %v7808_v56  ;;  %v7815_v56 = vand.u32 4294901760, %v6152_v3 }
 0x105   : > { %v6472_v18 = vadd.f32 %v1516_v44, %v854_v36  ;;  %4966 = vmatprep.mubr.f32.mxu0 %v7809_v41  ;;  %v874_v16 = vpop.f32.mrf.mxu0  ;;  %v7814_v36 = vand.u32 4294901760, %v6129_v43 }
 0x106   : > { %v4811_v17 = vpop.f32.mrf.mxu1  ;;  %5070 = vmatmul.mubr.f32.gmra.mxu1 %v7810_v5 }
 0x107   : > { %v6477_v49 = vadd.f32 %v4811_v17, %v4705_v31  ;;  %5072 = vmatprep.mubr.f32.mxu1 %v7811_v19  ;;  %v4708_v20 = vpop.f32.mrf.mxu0 }
 0x108   : > { %v1528_v53 = vpop.f32.mrf.mxu1  ;;  %4967 = vmatmul.mubr.f32.gmra.mxu0 %v7812_v55  ;;  %v7818_v55 = vand.u32 4294901760, %v6188_v33 }
 0x109   : > { %v6482_v62 = vadd.f32 %v1528_v53, %v874_v16  ;;  %4969 = vmatprep.mubr.f32.mxu0 %v6129_v43  ;;  %v894_v23 = vpop.f32.mrf.mxu0  ;;  %v7816_v16 = vand.u32 4294901760, %v6159_v28  ;;  %v7817_v53 = vand.u32 4294901760, %v6183_v24 }
 0x10a   : > { %v4814_v37 = vpop.f32.mrf.mxu1  ;;  %5073 = vmatmul.mubr.f32.gmra.mxu1 %v7813_v58 }
 0x10b   : > { %v6487_v29 = vadd.f32 %v4814_v37, %v4708_v20  ;;  %5075 = vmatprep.mubr.f32.mxu1 %v7814_v36  ;;  %v4711_v50 = vpop.f32.mrf.mxu0 }
 0x10c   : > { %v1540_v63 = vpop.f32.mrf.mxu1  ;;  %4970 = vmatmul.mubr.f32.gmra.mxu0 %v6152_v3 }
 0x10d   : > { %v6492_v14 = vadd.f32 %v1540_v63, %v894_v23  ;;  %4972 = vmatprep.mubr.f32.mxu0 %v6159_v28  ;;  %v914_v31 = vpop.f32.mrf.mxu0 }
 0x10e   : > { %v4817_v44 = vpop.f32.mrf.mxu1  ;;  %5076 = vmatmul.mubr.f32.gmra.mxu1 %v7815_v56 }
 0x10f   : > { %v6497_v41 = vadd.f32 %v4817_v44, %v4711_v50  ;;  %5078 = vmatprep.mubr.f32.mxu1 %v7816_v16  ;;  %v4714_v43 = vpop.f32.mrf.mxu0  ;;  %v7819_v50 = vand.u32 4294901760, %v6211_v7 }
 0x110   : > { %v1552_v17 = vpop.f32.mrf.mxu1  ;;  %4973 = vmatmul.mubr.f32.gmra.mxu0 %v6183_v24 }
 0x111   : > { %v6502_v5 = vadd.f32 %v1552_v17, %v914_v31  ;;  %4975 = vmatprep.mubr.f32.mxu0 %v6188_v33  ;;  %v934_v19 = vpop.f32.mrf.mxu0 }
 0x112   : > { %v4820_v20 = vpop.f32.mrf.mxu1  ;;  %5079 = vmatmul.mubr.f32.gmra.mxu1 %v7817_v53  ;;  %v7822_v53 = vld [vmem:[#allocation5_spill] sm:$0xff] }
 0x113   : > { %v6507_v3 = vadd.f32 %v4820_v20, %v4714_v43  ;;  %5081 = vmatprep.mubr.f32.mxu1 %v7818_v55  ;;  %v4717_v28 = vpop.f32.mrf.mxu0  ;;  %v7820_v43 = vld [vmem:[#allocation3_spill] sm:$0xff] }
 0x114   : > { %v1564_v23 = vpop.f32.mrf.mxu1  ;;  %4976 = vmatmul.mubr.f32.gmra.mxu0 %v6205_v35 }
 0x115   : > { %v6512_v37 = vadd.f32 %v1564_v23, %v934_v19  ;;  %4978 = vmatprep.mubr.f32.mxu0 %v6211_v7  ;;  %v954_v58 = vpop.f32.mrf.mxu0 }
 0x116   : > { %v4823_v36 = vpop.f32.mrf.mxu1  ;;  %5082 = vmatmul.mubr.f32.gmra.mxu1 %v1280_v12 }
 0x117   : > { %v6517_v24 = vadd.f32 %v4823_v36, %v4717_v28  ;;  %5084 = vmatprep.mubr.f32.mxu1 %v7819_v50  ;;  %v4720_v33 = vpop.f32.mrf.mxu0  ;;  %v7824_v50 = vld [vmem:[#allocation7_spill] sm:$0xff] }
 0x118   : > { %v1576_v63 = vpop.f32.mrf.mxu1  ;;  %4979 = vmatmul.mubr.f32.gmra.mxu0 %v6223_v38 }
 0x119   : > { %v6522_v31 = vadd.f32 %v1576_v63, %v954_v58  ;;  %4981 = vmatprep.mubr.f32.mxu0 %v6232_v34  ;;  %v974_v44 = vpop.f32.mrf.mxu0  ;;  %v7823_v58 = vld [vmem:[#allocation6_spill] sm:$0xff] }
 0x11a   : > { %v4826_v56 = vpop.f32.mrf.mxu1  ;;  %5085 = vmatmul.mubr.f32.gmra.mxu1 %v1300_v57 }
 0x11b   : > { %v6527_v35 = vadd.f32 %v4826_v56, %v4720_v33  ;;  %5087 = vmatprep.mubr.f32.mxu1 %v1310_v32  ;;  %v4723_v7 = vpop.f32.mrf.mxu0  ;;  %v7821_v32 = vld [vmem:[#allocation4_spill] sm:$0xff] }
 0x11c   : > { %v1588_v12 = vpop.f32.mrf.mxu1  ;;  %4982 = vmatmul.mubr.f32.gmra.mxu0 %v6241_v6 }
 0x11d   : > { %v6532_v16 = vadd.f32 %v1588_v12, %v974_v44  ;;  %5100 = vmatprep.mubr.f32.mxu0 %v7820_v43  ;;  %v994_v17 = vpop.f32.mrf.mxu0  ;;  %v7825_v12 = vld [vmem:[#allocation8_spill] sm:$0xff] }
 0x11e   : > { %v4829_v19 = vpop.f32.mrf.mxu1  ;;  %5088 = vmatmul.mubr.f32.gmra.mxu1 %v1320_v48 }
 0x11f   : > { %v6537_v38 = vadd.f32 %v4829_v19, %v4723_v7  ;;  %5206 = vmatprep.mubr.f32.mxu1 %v7820_v43  ;;  %v4726_v57 = vpop.f32.mrf.mxu0 }
 0x120   : > { %v1600_v34 = vpop.f32.mrf.mxu1  ;;  %5101 = vmatmul.mubr.f32.vlgmr.msra.gmra.mxu0 %v7821_v32 }
 0x121   : > { %v6541_v20 = vadd.f32 %v1600_v34, %v994_v17  ;;  %5103 = vmatprep.mubr.f32.mxu0 %v7822_v53  ;;  %v1014_v55 = vpop.f32.mrf.mxu0  ;;  %v7826_v17 = vld [vmem:[#allocation9_spill] sm:$0xff] }
 0x122   : > { %v4832_v28 = vpop.f32.mrf.mxu1  ;;  %5207 = vmatmul.mubr.f32.vlgmr.msra.gmra.mxu1 %v7821_v32 }
 0x123   : > { %v6545_v23 = vadd.f32 %v4832_v28, %v4726_v57  ;;  %5209 = vmatprep.mubr.f32.mxu1 %v7822_v53  ;;  %v4729_v6 = vpop.f32.mrf.mxu0 }
 0x124   : > { %v1612_v48 = vpop.f32.mrf.mxu1  ;;  %5104 = vmatmul.mubr.f32.gmra.mxu0 %v7823_v58 }
 0x125   : > { %v6549_v36 = vadd.f32 %v1612_v48, %v1014_v55  ;;  %5106 = vmatprep.mubr.f32.mxu0 %v7824_v50  ;;  %v1034_v33 = vpop.f32.mrf.mxu0  ;;  %v7827_v55 = vld [vmem:[#allocation10_spill] sm:$0xff] }
 0x126   : > { %v4835_v63 = vpop.f32.mrf.mxu1  ;;  %5210 = vmatmul.mubr.f32.gmra.mxu1 %v7823_v58 }
 0x127   : > { %v6553_v44 = vadd.f32 %v4835_v63, %v4729_v6  ;;  %5212 = vmatprep.mubr.f32.mxu1 %v7824_v50  ;;  %v4732_v56 = vpop.f32.mrf.mxu0  ;;  %v7828_v6 = vld [vmem:[#allocation11_spill] sm:$0xff] }
 0x128   : > { %v1624_v7 = vpop.f32.mrf.mxu1  ;;  %5107 = vmatmul.mubr.f32.gmra.mxu0 %v7825_v12 }
 0x129   : > { %v6557_v43 = vadd.f32 %v1624_v7, %v1034_v33  ;;  %5109 = vmatprep.mubr.f32.mxu0 %v7826_v17  ;;  %v1054_v19 = vpop.f32.mrf.mxu0 }
 0x12a   : > { %v4838_v57 = vpop.f32.mrf.mxu1  ;;  %5213 = vmatmul.mubr.f32.gmra.mxu1 %v7825_v12  ;;  %v7831_v12 = vld [vmem:[#allocation13_spill] sm:$0xff] }
 0x12b   : > { %v6561_v34 = vadd.f32 %v4838_v57, %v4732_v56  ;;  %5215 = vmatprep.mubr.f32.mxu1 %v7826_v17  ;;  %v4735_v32 = vpop.f32.mrf.mxu0  ;;  %v7829_v56 = vld [vmem:[#allocation12_spill] sm:$0xff] }
 0x12c   : > { %v1636_v53 = vpop.f32.mrf.mxu1  ;;  %5110 = vmatmul.mubr.f32.gmra.mxu0 %v7827_v55 }
 0x12d   : > { %v6565_v28 = vadd.f32 %v1636_v53, %v1054_v19  ;;  %5112 = vmatprep.mubr.f32.mxu0 %v7828_v6  ;;  %v1074_v48 = vpop.f32.mrf.mxu0 }
 0x12e   : > { %v4841_v58 = vpop.f32.mrf.mxu1  ;;  %5216 = vmatmul.mubr.f32.gmra.mxu1 %v7827_v55  ;;  %v7833_v55 = vld [vmem:[#allocation14_spill] sm:$0xff] }
 0x12f   : > { %v6569_v50 = vadd.f32 %v4841_v58, %v4735_v32  ;;  %5218 = vmatprep.mubr.f32.mxu1 %v7828_v6  ;;  %v4738_v33 = vpop.f32.mrf.mxu0  ;;  %v7835_v58 = vld [vmem:[#allocation15_spill] sm:$0xff] }
 0x130   : > { %v1648_v63 = vpop.f32.mrf.mxu1  ;;  %5113 = vmatmul.mubr.f32.gmra.mxu0 %v7829_v56 }
 0x131   : > { %v6573_v7 = vadd.f32 %v1648_v63, %v1074_v48  ;;  %5115 = vmatprep.mubr.f32.mxu0 %v7831_v12  ;;  %v1094_v17 = vpop.f32.mrf.mxu0 }
 0x132   : > { %v4844_v19 = vpop.f32.mrf.mxu1  ;;  %5219 = vmatmul.mubr.f32.gmra.mxu1 %v7829_v56 }
 0x133   : > { %7830 = vst [vmem:[#allocation25_spill] sm:$0xff] %v6573_v7  ;;  %v6577_v57 = vadd.f32 %v4844_v19, %v4738_v33  ;;  %5221 = vmatprep.mubr.f32.mxu1 %v7831_v12  ;;  %v4741_v32 = vpop.f32.mrf.mxu0  ;;  %v7837_v19 = vld [vmem:[#allocation16_spill] sm:$0xff] }
 0x134   : > { %v1660_v53 = vpop.f32.mrf.mxu1  ;;  %5116 = vmatmul.mubr.f32.gmra.mxu0 %v7833_v55 }
 0x135   : > { %7832 = vst [vmem:[#allocation26_spill] sm:$0xff] %v6577_v57  ;;  %v6581_v6 = vadd.f32 %v1660_v53, %v1094_v17  ;;  %5118 = vmatprep.mubr.f32.mxu0 %v7835_v58  ;;  %v1114_v48 = vpop.f32.mrf.mxu0  ;;  %v7839_v57 = vld [vmem:[#allocation17_spill] sm:$0xff] }
 0x136   : > { %v4847_v63 = vpop.f32.mrf.mxu1  ;;  %5222 = vmatmul.mubr.f32.gmra.mxu1 %v7833_v55 }
 0x137   : > { %7834 = vst [vmem:[#allocation28_spill] sm:$0xff] %v6581_v6  ;;  %v6585_v7 = vadd.f32 %v4847_v63, %v4741_v32  ;;  %5224 = vmatprep.mubr.f32.mxu1 %v7835_v58  ;;  %v4744_v33 = vpop.f32.mrf.mxu0  ;;  %v7841_v63 = vld [vmem:[#allocation18_spill] sm:$0xff] }
 0x138   : > { %v1672_v56 = vpop.f32.mrf.mxu1  ;;  %5119 = vmatmul.mubr.f32.gmra.mxu0 %v7837_v19 }
 0x139   : > { %7836 = vst [vmem:[#allocation31_spill] sm:$0xff] %v6585_v7  ;;  %v6589_v12 = vadd.f32 %v1672_v56, %v1114_v48  ;;  %5121 = vmatprep.mubr.f32.mxu0 %v7839_v57  ;;  %v1134_v17 = vpop.f32.mrf.mxu0  ;;  %v7843_v7 = vld [vmem:[#allocation19_spill] sm:$0xff] }
 0x13a   : > { %v4850_v53 = vpop.f32.mrf.mxu1  ;;  %5225 = vmatmul.mubr.f32.gmra.mxu1 %v7837_v19 }
 0x13b   : > { %7838 = vst [vmem:[#allocation32_spill] sm:$0xff] %v6589_v12  ;;  %v6593_v6 = vadd.f32 %v4850_v53, %v4744_v33  ;;  %5227 = vmatprep.mubr.f32.mxu1 %v7839_v57  ;;  %v4747_v32 = vpop.f32.mrf.mxu0  ;;  %v7845_v53 = vld [vmem:[#allocation20_spill] sm:$0xff] }
 0x13c   : > { %v1684_v55 = vpop.f32.mrf.mxu1  ;;  %5122 = vmatmul.mubr.f32.gmra.mxu0 %v7841_v63 }
 0x13d   : > { %7840 = vst [vmem:[#allocation33_spill] sm:$0xff] %v6593_v6  ;;  %v6597_v58 = vadd.f32 %v1684_v55, %v1134_v17  ;;  %5124 = vmatprep.mubr.f32.mxu0 %v7843_v7  ;;  %v1154_v48 = vpop.f32.mrf.mxu0  ;;  %v7847_v6 = vld [vmem:[#allocation21_spill] sm:$0xff] }
 0x13e   : > { %v4853_v56 = vpop.f32.mrf.mxu1  ;;  %5228 = vmatmul.mubr.f32.gmra.mxu1 %v7841_v63 }
 0x13f   : > { %7842 = vst [vmem:[#allocation36_spill] sm:$0xff] %v6597_v58  ;;  %v6601_v12 = vadd.f32 %v4853_v56, %v4747_v32  ;;  %5230 = vmatprep.mubr.f32.mxu1 %v7843_v7  ;;  %v4750_v33 = vpop.f32.mrf.mxu0  ;;  %v7849_v56 = vld [vmem:[#allocation22_spill] sm:$0xff] }
 0x140   : > { %v1696_v19 = vpop.f32.mrf.mxu1  ;;  %5125 = vmatmul.mubr.f32.gmra.mxu0 %v7845_v53 }
 0x141   : > { %7844 = vst [vmem:[#allocation38_spill] sm:$0xff] %v6601_v12  ;;  %v6605_v57 = vadd.f32 %v1696_v19, %v1154_v48  ;;  %5127 = vmatprep.mubr.f32.mxu0 %v7847_v6  ;;  %v1174_v17 = vpop.f32.mrf.mxu0  ;;  %v7851_v12 = vld [vmem:[#allocation23_spill] sm:$0xff] }
 0x142   : > { %v4856_v55 = vpop.f32.mrf.mxu1  ;;  %5231 = vmatmul.mubr.f32.gmra.mxu1 %v7845_v53 }
 0x143   : > { %7846 = vst [vmem:[#allocation40_spill] sm:$0xff] %v6605_v57  ;;  %v6609_v58 = vadd.f32 %v4856_v55, %v4750_v33  ;;  %5233 = vmatprep.mubr.f32.mxu1 %v7847_v6  ;;  %v4753_v32 = vpop.f32.mrf.mxu0  ;;  %v7853_v55 = vld [vmem:[#allocation24_spill] sm:$0xff] }
 0x144   : > { %v1708_v63 = vpop.f32.mrf.mxu1  ;;  %5128 = vmatmul.mubr.f32.gmra.mxu0 %v7849_v56 }
 0x145   : > { %7848 = vst [vmem:[#allocation42_spill] sm:$0xff] %v6609_v58  ;;  %v6613_v7 = vadd.f32 %v1708_v63, %v1174_v17  ;;  %5130 = vmatprep.mubr.f32.mxu0 %v7851_v12  ;;  %v1194_v48 = vpop.f32.mrf.mxu0  ;;  %v7855_v58 = vld [vmem:[#allocation27_spill] sm:$0xff] }
 0x146   : > { %v4859_v19 = vpop.f32.mrf.mxu1  ;;  %5234 = vmatmul.mubr.f32.gmra.mxu1 %v7849_v56 }
 0x147   : > { %7850 = vst [vmem:[#allocation46_spill] sm:$0xff] %v6613_v7  ;;  %v6617_v57 = vadd.f32 %v4859_v19, %v4753_v32  ;;  %5236 = vmatprep.mubr.f32.mxu1 %v7851_v12  ;;  %v4756_v33 = vpop.f32.mrf.mxu0  ;;  %v7857_v19 = vld [vmem:[#allocation29_spill] sm:$0xff] }
 0x148   : > { %v1720_v53 = vpop.f32.mrf.mxu1  ;;  %5131 = vmatmul.mubr.f32.gmra.mxu0 %v7853_v55 }
 0x149   : > { %7852 = vst [vmem:[#allocation47_spill] sm:$0xff] %v6617_v57  ;;  %v6621_v6 = vadd.f32 %v1720_v53, %v1194_v48  ;;  %5133 = vmatprep.mubr.f32.mxu0 %v7855_v58  ;;  %v1214_v17 = vpop.f32.mrf.mxu0  ;;  %v7859_v57 = vld [vmem:[#allocation30_spill] sm:$0xff] }
 0x14a   : > { %v4862_v63 = vpop.f32.mrf.mxu1  ;;  %5237 = vmatmul.mubr.f32.gmra.mxu1 %v7853_v55 }
 0x14b   : > { %7854 = vst [vmem:[#allocation48_spill] sm:$0xff] %v6621_v6  ;;  %v6625_v7 = vadd.f32 %v4862_v63, %v4756_v33  ;;  %5239 = vmatprep.mubr.f32.mxu1 %v7855_v58  ;;  %v4759_v32 = vpop.f32.mrf.mxu0  ;;  %v7861_v63 = vld [vmem:[#allocation34_spill] sm:$0xff] }
 0x14c   : > { %v1732_v56 = vpop.f32.mrf.mxu1  ;;  %5134 = vmatmul.mubr.f32.gmra.mxu0 %v7857_v19 }
 0x14d   : > { %7856 = vst [vmem:[#allocation49_spill] sm:$0xff] %v6625_v7  ;;  %v6629_v12 = vadd.f32 %v1732_v56, %v1214_v17  ;;  %5136 = vmatprep.mubr.f32.mxu0 %v7859_v57  ;;  %v1234_v48 = vpop.f32.mrf.mxu0  ;;  %v7863_v7 = vld [vmem:[#allocation35_spill] sm:$0xff] }
 0x14e   : > { %v4865_v53 = vpop.f32.mrf.mxu1  ;;  %5240 = vmatmul.mubr.f32.gmra.mxu1 %v7857_v19 }
 0x14f   : > { %7858 = vst [vmem:[#allocation53_spill] sm:$0xff] %v6629_v12  ;;  %v6633_v6 = vadd.f32 %v4865_v53, %v4759_v32  ;;  %5242 = vmatprep.mubr.f32.mxu1 %v7859_v57  ;;  %v4762_v33 = vpop.f32.mrf.mxu0  ;;  %v7865_v53 = vld [vmem:[#allocation37_spill] sm:$0xff] }
 0x150   : > { %v1744_v55 = vpop.f32.mrf.mxu1  ;;  %5137 = vmatmul.mubr.f32.gmra.mxu0 %v7861_v63 }
 0x151   : > { %7860 = vst [vmem:[#allocation54_spill] sm:$0xff] %v6633_v6  ;;  %v6637_v58 = vadd.f32 %v1744_v55, %v1234_v48  ;;  %5139 = vmatprep.mubr.f32.mxu0 %v7863_v7  ;;  %v1254_v17 = vpop.f32.mrf.mxu0  ;;  %v7867_v6 = vld [vmem:[#allocation39_spill] sm:$0xff] }
 0x152   : > { %v4868_v56 = vpop.f32.mrf.mxu1  ;;  %5243 = vmatmul.mubr.f32.gmra.mxu1 %v7861_v63 }
 0x153   : > { %7862 = vst [vmem:[#allocation56_spill] sm:$0xff] %v6637_v58  ;;  %v6641_v12 = vadd.f32 %v4868_v56, %v4762_v33  ;;  %5245 = vmatprep.mubr.f32.mxu1 %v7863_v7  ;;  %v4765_v32 = vpop.f32.mrf.mxu0  ;;  %v7869_v56 = vld [vmem:[#allocation41_spill] sm:$0xff] }
 0x154   : > { %v1756_v19 = vpop.f32.mrf.mxu1  ;;  %5140 = vmatmul.mubr.f32.gmra.mxu0 %v7865_v53 }
 0x155   : > { %7864 = vst [vmem:[#allocation58_spill] sm:$0xff] %v6641_v12  ;;  %v6645_v57 = vadd.f32 %v1756_v19, %v1254_v17  ;;  %5142 = vmatprep.mubr.f32.mxu0 %v7867_v6  ;;  %v1274_v48 = vpop.f32.mrf.mxu0  ;;  %v7871_v12 = vld [vmem:[#allocation43_spill] sm:$0xff] }
 0x156   : > { %v4871_v55 = vpop.f32.mrf.mxu1  ;;  %5246 = vmatmul.mubr.f32.gmra.mxu1 %v7865_v53 }
 0x157   : > { %7866 = vst [vmem:[#allocation60_spill] sm:$0xff] %v6645_v57  ;;  %v6649_v58 = vadd.f32 %v4871_v55, %v4765_v32  ;;  %5248 = vmatprep.mubr.f32.mxu1 %v7867_v6  ;;  %v4768_v33 = vpop.f32.mrf.mxu0  ;;  %v7873_v6 = vld [vmem:[#allocation44_spill] sm:$0xff] }
 0x158   : > { %v1768_v63 = vpop.f32.mrf.mxu1  ;;  %5143 = vmatmul.mubr.f32.gmra.mxu0 %v7869_v56 }
 0x159   : > { %7868 = vst [vmem:[#allocation62_spill] sm:$0xff] %v6649_v58  ;;  %v6653_v7 = vadd.f32 %v1768_v63, %v1274_v48  ;;  %5145 = vmatprep.mubr.f32.mxu0 %v7871_v12  ;;  %v1294_v17 = vpop.f32.mrf.mxu0  ;;  %v7875_v48 = vld [vmem:[#allocation45_spill] sm:$0xff]  ;;  %v5352_v63 = vmov 0.0  }
 0x15a   : > { %v4874_v19 = vpop.f32.mrf.mxu1  ;;  %5249 = vmatmul.mubr.f32.gmra.mxu1 %v7869_v56  ;;  %225 = vst.msk [vmem:[#allocation2 + $0x8] sm:$0xff] %vm223_vm2, %v5352_v63  ;;  %224 = vst.msk [vmem:[#allocation2] sm:$0xff] %vm223_vm2, %v5352_v63 }
 0x15b   : > { %7870 = vst [vmem:[#allocation65_spill] sm:$0xff] %v6653_v7  ;;  %v6657_v57 = vadd.f32 %v4874_v19, %v4768_v33  ;;  %5251 = vmatprep.mubr.f32.mxu1 %v7871_v12  ;;  %v6660_v32 = vpop.f32.mrf.mxu0  ;;  %226 = vst.msk [vmem:[#allocation2 + $0x10] sm:$0xff] %vm223_vm2, %v5352_v63  ;;  %v7879_v7 = vld [vmem:[#allocation51_spill] sm:$0xff] }
 0x15c   : > { %v1780_v53 = vpop.f32.mrf.mxu1  ;;  %5146 = vmatmul.mubr.f32.gmra.mxu0 %v7873_v6  ;;  %227 = vst.msk [vmem:[#allocation2 + $0x18] sm:$0xff] %vm223_vm2, %v5352_v63  ;;  %228 = vst.msk [vmem:[#allocation2 + $0x20] sm:$0xff] %vm223_vm2, %v5352_v63 }
 0x15d   : > { %7872 = vst [vmem:[#allocation67_spill] sm:$0xff] %v6657_v57  ;;  %v6663_v55 = vadd.f32 %v1780_v53, %v1294_v17  ;;  %5148 = vmatprep.mubr.f32.mxu0 %v7875_v48  ;;  %229 = vst.msk [vmem:[#allocation2 + $0x28] sm:$0xff] %vm223_vm2, %v5352_v63  ;;  %v1314_v12 = vpop.f32.mrf.mxu0  ;;  %v7877_v53 = vld [vmem:[#allocation50_spill] sm:$0xff] }
 0x15e   : > { %230 = vst.msk [vmem:[#allocation2 + $0x30] sm:$0xff] %vm223_vm2, %v5352_v63  ;;  %231 = vst.msk [vmem:[#allocation2 + $0x38] sm:$0xff] %vm223_vm2, %v5352_v63  ;;  %v4877_v33 = vpop.f32.mrf.mxu1  ;;  %5252 = vmatmul.mubr.f32.gmra.mxu1 %v7873_v6 }
 0x15f   : > { %7874 = vst [vmem:[#allocation68_spill] sm:$0xff] %v6663_v55  ;;  %232 = vst.msk [vmem:[#allocation2 + $0x40] sm:$0xff] %vm223_vm2, %v5352_v63  ;;  %v6796_v56 = vadd.f32 %v4877_v33, %v6660_v32  ;;  %5254 = vmatprep.mubr.f32.mxu1 %v7875_v48  ;;  %v4890_v19 = vpop.f32.mrf.mxu0 }
 0x160   : > { %233 = vst.msk [vmem:[#allocation2 + $0x48] sm:$0xff] %vm223_vm2, %v5352_v63  ;;  %234 = vst.msk [vmem:[#allocation2 + $0x50] sm:$0xff] %vm223_vm2, %v5352_v63  ;;  %v1792_v17 = vpop.f32.mrf.mxu1  ;;  %5149 = vmatmul.mubr.f32.gmra.mxu0 %v7877_v53  ;;  %v1888_v57 = vadd.f32 %v4890_v19, %v6387_v10  ;;  %v7881_v10 = vld [vmem:[#allocation55_spill] sm:$0xff] }
 0x161   : > { %235 = vst.msk [vmem:[#allocation2 + $0x58] sm:$0xff] %vm223_vm2, %v5352_v63  ;;  %236 = vst.msk [vmem:[#allocation2 + $0x60] sm:$0xff] %vm223_vm2, %v5352_v63  ;;  %v6800_v55 = vadd.f32 %v1792_v17, %v1314_v12  ;;  %5151 = vmatprep.mubr.f32.mxu0 %v7879_v7 }
 0x162   : > { %237 = vst.msk [vmem:[#allocation2 + $0x68] sm:$0xff] %vm223_vm2, %v5352_v63  ;;  %238 = vst.msk [vmem:[#allocation2 + $0x70] sm:$0xff] %vm223_vm2, %v5352_v63  ;;  %v4996_v58 = vpop.f32.mrf.mxu1  ;;  %5255 = vmatmul.mubr.f32.gmra.mxu1 %v7877_v53  ;;  %v7882_v53 = vld [vmem:[#allocation57_spill] sm:$0xff] }
 0x163   : > { %239 = vst.msk [vmem:[#allocation2 + $0x78] sm:$0xff] %vm223_vm2, %v5352_v63  ;;  %240 = vst.msk [vmem:[#allocation2 + $0x80] sm:$0xff] %vm223_vm2, %v5352_v63  ;;  %v6806_v32 = vadd.f32 %v4996_v58, %v1888_v57  ;;  %5257 = vmatprep.mubr.f32.mxu1 %v7879_v7 }
 0x164   : > { %241 = vst.msk [vmem:[#allocation2 + $0x88] sm:$0xff] %vm223_vm2, %v5352_v63  ;;  %242 = vst.msk [vmem:[#allocation2 + $0x90] sm:$0xff] %vm223_vm2, %v5352_v63  ;;  %v2399_v33 = vpop.f32.mrf.mxu1 }
 0x165   : > { %243 = vst.msk [vmem:[#allocation2 + $0x98] sm:$0xff] %vm223_vm2, %v5352_v63  ;;  %244 = vst.msk [vmem:[#allocation2 + $0xa0] sm:$0xff] %vm223_vm2, %v5352_v63 }
 0x166   : > { %245 = vst.msk [vmem:[#allocation2 + $0xa8] sm:$0xff] %vm223_vm2, %v5352_v63  ;;  %246 = vst.msk [vmem:[#allocation2 + $0xb0] sm:$0xff] %vm223_vm2, %v5352_v63 }
 0x167   : > { %247 = vst.msk [vmem:[#allocation2 + $0xb8] sm:$0xff] %vm223_vm2, %v5352_v63  ;;  %248 = vst.msk [vmem:[#allocation2 + $0xc0] sm:$0xff] %vm223_vm2, %v5352_v63 }
 0x168   : > { %249 = vst.msk [vmem:[#allocation2 + $0xc8] sm:$0xff] %vm223_vm2, %v5352_v63  ;;  %250 = vst.msk [vmem:[#allocation2 + $0xd0] sm:$0xff] %vm223_vm2, %v5352_v63 }
 0x169   : > { %251 = vst.msk [vmem:[#allocation2 + $0xd8] sm:$0xff] %vm223_vm2, %v5352_v63  ;;  %252 = vst.msk [vmem:[#allocation2 + $0xe0] sm:$0xff] %vm223_vm2, %v5352_v63 }
 0x16a   : > { %253 = vst.msk [vmem:[#allocation2 + $0xe8] sm:$0xff] %vm223_vm2, %v5352_v63  ;;  %254 = vst.msk [vmem:[#allocation2 + $0xf0] sm:$0xff] %vm223_vm2, %v5352_v63 }
 0x16b   : > { %255 = vst.msk [vmem:[#allocation2 + $0xf8] sm:$0xff] %vm223_vm2, %v5352_v63  ;;  %256 = vst.msk [vmem:[#allocation2 + $0x100] sm:$0xff] %vm223_vm2, %v5352_v63 }
 0x16c   : > { %257 = vst.msk [vmem:[#allocation2 + $0x108] sm:$0xff] %vm223_vm2, %v5352_v63  ;;  %258 = vst.msk [vmem:[#allocation2 + $0x110] sm:$0xff] %vm223_vm2, %v5352_v63 }
 0x16d   : > { %259 = vst.msk [vmem:[#allocation2 + $0x118] sm:$0xff] %vm223_vm2, %v5352_v63  ;;  %260 = vst.msk [vmem:[#allocation2 + $0x120] sm:$0xff] %vm223_vm2, %v5352_v63 }
 0x16e   : > { %261 = vst.msk [vmem:[#allocation2 + $0x128] sm:$0xff] %vm223_vm2, %v5352_v63  ;;  %262 = vst.msk [vmem:[#allocation2 + $0x130] sm:$0xff] %vm223_vm2, %v5352_v63 }
 0x16f   : > { %263 = vst.msk [vmem:[#allocation2 + $0x138] sm:$0xff] %vm223_vm2, %v5352_v63  ;;  %264 = vst.msk [vmem:[#allocation2 + $0x140] sm:$0xff] %vm223_vm2, %v5352_v63 }
 0x170   : > { %265 = vst.msk [vmem:[#allocation2 + $0x148] sm:$0xff] %vm223_vm2, %v5352_v63  ;;  %266 = vst.msk [vmem:[#allocation2 + $0x150] sm:$0xff] %vm223_vm2, %v5352_v63 }
 0x171   : > { %267 = vst.msk [vmem:[#allocation2 + $0x158] sm:$0xff] %vm223_vm2, %v5352_v63  ;;  %268 = vst.msk [vmem:[#allocation2 + $0x160] sm:$0xff] %vm223_vm2, %v5352_v63 }
 0x172   : > { %269 = vst.msk [vmem:[#allocation2 + $0x168] sm:$0xff] %vm223_vm2, %v5352_v63  ;;  %270 = vst.msk [vmem:[#allocation2 + $0x170] sm:$0xff] %vm223_vm2, %v5352_v63 }
 0x173   : > { %271 = vst.msk [vmem:[#allocation2 + $0x178] sm:$0xff] %vm223_vm2, %v5352_v63  ;;  %272 = vst.msk [vmem:[#allocation2 + $0x180] sm:$0xff] %vm223_vm2, %v5352_v63 }
 0x174   : > { %273 = vst.msk [vmem:[#allocation2 + $0x188] sm:$0xff] %vm223_vm2, %v5352_v63  ;;  %274 = vst.msk [vmem:[#allocation2 + $0x190] sm:$0xff] %vm223_vm2, %v5352_v63 }
 0x175   : > { %275 = vst.msk [vmem:[#allocation2 + $0x198] sm:$0xff] %vm223_vm2, %v5352_v63  ;;  %276 = vst.msk [vmem:[#allocation2 + $0x1a0] sm:$0xff] %vm223_vm2, %v5352_v63 }
 0x176   : > { %277 = vst.msk [vmem:[#allocation2 + $0x1a8] sm:$0xff] %vm223_vm2, %v5352_v63  ;;  %278 = vst.msk [vmem:[#allocation2 + $0x1b0] sm:$0xff] %vm223_vm2, %v5352_v63 }
 0x177   : > { %279 = vst.msk [vmem:[#allocation2 + $0x1b8] sm:$0xff] %vm223_vm2, %v5352_v63  ;;  %280 = vst.msk [vmem:[#allocation2 + $0x1c0] sm:$0xff] %vm223_vm2, %v5352_v63 }
 0x178   : > { %281 = vst.msk [vmem:[#allocation2 + $0x1c8] sm:$0xff] %vm223_vm2, %v5352_v63  ;;  %282 = vst.msk [vmem:[#allocation2 + $0x1d0] sm:$0xff] %vm223_vm2, %v5352_v63 }
 0x179   : > { %283 = vst.msk [vmem:[#allocation2 + $0x1d8] sm:$0xff] %vm223_vm2, %v5352_v63  ;;  %284 = vst.msk [vmem:[#allocation2 + $0x1e0] sm:$0xff] %vm223_vm2, %v5352_v63 }
 0x17a   : > { %285 = vst.msk [vmem:[#allocation2 + $0x1e8] sm:$0xff] %vm223_vm2, %v5352_v63  ;;  %286 = vst.msk [vmem:[#allocation2 + $0x1f0] sm:$0xff] %vm223_vm2, %v5352_v63 }
 0x17b   : > { %287 = vst.msk [vmem:[#allocation2 + $0x1f8] sm:$0xff] %vm223_vm2, %v5352_v63  ;;  %7876 = vst [vmem:[#allocation70_spill] sm:$0xff] %v6796_v56  ;;  %v1880_v63 = vpop.f32.mrf.mxu0  ;;  %v7880_v56 = vld [vmem:[#allocation52_spill] sm:$0xff] }
 0x17c   : > { %7878 = vst [vmem:[#allocation72_spill] sm:$0xff] %v6800_v55  ;;  %v1881_v6 = vadd.f32 %v1880_v63, %v6392_v27  ;;  %5152 = vmatmul.mubr.f32.gmra.mxu0 %v7880_v56  ;;  %v4999_v55 = vpop.f32.mrf.mxu1  ;;  %5258 = vmatmul.mubr.f32.gmra.mxu1 %v7880_v56 }
 0x17d   : > { %v4893_v48 = vpop.f32.mrf.mxu0  ;;  %5154 = vmatprep.mubr.f32.mxu0 %v7881_v10  ;;  %5260 = vmatprep.mubr.f32.mxu1 %v7881_v10  ;;  %v7884_v10 = vld [vmem:[#allocation61_spill] sm:$0xff] }
 0x17e   : > { %v1902_v12 = vadd.f32 %v4893_v48, %v6397_v45  ;;  %v6811_v17 = vadd.f32 %v2399_v33, %v1881_v6  ;;  %v2415_v7 = vpop.f32.mrf.mxu1  ;;  %v7883_v6 = vld [vmem:[#allocation59_spill] sm:$0xff] }
 0x17f   : > { %v1894_v19 = vpop.f32.mrf.mxu0 }
 0x180   : > { %v1895_v27 = vadd.f32 %v1894_v19, %v6402_v13  ;;  %v6816_v58 = vadd.f32 %v4999_v55, %v1902_v12  ;;  %5155 = vmatmul.mubr.f32.gmra.mxu0 %v7882_v53  ;;  %v5002_v33 = vpop.f32.mrf.mxu1  ;;  %5261 = vmatmul.mubr.f32.gmra.mxu1 %v7882_v53 }
 0x181   : > { %v4896_v57 = vpop.f32.mrf.mxu0  ;;  %5157 = vmatprep.mubr.f32.mxu0 %v7883_v6  ;;  %5263 = vmatprep.mubr.f32.mxu1 %v7883_v6 }
 0x182   : > { %v1916_v45 = vadd.f32 %v4896_v57, %v6407_v2  ;;  %v6821_v63 = vadd.f32 %v2415_v7, %v1895_v27  ;;  %v2431_v12 = vpop.f32.mrf.mxu1  ;;  %v7885_v27 = vld [vmem:[#allocation63_spill] sm:$0xff] }
 0x183   : > { %v1908_v48 = vpop.f32.mrf.mxu0 }
 0x184   : > { %v1909_v13 = vadd.f32 %v1908_v48, %v6412_v61  ;;  %v6826_v55 = vadd.f32 %v5002_v33, %v1916_v45  ;;  %5158 = vmatmul.mubr.f32.gmra.mxu0 %v7884_v10  ;;  %v5005_v7 = vpop.f32.mrf.mxu1  ;;  %5264 = vmatmul.mubr.f32.gmra.mxu1 %v7884_v10  ;;  %v7886_v48 = vld [vmem:[#allocation64_spill] sm:$0xff] }
 0x185   : > { %v4899_v56 = vpop.f32.mrf.mxu0  ;;  %5160 = vmatprep.mubr.f32.mxu0 %v7885_v27  ;;  %5266 = vmatprep.mubr.f32.mxu1 %v7885_v27 }
 0x186   : > { %v1930_v2 = vadd.f32 %v4899_v56, %v6417_v4  ;;  %v6831_v19 = vadd.f32 %v2431_v12, %v1909_v13  ;;  %v2447_v6 = vpop.f32.mrf.mxu1  ;;  %v7887_v13 = vld [vmem:[#allocation66_spill] sm:$0xff] }
 0x187   : > { %v1922_v57 = vpop.f32.mrf.mxu0 }
 0x188   : > { %v1923_v61 = vadd.f32 %v1922_v57, %v6422_v42  ;;  %v6836_v53 = vadd.f32 %v5005_v7, %v1930_v2  ;;  %5161 = vmatmul.mubr.f32.gmra.mxu0 %v7886_v48  ;;  %v5008_v12 = vpop.f32.mrf.mxu1  ;;  %5267 = vmatmul.mubr.f32.gmra.mxu1 %v7886_v48  ;;  %v7888_v57 = vld [vmem:[#allocation69_spill] sm:$0xff] }
 0x189   : > { %v4902_v45 = vpop.f32.mrf.mxu0  ;;  %5163 = vmatprep.mubr.f32.mxu0 %v7887_v13  ;;  %5269 = vmatprep.mubr.f32.mxu1 %v7887_v13 }
 0x18a   : > { %v1944_v4 = vadd.f32 %v4902_v45, %v6427_v0  ;;  %v6841_v33 = vadd.f32 %v2447_v6, %v1923_v61  ;;  %v2463_v27 = vpop.f32.mrf.mxu1  ;;  %v7889_v61 = vld [vmem:[#allocation71_spill] sm:$0xff] }
 0x18b   : > { %v1936_v56 = vpop.f32.mrf.mxu0 }
 0x18c   : > { %v1937_v42 = vadd.f32 %v1936_v56, %v6432_v59  ;;  %v6846_v10 = vadd.f32 %v5008_v12, %v1944_v4  ;;  %5164 = vmatmul.mubr.f32.gmra.mxu0 %v7888_v57  ;;  %v5011_v6 = vpop.f32.mrf.mxu1  ;;  %5270 = vmatmul.mubr.f32.gmra.mxu1 %v7888_v57  ;;  %v7890_v56 = vld [vmem:[#allocation73_spill] sm:$0xff] }
 0x18d   : > { %v4905_v2 = vpop.f32.mrf.mxu0  ;;  %5166 = vmatprep.mubr.f32.mxu0 %v7889_v61  ;;  %5272 = vmatprep.mubr.f32.mxu1 %v7889_v61 }
 0x18e   : > { %v1958_v0 = vadd.f32 %v4905_v2, %v6437_v40  ;;  %v6851_v7 = vadd.f32 %v2463_v27, %v1937_v42  ;;  %v2479_v13 = vpop.f32.mrf.mxu1  ;;  %v7891_v42 = vld [vmem:[#allocation74_spill] sm:$0xff] }
 0x18f   : > { %v1950_v45 = vpop.f32.mrf.mxu0 }
 0x190   : > { %v1951_v59 = vadd.f32 %v1950_v45, %v6442_v21  ;;  %v6856_v48 = vadd.f32 %v5011_v6, %v1958_v0  ;;  %5167 = vmatmul.mubr.f32.gmra.mxu0 %v7890_v56  ;;  %v5014_v27 = vpop.f32.mrf.mxu1  ;;  %5273 = vmatmul.mubr.f32.gmra.mxu1 %v7890_v56  ;;  %v7892_v45 = vld [vmem:[#allocation78_spill] sm:$0xff] }
 0x191   : > { %v4908_v4 = vpop.f32.mrf.mxu0  ;;  %5169 = vmatprep.mubr.f32.mxu0 %v7891_v42  ;;  %5275 = vmatprep.mubr.f32.mxu1 %v7891_v42 }
 0x192   : > { %v1972_v40 = vadd.f32 %v4908_v4, %v6447_v8  ;;  %v6861_v12 = vadd.f32 %v2479_v13, %v1951_v59  ;;  %v2495_v61 = vpop.f32.mrf.mxu1  ;;  %v7893_v59 = vld [vmem:[#allocation79_spill] sm:$0xff] }
 0x193   : > { %v1964_v2 = vpop.f32.mrf.mxu0 }
 0x194   : > { %v1965_v21 = vadd.f32 %v1964_v2, %v6452_v9  ;;  %v6866_v57 = vadd.f32 %v5014_v27, %v1972_v40  ;;  %5170 = vmatmul.mubr.f32.gmra.mxu0 %v7892_v45  ;;  %v5017_v13 = vpop.f32.mrf.mxu1  ;;  %5276 = vmatmul.mubr.f32.gmra.mxu1 %v7892_v45  ;;  %v7894_v2 = vld [vmem:[#allocation81_spill] sm:$0xff] }
 0x195   : > { %v4911_v0 = vpop.f32.mrf.mxu0  ;;  %5172 = vmatprep.mubr.f32.mxu0 %v7893_v59  ;;  %5278 = vmatprep.mubr.f32.mxu1 %v7893_v59 }
 0x196   : > { %v1986_v8 = vadd.f32 %v4911_v0, %v6457_v26  ;;  %v6871_v6 = vadd.f32 %v2495_v61, %v1965_v21  ;;  %v2511_v42 = vpop.f32.mrf.mxu1  ;;  %v7895_v21 = vld [vmem:[#allocation83_spill] sm:$0xff] }
 0x197   : > { %v1978_v4 = vpop.f32.mrf.mxu0 }
 0x198   : > { %v1979_v9 = vadd.f32 %v1978_v4, %v6462_v22  ;;  %v6876_v56 = vadd.f32 %v5017_v13, %v1986_v8  ;;  %5173 = vmatmul.mubr.f32.gmra.mxu0 %v7894_v2  ;;  %v5020_v61 = vpop.f32.mrf.mxu1  ;;  %5279 = vmatmul.mubr.f32.gmra.mxu1 %v7894_v2  ;;  %v7896_v4 = vld [vmem:[#allocation84_spill] sm:$0xff] }
 0x199   : > { %v4914_v40 = vpop.f32.mrf.mxu0  ;;  %5175 = vmatprep.mubr.f32.mxu0 %v7895_v21  ;;  %5281 = vmatprep.mubr.f32.mxu1 %v7895_v21  ;;  %v7897_v21 = vld [vmem:[#allocation86_spill] sm:$0xff] }
 0x19a   : > { %v2000_v26 = vadd.f32 %v4914_v40, %v6467_v30  ;;  %v6881_v27 = vadd.f32 %v2511_v42, %v1979_v9  ;;  %v2527_v59 = vpop.f32.mrf.mxu1 }
 0x19b   : > { %v1992_v0 = vpop.f32.mrf.mxu0 }
 0x19c   : > { %v1993_v22 = vadd.f32 %v1992_v0, %v6472_v18  ;;  %v6886_v45 = vadd.f32 %v5020_v61, %v2000_v26  ;;  %5176 = vmatmul.mubr.f32.gmra.mxu0 %v7896_v4  ;;  %v5023_v40 = vpop.f32.mrf.mxu1  ;;  %5282 = vmatmul.mubr.f32.gmra.mxu1 %v7896_v4 }
 0x19d   : > { %v4917_v8 = vpop.f32.mrf.mxu0  ;;  %5178 = vmatprep.mubr.f32.mxu0 %v6096_v15  ;;  %5284 = vmatprep.mubr.f32.mxu1 %v6096_v15 }
 0x19e   : > { %v2014_v30 = vadd.f32 %v4917_v8, %v6477_v49  ;;  %v6891_v13 = vadd.f32 %v2527_v59, %v1993_v22  ;;  %v2543_v26 = vpop.f32.mrf.mxu1 }
 0x19f   : > { %v2006_v9 = vpop.f32.mrf.mxu0 }
 0x1a0   : > { %v2007_v18 = vadd.f32 %v2006_v9, %v6482_v62  ;;  %v6896_v42 = vadd.f32 %v5023_v40, %v2014_v30  ;;  %5179 = vmatmul.mubr.f32.gmra.mxu0 %v7897_v21  ;;  %v5026_v22 = vpop.f32.mrf.mxu1  ;;  %5285 = vmatmul.mubr.f32.gmra.mxu1 %v7897_v21 }
 0x1a1   : > { %v4920_v2 = vpop.f32.mrf.mxu0  ;;  %5181 = vmatprep.mubr.f32.mxu0 %v6104_v60  ;;  %5287 = vmatprep.mubr.f32.mxu1 %v6104_v60 }
 0x1a2   : > { %v2028_v49 = vadd.f32 %v4920_v2, %v6487_v29  ;;  %v6901_v0 = vadd.f32 %v2543_v26, %v2007_v18  ;;  %v2559_v59 = vpop.f32.mrf.mxu1 }
 0x1a3   : > { %v2020_v61 = vpop.f32.mrf.mxu0 }
 0x1a4   : > { %v2021_v62 = vadd.f32 %v2020_v61, %v6492_v14  ;;  %v6906_v8 = vadd.f32 %v5026_v22, %v2028_v49  ;;  %5182 = vmatmul.mubr.f32.gmra.mxu0 %v6131_v1  ;;  %v5029_v9 = vpop.f32.mrf.mxu1  ;;  %5288 = vmatmul.mubr.f32.gmra.mxu1 %v6131_v1 }
 0x1a5   : > { %v4923_v15 = vpop.f32.mrf.mxu0  ;;  %5184 = vmatprep.mubr.f32.mxu0 %v6138_v39  ;;  %5290 = vmatprep.mubr.f32.mxu1 %v6138_v39 }
 0x1a6   : > { %v2042_v29 = vadd.f32 %v4923_v15, %v6497_v41  ;;  %v6911_v4 = vadd.f32 %v2559_v59, %v2021_v62  ;;  %v2575_v18 = vpop.f32.mrf.mxu1 }
 0x1a7   : > { %v2034_v30 = vpop.f32.mrf.mxu0 }
 0x1a8   : > { %v2035_v14 = vadd.f32 %v2034_v30, %v6502_v5  ;;  %v6916_v40 = vadd.f32 %v5029_v9, %v2042_v29  ;;  %5185 = vmatmul.mubr.f32.gmra.mxu0 %v6161_v51  ;;  %v5032_v21 = vpop.f32.mrf.mxu1  ;;  %5291 = vmatmul.mubr.f32.gmra.mxu1 %v6161_v51 }
 0x1a9   : > { %v4926_v60 = vpop.f32.mrf.mxu0  ;;  %5187 = vmatprep.mubr.f32.mxu0 %v6166_v46  ;;  %5293 = vmatprep.mubr.f32.mxu1 %v6166_v46 }
 0x1aa   : > { %v2056_v41 = vadd.f32 %v4926_v60, %v6507_v3  ;;  %v6921_v2 = vadd.f32 %v2575_v18, %v2035_v14  ;;  %v2591_v49 = vpop.f32.mrf.mxu1 }
 0x1ab   : > { %v2048_v26 = vpop.f32.mrf.mxu0 }
 0x1ac   : > { %v2049_v1 = vadd.f32 %v2048_v26, %v6512_v37  ;;  %v6926_v5 = vadd.f32 %v5032_v21, %v2056_v41  ;;  %5188 = vmatmul.mubr.f32.gmra.mxu0 %v6185_v54  ;;  %v5035_v62 = vpop.f32.mrf.mxu1  ;;  %5294 = vmatmul.mubr.f32.gmra.mxu1 %v6185_v54 }
 0x1ad   : > { %v4929_v39 = vpop.f32.mrf.mxu0  ;;  %5190 = vmatprep.mubr.f32.mxu0 %v6190_v11  ;;  %5296 = vmatprep.mubr.f32.mxu1 %v6190_v11 }
 0x1ae   : > { %v2070_v3 = vadd.f32 %v4929_v39, %v6517_v24  ;;  %v6931_v61 = vadd.f32 %v2591_v49, %v2049_v1  ;;  %v2607_v15 = vpop.f32.mrf.mxu1 }
 0x1af   : > { %v2062_v22 = vpop.f32.mrf.mxu0 }
 0x1b0   : > { %v2063_v51 = vadd.f32 %v2062_v22, %v6522_v31  ;;  %v6936_v37 = vadd.f32 %v5035_v62, %v2070_v3  ;;  %5191 = vmatmul.mubr.f32.gmra.mxu0 %v6207_v25  ;;  %v5038_v30 = vpop.f32.mrf.mxu1  ;;  %5297 = vmatmul.mubr.f32.gmra.mxu1 %v6207_v25 }
 0x1b1   : > { %v4932_v46 = vpop.f32.mrf.mxu0  ;;  %5193 = vmatprep.mubr.f32.mxu0 %v6213_v47  ;;  %5299 = vmatprep.mubr.f32.mxu1 %v6213_v47 }
 0x1b2   : > { %v2084_v24 = vadd.f32 %v4932_v46, %v6527_v35  ;;  %v6941_v59 = vadd.f32 %v2607_v15, %v2063_v51  ;;  %v2623_v9 = vpop.f32.mrf.mxu1 }
 0x1b3   : > { %v2076_v29 = vpop.f32.mrf.mxu0 }
 0x1b4   : > { %v2077_v54 = vadd.f32 %v2076_v29, %v6532_v16  ;;  %v6946_v31 = vadd.f32 %v5038_v30, %v2084_v24  ;;  %5194 = vmatmul.mubr.f32.gmra.mxu0 %v6225_v52  ;;  %v5041_v18 = vpop.f32.mrf.mxu1  ;;  %5300 = vmatmul.mubr.f32.gmra.mxu1 %v6225_v52 }
 0x1b5   : > { %v4935_v11 = vpop.f32.mrf.mxu0 }
 0x1b6   : > { %v2098_v35 = vadd.f32 %v4935_v11, %v6537_v38  ;;  %v6951_v14 = vadd.f32 %v2623_v9, %v2077_v54  ;;  %v2639_v26 = vpop.f32.mrf.mxu1 }
 0x1b7   : > { %v2090_v60 = vpop.f32.mrf.mxu0 }
 0x1b8   : > { %v2091_v25 = vadd.f32 %v2090_v60, %v6541_v20  ;;  %v6955_v41 = vadd.f32 %v5041_v18, %v2098_v35  ;;  %v5044_v39 = vpop.f32.mrf.mxu1 }
 0x1b9   : > { %v4938_v16 = vpop.f32.mrf.mxu0 }
 0x1ba   : > { %v2112_v47 = vadd.f32 %v4938_v16, %v6545_v23  ;;  %v6958_v21 = vadd.f32 %v2639_v26, %v2091_v25  ;;  %v2655_v22 = vpop.f32.mrf.mxu1  ;;  %v7898_v16 = vld [vmem:[#allocation25_spill] sm:$0xff] }
 0x1bb   : > { %v2104_v1 = vpop.f32.mrf.mxu0 }
 0x1bc   : > { %v2105_v38 = vadd.f32 %v2104_v1, %v6549_v36  ;;  %v6961_v49 = vadd.f32 %v5044_v39, %v2112_v47  ;;  %v5047_v51 = vpop.f32.mrf.mxu1  ;;  %v7899_v39 = vld [vmem:[#allocation26_spill] sm:$0xff] }
 0x1bd   : > { %v4941_v3 = vpop.f32.mrf.mxu0 }
 0x1be   : > { %v2126_v52 = vadd.f32 %v4941_v3, %v6553_v44  ;;  %v6964_v62 = vadd.f32 %v2655_v22, %v2105_v38  ;;  %v2671_v24 = vpop.f32.mrf.mxu1 }
 0x1bf   : > { %v2118_v20 = vpop.f32.mrf.mxu0 }
 0x1c0   : > { %v2119_v46 = vadd.f32 %v2118_v20, %v6557_v43  ;;  %v6967_v15 = vadd.f32 %v5047_v51, %v2126_v52  ;;  %v5050_v54 = vpop.f32.mrf.mxu1  ;;  %v7900_v52 = vld [vmem:[#allocation28_spill] sm:$0xff] }
 0x1c1   : > { %v4944_v23 = vpop.f32.mrf.mxu0 }
 0x1c2   : > { %v2140_v29 = vadd.f32 %v4944_v23, %v6561_v34  ;;  %v6970_v30 = vadd.f32 %v2671_v24, %v2119_v46  ;;  %v2687_v35 = vpop.f32.mrf.mxu1  ;;  %v7901_v23 = vld [vmem:[#allocation31_spill] sm:$0xff] }
 0x1c3   : > { %v2132_v36 = vpop.f32.mrf.mxu0 }
 0x1c4   : > { %v2133_v11 = vadd.f32 %v2132_v36, %v6565_v28  ;;  %v6973_v9 = vadd.f32 %v5050_v54, %v2140_v29  ;;  %v5053_v25 = vpop.f32.mrf.mxu1 }
 0x1c5   : > { %v4947_v44 = vpop.f32.mrf.mxu0 }
 0x1c6   : > { %v2154_v60 = vadd.f32 %v4947_v44, %v6569_v50  ;;  %v6976_v18 = vadd.f32 %v2687_v35, %v2133_v11  ;;  %v2703_v1 = vpop.f32.mrf.mxu1  ;;  %v7902_v11 = vld [vmem:[#allocation32_spill] sm:$0xff] }
 0x1c7   : > { %v2146_v43 = vpop.f32.mrf.mxu0 }
 0x1c8   : > { %v2147_v26 = vadd.f32 %v2146_v43, %v7898_v16  ;;  %v6979_v47 = vadd.f32 %v5053_v25, %v2154_v60  ;;  %v5056_v22 = vpop.f32.mrf.mxu1  ;;  %v7903_v25 = vld [vmem:[#allocation33_spill] sm:$0xff] }
 0x1c9   : > { %v4950_v34 = vpop.f32.mrf.mxu0 }
 0x1ca   : > { %v2168_v38 = vadd.f32 %v4950_v34, %v7899_v39  ;;  %v6982_v3 = vadd.f32 %v2703_v1, %v2147_v26  ;;  %v2719_v46 = vpop.f32.mrf.mxu1  ;;  %v7905_v39 = vld [vmem:[#allocation36_spill] sm:$0xff] }
 0x1cb   : > { %v2160_v28 = vpop.f32.mrf.mxu0 }
 0x1cc   : > { %v2161_v20 = vadd.f32 %v2160_v28, %v7900_v52  ;;  %v6985_v51 = vadd.f32 %v5056_v22, %v2168_v38  ;;  %v5059_v54 = vpop.f32.mrf.mxu1 }
 0x1cd   : > { %v4953_v50 = vpop.f32.mrf.mxu0 }
 0x1ce   : > { %v2182_v24 = vadd.f32 %v4953_v50, %v7901_v23  ;;  %v6988_v29 = vadd.f32 %v2719_v46, %v2161_v20  ;;  %v2735_v43 = vpop.f32.mrf.mxu1  ;;  %v7907_v20 = vld [vmem:[#allocation38_spill] sm:$0xff] }
 0x1cf   : > { %v2174_v36 = vpop.f32.mrf.mxu0 }
 0x1d0   : > { %v2175_v44 = vadd.f32 %v2174_v36, %v7902_v11  ;;  %v6991_v35 = vadd.f32 %v5059_v54, %v2182_v24  ;;  %v5062_v1 = vpop.f32.mrf.mxu1  ;;  %v7909_v36 = vld [vmem:[#allocation40_spill] sm:$0xff] }
 0x1d1   : > { %v4956_v60 = vpop.f32.mrf.mxu0 }
 0x1d2   : > { %v2196_v16 = vadd.f32 %v4956_v60, %v7903_v25  ;;  %v6994_v26 = vadd.f32 %v2735_v43, %v2175_v44  ;;  %v2751_v52 = vpop.f32.mrf.mxu1  ;;  %v7911_v43 = vld [vmem:[#allocation42_spill] sm:$0xff] }
 0x1d3   : > { %v2188_v34 = vpop.f32.mrf.mxu0 }
 0x1d4   : > { %7904 = vst [vmem:[#allocation75_spill] sm:$0xff] %v6994_v26  ;;  %v2189_v38 = vadd.f32 %v2188_v34, %v7905_v39  ;;  %v6997_v28 = vadd.f32 %v5062_v1, %v2196_v16  ;;  %v5065_v24 = vpop.f32.mrf.mxu1  ;;  %v7913_v1 = vld [vmem:[#allocation46_spill] sm:$0xff] }
 0x1d5   : > { %v4959_v22 = vpop.f32.mrf.mxu0 }
 0x1d6   : > { %7906 = vst [vmem:[#allocation76_spill] sm:$0xff] %v6997_v28  ;;  %v2210_v50 = vadd.f32 %v4959_v22, %v7907_v20  ;;  %v7000_v46 = vadd.f32 %v2751_v52, %v2189_v38  ;;  %v2767_v60 = vpop.f32.mrf.mxu1  ;;  %v7915_v52 = vld [vmem:[#allocation47_spill] sm:$0xff] }
 0x1d7   : > { %v2202_v23 = vpop.f32.mrf.mxu0 }
 0x1d8   : > { %7908 = vst [vmem:[#allocation77_spill] sm:$0xff] %v7000_v46  ;;  %v2203_v54 = vadd.f32 %v2202_v23, %v7909_v36  ;;  %v7003_v11 = vadd.f32 %v5065_v24, %v2210_v50  ;;  %v5068_v34 = vpop.f32.mrf.mxu1  ;;  %v7917_v24 = vld [vmem:[#allocation48_spill] sm:$0xff] }
 0x1d9   : > { %v4962_v44 = vpop.f32.mrf.mxu0 }
 0x1da   : > { %7910 = vst [vmem:[#allocation80_spill] sm:$0xff] %v7003_v11  ;;  %v2224_v25 = vadd.f32 %v4962_v44, %v7911_v43  ;;  %v7006_v26 = vadd.f32 %v2767_v60, %v2203_v54  ;;  %v2783_v22 = vpop.f32.mrf.mxu1  ;;  %v7919_v60 = vld [vmem:[#allocation49_spill] sm:$0xff] }
 0x1db   : > { %v2216_v16 = vpop.f32.mrf.mxu0 }
 0x1dc   : > { %7912 = vst [vmem:[#allocation82_spill] sm:$0xff] %v7006_v26  ;;  %v2217_v39 = vadd.f32 %v2216_v16, %v7913_v1  ;;  %v7009_v28 = vadd.f32 %v5068_v34, %v2224_v25  ;;  %v5071_v23 = vpop.f32.mrf.mxu1  ;;  %v7921_v34 = vld [vmem:[#allocation53_spill] sm:$0xff] }
 0x1dd   : > { %v4965_v38 = vpop.f32.mrf.mxu0 }
 0x1de   : > { %7914 = vst [vmem:[#allocation85_spill] sm:$0xff] %v7009_v28  ;;  %v2238_v20 = vadd.f32 %v4965_v38, %v7915_v52  ;;  %v7012_v46 = vadd.f32 %v2783_v22, %v2217_v39  ;;  %v2799_v44 = vpop.f32.mrf.mxu1  ;;  %v7923_v22 = vld [vmem:[#allocation54_spill] sm:$0xff] }
 0x1df   : > { %v2230_v50 = vpop.f32.mrf.mxu0 }
 0x1e0   : > { %7916 = vst [vmem:[#allocation87_spill] sm:$0xff] %v7012_v46  ;;  %v2231_v36 = vadd.f32 %v2230_v50, %v7917_v24  ;;  %v7015_v11 = vadd.f32 %v5071_v23, %v2238_v20  ;;  %v5074_v16 = vpop.f32.mrf.mxu1  ;;  %v7925_v23 = vld [vmem:[#allocation56_spill] sm:$0xff] }
 0x1e1   : > { %v4968_v54 = vpop.f32.mrf.mxu0 }
 0x1e2   : > { %7918 = vst [vmem:[#allocation88_spill] sm:$0xff] %v7015_v11  ;;  %v2252_v43 = vadd.f32 %v4968_v54, %v7919_v60  ;;  %v7018_v26 = vadd.f32 %v2799_v44, %v2231_v36  ;;  %v2815_v38 = vpop.f32.mrf.mxu1  ;;  %v7927_v44 = vld [vmem:[#allocation58_spill] sm:$0xff] }
 0x1e3   : > { %v2244_v25 = vpop.f32.mrf.mxu0 }
 0x1e4   : > { %7920 = vst [vmem:[#allocation89_spill] sm:$0xff] %v7018_v26  ;;  %v2245_v1 = vadd.f32 %v2244_v25, %v7921_v34  ;;  %v7021_v28 = vadd.f32 %v5074_v16, %v2252_v43  ;;  %v5077_v50 = vpop.f32.mrf.mxu1  ;;  %v7929_v16 = vld [vmem:[#allocation60_spill] sm:$0xff] }
 0x1e5   : > { %v4971_v39 = vpop.f32.mrf.mxu0 }
 0x1e6   : > { %7922 = vst [vmem:[#allocation3_spill] sm:$0xff] %v7021_v28  ;;  %v2266_v52 = vadd.f32 %v4971_v39, %v7923_v22  ;;  %v7024_v46 = vadd.f32 %v2815_v38, %v2245_v1  ;;  %v2831_v54 = vpop.f32.mrf.mxu1  ;;  %v7931_v38 = vld [vmem:[#allocation62_spill] sm:$0xff] }
 0x1e7   : > { %v2258_v20 = vpop.f32.mrf.mxu0 }
 0x1e8   : > { %7924 = vst [vmem:[#allocation4_spill] sm:$0xff] %v7024_v46  ;;  %v2259_v24 = vadd.f32 %v2258_v20, %v7925_v23  ;;  %v7027_v11 = vadd.f32 %v5077_v50, %v2266_v52  ;;  %v5080_v25 = vpop.f32.mrf.mxu1  ;;  %v7933_v50 = vld [vmem:[#allocation65_spill] sm:$0xff] }
 0x1e9   : > { %v4974_v36 = vpop.f32.mrf.mxu0 }
 0x1ea   : > { %7926 = vst [vmem:[#allocation5_spill] sm:$0xff] %v7027_v11  ;;  %v2280_v60 = vadd.f32 %v4974_v36, %v7927_v44  ;;  %v7030_v26 = vadd.f32 %v2831_v54, %v2259_v24  ;;  %v2847_v39 = vpop.f32.mrf.mxu1  ;;  %v7935_v54 = vld [vmem:[#allocation67_spill] sm:$0xff] }
 0x1eb   : > { %v2272_v43 = vpop.f32.mrf.mxu0 }
 0x1ec   : > { %7928 = vst [vmem:[#allocation6_spill] sm:$0xff] %v7030_v26  ;;  %v2273_v34 = vadd.f32 %v2272_v43, %v7929_v16  ;;  %v7033_v28 = vadd.f32 %v5080_v25, %v2280_v60  ;;  %v5083_v20 = vpop.f32.mrf.mxu1  ;;  %v7936_v25 = vld [vmem:[#allocation68_spill] sm:$0xff] }
 0x1ed   : > { %v4977_v1 = vpop.f32.mrf.mxu0 }
 0x1ee   : > { %7930 = vst [vmem:[#allocation7_spill] sm:$0xff] %v7033_v28  ;;  %v2294_v22 = vadd.f32 %v4977_v1, %v7931_v38  ;;  %v7036_v46 = vadd.f32 %v2847_v39, %v2273_v34  ;;  %v2863_v36 = vpop.f32.mrf.mxu1  ;;  %v7937_v39 = vld [vmem:[#allocation70_spill] sm:$0xff] }
 0x1ef   : > { %v2286_v52 = vpop.f32.mrf.mxu0 }
 0x1f0   : > { %7932 = vst [vmem:[#allocation8_spill] sm:$0xff] %v7036_v46  ;;  %v2287_v23 = vadd.f32 %v2286_v52, %v7933_v50  ;;  %v7039_v11 = vadd.f32 %v5083_v20, %v2294_v22  ;;  %v5086_v43 = vpop.f32.mrf.mxu1  ;;  %v7939_v20 = vld [vmem:[#allocation72_spill] sm:$0xff] }
 0x1f1   : > { %v4980_v24 = vpop.f32.mrf.mxu0 }
 0x1f2   : > { %7934 = vst [vmem:[#allocation9_spill] sm:$0xff] %v7039_v11  ;;  %v2308_v44 = vadd.f32 %v4980_v24, %v7935_v54  ;;  %v7042_v26 = vadd.f32 %v2863_v36, %v2287_v23  ;;  %v2879_v1 = vpop.f32.mrf.mxu1 }
 0x1f3   : > { %v2300_v60 = vpop.f32.mrf.mxu0 }
 0x1f4   : > { %v2301_v16 = vadd.f32 %v2300_v60, %v7936_v25  ;;  %v7045_v28 = vadd.f32 %v5086_v43, %v2308_v44  ;;  %v5089_v52 = vpop.f32.mrf.mxu1  ;;  %v289_v60 = vld [vmem:[#allocation2 + $0x8] sm:$0xff] }
 0x1f5   : > { %v4983_v34 = vpop.f32.mrf.mxu0 }
 0x1f6   : > { %v2322_v38 = vadd.f32 %v4983_v34, %v7937_v39  ;;  %v7048_v46 = vadd.f32 %v2879_v1, %v2301_v16  ;;  %v2895_v23 = vpop.f32.mrf.mxu1  ;;  %v288_v1 = vld [vmem:[#allocation2] sm:$0xff] }
 0x1f7   : > { %v2314_v22 = vpop.f32.mrf.mxu0 }
 0x1f8   : > { %7938 = vst [vmem:[#allocation10_spill] sm:$0xff] %v7048_v46  ;;  %v2315_v50 = vadd.f32 %v2314_v22, %v7939_v20  ;;  %v7051_v11 = vadd.f32 %v5089_v52, %v2322_v38  ;;  %v5208_v43 = vpop.f32.mrf.mxu1  ;;  %v291_v20 = vld [vmem:[#allocation2 + $0x18] sm:$0xff] }
 0x1f9   : > { %v5102_v24 = vpop.f32.mrf.mxu0 }
 0x1fa   : > { %7940 = vst [vmem:[#allocation11_spill] sm:$0xff] %v7051_v11  ;;  %v7053_v36 = vadd.f32 %v2895_v23, %v2315_v50  ;;  %v2996_v54 = vadd.f32 %v5102_v24, %v6806_v32  ;;  %v3443_v39 = vpop.f32.mrf.mxu1 }
 0x1fb   : > { %v2989_v44 = vpop.f32.mrf.mxu0 }
 0x1fc   : > { %7941 = vst [vmem:[#allocation12_spill] sm:$0xff] %v7053_v36  ;;  %v2990_v25 = vadd.f32 %v2989_v44, %v6811_v17  ;;  %v3450_v34 = vadd.f32 %v5208_v43, %v2996_v54  ;;  %v5211_v11 = vpop.f32.mrf.mxu1  ;;  %v290_v36 = vld [vmem:[#allocation2 + $0x10] sm:$0xff]  ;;  %v293_v43 = vld [vmem:[#allocation2 + $0x28] sm:$0xff] }
 0x1fd   : > { %v5105_v16 = vpop.f32.mrf.mxu0 }
 0x1fe   : > { %v3826_v46 = vadd.f32 %v3450_v34, %v289_v60  ;;  %v3008_v22 = vadd.f32 %v5105_v16, %v6816_v58  ;;  %v3444_v38 = vadd.f32 %v3443_v39, %v2990_v25  ;;  %v3455_v17 = vpop.f32.mrf.mxu1 }
 0x1ff   : > { %v3001_v52 = vpop.f32.mrf.mxu0 }
 0x200   : > { %3891 = vst.msk [vmem:[#allocation2 + $0x8] sm:$0xff] %vm223_vm2, %v3826_v46  ;;  %v3825_v50 = vadd.f32 %v3444_v38, %v288_v1  ;;  %v3002_v32 = vadd.f32 %v3001_v52, %v6821_v63  ;;  %v3462_v23 = vadd.f32 %v5211_v11, %v3008_v22  ;;  %v5214_v25 = vpop.f32.mrf.mxu1  ;;  %v7067_v11 = vld [vmem:[%s7403_s2] ss:$0 sm:$0xff]  ;;  %v295_v52 = vld [vmem:[#allocation2 + $0x38] sm:$0xff] }
 0x201   : > { %v5108_v24 = vpop.f32.mrf.mxu0  ;;  %v292_v1 = vld [vmem:[#allocation2 + $0x20] sm:$0xff] }
 0x202   : > { %3890 = vst.msk [vmem:[#allocation2] sm:$0xff] %vm223_vm2, %v3825_v50  ;;  %v3828_v54 = vadd.f32 %v3462_v23, %v291_v20  ;;  %v3020_v44 = vadd.f32 %v5108_v24, %v6826_v55  ;;  %v3456_v60 = vadd.f32 %v3455_v17, %v3002_v32  ;;  %v3467_v39 = vpop.f32.mrf.mxu1 }
 0x203   : > { %v3013_v58 = vpop.f32.mrf.mxu0 }
 0x204   : > { %3893 = vst.msk [vmem:[#allocation2 + $0x18] sm:$0xff] %vm223_vm2, %v3828_v54  ;;  %v3827_v46 = vadd.f32 %v3456_v60, %v290_v36  ;;  %v3014_v34 = vadd.f32 %v3013_v58, %v6831_v19  ;;  %v3474_v63 = vadd.f32 %v5214_v25, %v3020_v44  ;;  %v5217_v20 = vpop.f32.mrf.mxu1  ;;  %v294_v54 = vld [vmem:[#allocation2 + $0x30] sm:$0xff] }
 0x205   : > { %v5111_v16 = vpop.f32.mrf.mxu0 }
 0x206   : > { %3892 = vst.msk [vmem:[#allocation2 + $0x10] sm:$0xff] %vm223_vm2, %v3827_v46  ;;  %v3830_v55 = vadd.f32 %v3474_v63, %v293_v43  ;;  %v3032_v22 = vadd.f32 %v5111_v16, %v6836_v53  ;;  %v3468_v38 = vadd.f32 %v3467_v39, %v3014_v34  ;;  %v3479_v44 = vpop.f32.mrf.mxu1 }
 0x207   : > { %v3958_v19 = vld [vmem:[#allocation2 + $0x8] sm:$0xff]  ;;  %v3025_v36 = vpop.f32.mrf.mxu0 }
 0x208   : > { %v4029_v50 = vadd.f32 %v7067_v11, %v3958_v19  ;;  %3895 = vst.msk [vmem:[#allocation2 + $0x28] sm:$0xff] %vm223_vm2, %v3830_v55  ;;  %v3829_v32 = vadd.f32 %v3468_v38, %v292_v1  ;;  %v3026_v23 = vadd.f32 %v3025_v36, %v6841_v33  ;;  %v3486_v53 = vadd.f32 %v5217_v20, %v3032_v22  ;;  %v297_v33 = vld [vmem:[#allocation2 + $0x48] sm:$0xff]  ;;  %v5220_v63 = vpop.f32.mrf.mxu1 }
 0x209   : > { %v3957_v24 = vld [vmem:[#allocation2] sm:$0xff]  ;;  %v5114_v17 = vpop.f32.mrf.mxu0 }
 0x20a   : > { %4093 = vst.msk [vmem:[%s7076_s8 + $0x8] sm:$0xff] %vm223_vm2, %v4029_v50  ;;  %v4028_v60 = vadd.f32 %v7067_v11, %v3957_v24  ;;  %3894 = vst.msk [vmem:[#allocation2 + $0x20] sm:$0xff] %vm223_vm2, %v3829_v32  ;;  %v3832_v58 = vadd.f32 %v3486_v53, %v295_v52  ;;  %v3044_v43 = vadd.f32 %v5114_v17, %v6846_v10  ;;  %v296_v10 = vld [vmem:[#allocation2 + $0x40] sm:$0xff]  ;;  %v3491_v19 = vpop.f32.mrf.mxu1 }
 0x20b   : > { %v3480_v25 = vadd.f32 %v3479_v44, %v3026_v23  ;;  %v3960_v46 = vld [vmem:[#allocation2 + $0x18] sm:$0xff]  ;;  %v3037_v34 = vpop.f32.mrf.mxu0 }
 0x20c   : > { %4092 = vst.msk [vmem:[%s7076_s8] sm:$0xff] %vm223_vm2, %v4028_v60  ;;  %v4031_v16 = vadd.f32 %v7067_v11, %v3960_v46  ;;  %3897 = vst.msk [vmem:[#allocation2 + $0x38] sm:$0xff] %vm223_vm2, %v3832_v58  ;;  %v3038_v39 = vadd.f32 %v3037_v34, %v6851_v7  ;;  %v3498_v55 = vadd.f32 %v5220_v63, %v3044_v43  ;;  %v299_v7 = vld [vmem:[#allocation2 + $0x58] sm:$0xff]  ;;  %v5223_v53 = vpop.f32.mrf.mxu1 }
 0x20d   : > { %v3831_v1 = vadd.f32 %v3480_v25, %v294_v54  ;;  %v3959_v22 = vld [vmem:[#allocation2 + $0x10] sm:$0xff]  ;;  %v5117_v38 = vpop.f32.mrf.mxu0 }
 0x20e   : > { %4095 = vst.msk [vmem:[%s7076_s8 + $0x18] sm:$0xff] %vm223_vm2, %v4031_v16  ;;  %v4030_v36 = vadd.f32 %v7067_v11, %v3959_v22  ;;  %v3834_v52 = vadd.f32 %v3498_v55, %v297_v33  ;;  %v3056_v20 = vadd.f32 %v5117_v38, %v6856_v48  ;;  %v3492_v50 = vadd.f32 %v3491_v19, %v3038_v39  ;;  %v298_v48 = vld [vmem:[#allocation2 + $0x50] sm:$0xff]  ;;  %v3503_v43 = vpop.f32.mrf.mxu1 }
 0x20f   : > { %3896 = vst.msk [vmem:[#allocation2 + $0x30] sm:$0xff] %vm223_vm2, %v3831_v1  ;;  %v3962_v32 = vld [vmem:[#allocation2 + $0x28] sm:$0xff]  ;;  %v3049_v23 = vpop.f32.mrf.mxu0 }
 0x210   : > { %4094 = vst.msk [vmem:[%s7076_s8 + $0x10] sm:$0xff] %vm223_vm2, %v4030_v36  ;;  %v4033_v24 = vadd.f32 %v7067_v11, %v3962_v32  ;;  %3899 = vst.msk [vmem:[#allocation2 + $0x48] sm:$0xff] %vm223_vm2, %v3834_v52  ;;  %v3833_v17 = vadd.f32 %v3492_v50, %v296_v10  ;;  %v3050_v54 = vadd.f32 %v3049_v23, %v6861_v12  ;;  %v301_v12 = vld [vmem:[#allocation2 + $0x68] sm:$0xff]  ;;  %v5226_v1 = vpop.f32.mrf.mxu1 }
 0x211   : > { %v3510_v44 = vadd.f32 %v5223_v53, %v3056_v20  ;;  %v3961_v60 = vld [vmem:[#allocation2 + $0x20] sm:$0xff]  ;;  %v5120_v58 = vpop.f32.mrf.mxu0 }
 0x212   : > { %4097 = vst.msk [vmem:[%s7076_s8 + $0x28] sm:$0xff] %vm223_vm2, %v4033_v24  ;;  %v4032_v25 = vadd.f32 %v7067_v11, %v3961_v60  ;;  %3898 = vst.msk [vmem:[#allocation2 + $0x40] sm:$0xff] %vm223_vm2, %v3833_v17  ;;  %v3068_v34 = vadd.f32 %v5120_v58, %v6866_v57  ;;  %v3504_v33 = vadd.f32 %v3503_v43, %v3050_v54  ;;  %v300_v57 = vld [vmem:[#allocation2 + $0x60] sm:$0xff]  ;;  %v3515_v36 = vpop.f32.mrf.mxu1 }
 0x213   : > { %v3836_v46 = vadd.f32 %v3510_v44, %v299_v7  ;;  %v3964_v63 = vld [vmem:[#allocation2 + $0x38] sm:$0xff]  ;;  %v3061_v16 = vpop.f32.mrf.mxu0 }
 0x214   : > { %4096 = vst.msk [vmem:[%s7076_s8 + $0x20] sm:$0xff] %vm223_vm2, %v4032_v25  ;;  %v4035_v39 = vadd.f32 %v7067_v11, %v3964_v63  ;;  %v3835_v55 = vadd.f32 %v3504_v33, %v298_v48  ;;  %v3062_v22 = vadd.f32 %v3061_v16, %v6871_v6  ;;  %v3522_v38 = vadd.f32 %v5226_v1, %v3068_v34  ;;  %v303_v6 = vld [vmem:[#allocation2 + $0x78] sm:$0xff]  ;;  %v5229_v53 = vpop.f32.mrf.mxu1 }
 0x215   : > { %3901 = vst.msk [vmem:[#allocation2 + $0x58] sm:$0xff] %vm223_vm2, %v3836_v46  ;;  %v5123_v19 = vpop.f32.mrf.mxu0 }
 0x216   : > { %v3963_v10 = vld [vmem:[#allocation2 + $0x30] sm:$0xff]  ;;  %4099 = vst.msk [vmem:[%s7076_s8 + $0x38] sm:$0xff] %vm223_vm2, %v4035_v39  ;;  %3900 = vst.msk [vmem:[#allocation2 + $0x50] sm:$0xff] %vm223_vm2, %v3835_v55  ;;  %v3838_v20 = vadd.f32 %v3522_v38, %v301_v12  ;;  %v3080_v50 = vadd.f32 %v5123_v19, %v6876_v56  ;;  %v3516_v32 = vadd.f32 %v3515_v36, %v3062_v22  ;;  %v3527_v48 = vpop.f32.mrf.mxu1 }
 0x217   : > { %v4034_v52 = vadd.f32 %v7067_v11, %v3963_v10  ;;  %v3966_v23 = vld [vmem:[#allocation2 + $0x48] sm:$0xff]  ;;  %v3073_v7 = vpop.f32.mrf.mxu0  ;;  %v302_v56 = vld [vmem:[#allocation2 + $0x70] sm:$0xff] }
 0x218   : > { %v4037_v24 = vadd.f32 %v7067_v11, %v3966_v23  ;;  %3903 = vst.msk [vmem:[#allocation2 + $0x68] sm:$0xff] %vm223_vm2, %v3838_v20  ;;  %v3837_v17 = vadd.f32 %v3516_v32, %v300_v57  ;;  %v3074_v54 = vadd.f32 %v3073_v7, %v6881_v27  ;;  %v3534_v44 = vadd.f32 %v5229_v53, %v3080_v50  ;;  %v305_v27 = vld [vmem:[#allocation2 + $0x88] sm:$0xff]  ;;  %v5232_v16 = vpop.f32.mrf.mxu1 }
 0x219   : > { %4098 = vst.msk [vmem:[%s7076_s8 + $0x30] sm:$0xff] %vm223_vm2, %v4034_v52  ;;  %v3965_v60 = vld [vmem:[#allocation2 + $0x40] sm:$0xff]  ;;  %v5126_v58 = vpop.f32.mrf.mxu0 }
 0x21a   : > { %4101 = vst.msk [vmem:[%s7076_s8 + $0x48] sm:$0xff] %vm223_vm2, %v4037_v24  ;;  %v4036_v43 = vadd.f32 %v7067_v11, %v3965_v60  ;;  %3902 = vst.msk [vmem:[#allocation2 + $0x60] sm:$0xff] %vm223_vm2, %v3837_v17  ;;  %v3840_v25 = vadd.f32 %v3534_v44, %v303_v6  ;;  %v3092_v46 = vadd.f32 %v5126_v58, %v6886_v45  ;;  %v304_v45 = vld [vmem:[#allocation2 + $0x80] sm:$0xff]  ;;  %v3539_v10 = vpop.f32.mrf.mxu1 }
 0x21b   : > { %v3528_v34 = vadd.f32 %v3527_v48, %v3074_v54  ;;  %v3085_v63 = vpop.f32.mrf.mxu0 }
 0x21c   : > { %v3968_v33 = vld [vmem:[#allocation2 + $0x58] sm:$0xff]  ;;  %4100 = vst.msk [vmem:[%s7076_s8 + $0x40] sm:$0xff] %vm223_vm2, %v4036_v43  ;;  %3905 = vst.msk [vmem:[#allocation2 + $0x78] sm:$0xff] %vm223_vm2, %v3840_v25  ;;  %v3086_v39 = vadd.f32 %v3085_v63, %v6891_v13  ;;  %v3546_v55 = vadd.f32 %v5232_v16, %v3092_v46  ;;  %v5235_v32 = vpop.f32.mrf.mxu1 }
 0x21d   : > { %v4039_v12 = vadd.f32 %v7067_v11, %v3968_v33  ;;  %v3839_v1 = vadd.f32 %v3528_v34, %v302_v56  ;;  %v3967_v22 = vld [vmem:[#allocation2 + $0x50] sm:$0xff]  ;;  %v5129_v38 = vpop.f32.mrf.mxu0  ;;  %v307_v13 = vld [vmem:[#allocation2 + $0x98] sm:$0xff] }
 0x21e   : > { %v4038_v19 = vadd.f32 %v7067_v11, %v3967_v22  ;;  %v3842_v57 = vadd.f32 %v3546_v55, %v305_v27  ;;  %v3104_v36 = vadd.f32 %v5129_v38, %v6896_v42  ;;  %v3540_v52 = vadd.f32 %v3539_v10, %v3086_v39  ;;  %v306_v42 = vld [vmem:[#allocation2 + $0x90] sm:$0xff]  ;;  %v3551_v54 = vpop.f32.mrf.mxu1 }
 0x21f   : > { %4103 = vst.msk [vmem:[%s7076_s8 + $0x58] sm:$0xff] %vm223_vm2, %v4039_v12  ;;  %3904 = vst.msk [vmem:[#allocation2 + $0x70] sm:$0xff] %vm223_vm2, %v3839_v1  ;;  %v3970_v20 = vld [vmem:[#allocation2 + $0x68] sm:$0xff]  ;;  %v3097_v50 = vpop.f32.mrf.mxu0 }
 0x220   : > { %4102 = vst.msk [vmem:[%s7076_s8 + $0x50] sm:$0xff] %vm223_vm2, %v4038_v19  ;;  %v4041_v23 = vadd.f32 %v7067_v11, %v3970_v20  ;;  %3907 = vst.msk [vmem:[#allocation2 + $0x88] sm:$0xff] %vm223_vm2, %v3842_v57  ;;  %v3841_v7 = vadd.f32 %v3540_v52, %v304_v45  ;;  %v3098_v6 = vadd.f32 %v3097_v50, %v6901_v0  ;;  %v309_v0 = vld [vmem:[#allocation2 + $0xa8] sm:$0xff]  ;;  %v5238_v25 = vpop.f32.mrf.mxu1 }
 0x221   : > { %v3558_v53 = vadd.f32 %v5235_v32, %v3104_v36  ;;  %v3969_v24 = vld [vmem:[#allocation2 + $0x60] sm:$0xff]  ;;  %v5132_v17 = vpop.f32.mrf.mxu0 }
 0x222   : > { %4105 = vst.msk [vmem:[%s7076_s8 + $0x68] sm:$0xff] %vm223_vm2, %v4041_v23  ;;  %v4040_v44 = vadd.f32 %v7067_v11, %v3969_v24  ;;  %3906 = vst.msk [vmem:[#allocation2 + $0x80] sm:$0xff] %vm223_vm2, %v3841_v7  ;;  %v3116_v58 = vadd.f32 %v5132_v17, %v6906_v8  ;;  %v3552_v56 = vadd.f32 %v3551_v54, %v3098_v6  ;;  %v308_v8 = vld [vmem:[#allocation2 + $0xa0] sm:$0xff]  ;;  %v3563_v12 = vpop.f32.mrf.mxu1 }
 0x223   : > { %v3844_v60 = vadd.f32 %v3558_v53, %v307_v13  ;;  %v3972_v48 = vld [vmem:[#allocation2 + $0x78] sm:$0xff]  ;;  %v3109_v43 = vpop.f32.mrf.mxu0 }
 0x224   : > { %4104 = vst.msk [vmem:[%s7076_s8 + $0x60] sm:$0xff] %vm223_vm2, %v4040_v44  ;;  %v4043_v46 = vadd.f32 %v7067_v11, %v3972_v48  ;;  %v3843_v34 = vadd.f32 %v3552_v56, %v306_v42  ;;  %v3110_v33 = vadd.f32 %v3109_v43, %v6911_v4  ;;  %v3570_v63 = vadd.f32 %v5238_v25, %v3116_v58  ;;  %v311_v4 = vld [vmem:[#allocation2 + $0xb8] sm:$0xff]  ;;  %v5241_v10 = vpop.f32.mrf.mxu1 }
 0x225   : > { %3909 = vst.msk [vmem:[#allocation2 + $0x98] sm:$0xff] %vm223_vm2, %v3844_v60  ;;  %v5135_v16 = vpop.f32.mrf.mxu0 }
 0x226   : > { %v3971_v27 = vld [vmem:[#allocation2 + $0x70] sm:$0xff]  ;;  %4107 = vst.msk [vmem:[%s7076_s8 + $0x78] sm:$0xff] %vm223_vm2, %v4043_v46  ;;  %3908 = vst.msk [vmem:[#allocation2 + $0x90] sm:$0xff] %vm223_vm2, %v3843_v34  ;;  %v3846_v39 = vadd.f32 %v3570_v63, %v309_v0  ;;  %v3128_v55 = vadd.f32 %v5135_v16, %v6916_v40  ;;  %v3564_v22 = vadd.f32 %v3563_v12, %v3110_v33  ;;  %v3575_v13 = vpop.f32.mrf.mxu1 }
 0x227   : > { %v4042_v1 = vadd.f32 %v7067_v11, %v3971_v27  ;;  %v3974_v38 = vld [vmem:[#allocation2 + $0x88] sm:$0xff]  ;;  %v3121_v45 = vpop.f32.mrf.mxu0  ;;  %v310_v40 = vld [vmem:[#allocation2 + $0xb0] sm:$0xff] }
 0x228   : > { %v4045_v19 = vadd.f32 %v7067_v11, %v3974_v38  ;;  %3911 = vst.msk [vmem:[#allocation2 + $0xa8] sm:$0xff] %vm223_vm2, %v3846_v39  ;;  %v3845_v57 = vadd.f32 %v3564_v22, %v308_v8  ;;  %v3122_v36 = vadd.f32 %v3121_v45, %v6921_v2  ;;  %v3582_v52 = vadd.f32 %v5241_v10, %v3128_v55  ;;  %v313_v2 = vld [vmem:[#allocation2 + $0xc8] sm:$0xff]  ;;  %v5244_v17 = vpop.f32.mrf.mxu1 }
 0x229   : > { %4106 = vst.msk [vmem:[%s7076_s8 + $0x70] sm:$0xff] %vm223_vm2, %v4042_v1  ;;  %v3973_v20 = vld [vmem:[#allocation2 + $0x80] sm:$0xff]  ;;  %v5138_v50 = vpop.f32.mrf.mxu0 }
 0x22a   : > { %4109 = vst.msk [vmem:[%s7076_s8 + $0x88] sm:$0xff] %vm223_vm2, %v4045_v19  ;;  %v4044_v32 = vadd.f32 %v7067_v11, %v3973_v20  ;;  %3910 = vst.msk [vmem:[#allocation2 + $0xa0] sm:$0xff] %vm223_vm2, %v3845_v57  ;;  %v3848_v23 = vadd.f32 %v3582_v52, %v311_v4  ;;  %v3140_v7 = vadd.f32 %v5138_v50, %v6926_v5  ;;  %v312_v5 = vld [vmem:[#allocation2 + $0xc0] sm:$0xff]  ;;  %v3587_v48 = vpop.f32.mrf.mxu1 }
 0x22b   : > { %v3576_v6 = vadd.f32 %v3575_v13, %v3122_v36  ;;  %v3133_v24 = vpop.f32.mrf.mxu0 }
 0x22c   : > { %v3976_v53 = vld [vmem:[#allocation2 + $0x98] sm:$0xff]  ;;  %4108 = vst.msk [vmem:[%s7076_s8 + $0x80] sm:$0xff] %vm223_vm2, %v4044_v32  ;;  %3913 = vst.msk [vmem:[#allocation2 + $0xb8] sm:$0xff] %vm223_vm2, %v3848_v23  ;;  %v3134_v44 = vadd.f32 %v3133_v24, %v6931_v61  ;;  %v3594_v60 = vadd.f32 %v5244_v17, %v3140_v7  ;;  %v5247_v63 = vpop.f32.mrf.mxu1 }
 0x22d   : > { %v4047_v42 = vadd.f32 %v7067_v11, %v3976_v53  ;;  %v3847_v54 = vadd.f32 %v3576_v6, %v310_v40  ;;  %v3975_v58 = vld [vmem:[#allocation2 + $0x90] sm:$0xff]  ;;  %v5141_v56 = vpop.f32.mrf.mxu0  ;;  %v315_v61 = vld [vmem:[#allocation2 + $0xd8] sm:$0xff] }
 0x22e   : > { %v4046_v43 = vadd.f32 %v7067_v11, %v3975_v58  ;;  %v3850_v0 = vadd.f32 %v3594_v60, %v313_v2  ;;  %v3152_v25 = vadd.f32 %v5141_v56, %v6936_v37  ;;  %v3588_v46 = vadd.f32 %v3587_v48, %v3134_v44  ;;  %v314_v37 = vld [vmem:[#allocation2 + $0xd0] sm:$0xff]  ;;  %v3599_v55 = vpop.f32.mrf.mxu1 }
 0x22f   : > { %4111 = vst.msk [vmem:[%s7076_s8 + $0x98] sm:$0xff] %vm223_vm2, %v4047_v42  ;;  %3912 = vst.msk [vmem:[#allocation2 + $0xb0] sm:$0xff] %vm223_vm2, %v3847_v54  ;;  %v3978_v34 = vld [vmem:[#allocation2 + $0xa8] sm:$0xff]  ;;  %v3145_v33 = vpop.f32.mrf.mxu0 }
 0x230   : > { %4110 = vst.msk [vmem:[%s7076_s8 + $0x90] sm:$0xff] %vm223_vm2, %v4046_v43  ;;  %v4049_v27 = vadd.f32 %v7067_v11, %v3978_v34  ;;  %3915 = vst.msk [vmem:[#allocation2 + $0xc8] sm:$0xff] %vm223_vm2, %v3850_v0  ;;  %v3849_v16 = vadd.f32 %v3588_v46, %v312_v5  ;;  %v3146_v8 = vadd.f32 %v3145_v33, %v6941_v59  ;;  %v317_v59 = vld [vmem:[#allocation2 + $0xe8] sm:$0xff]  ;;  %v5250_v57 = vpop.f32.mrf.mxu1 }
 0x231   : > { %v3606_v12 = vadd.f32 %v5247_v63, %v3152_v25  ;;  %v3977_v1 = vld [vmem:[#allocation2 + $0xa0] sm:$0xff]  ;;  %v5144_v39 = vpop.f32.mrf.mxu0 }
 0x232   : > { %4113 = vst.msk [vmem:[%s7076_s8 + $0xa8] sm:$0xff] %vm223_vm2, %v4049_v27  ;;  %v4048_v22 = vadd.f32 %v7067_v11, %v3977_v1  ;;  %3914 = vst.msk [vmem:[#allocation2 + $0xc0] sm:$0xff] %vm223_vm2, %v3849_v16  ;;  %v3164_v45 = vadd.f32 %v5144_v39, %v6946_v31  ;;  %v3600_v4 = vadd.f32 %v3599_v55, %v3146_v8  ;;  %v316_v31 = vld [vmem:[#allocation2 + $0xe0] sm:$0xff]  ;;  %v3611_v32 = vpop.f32.mrf.mxu1 }
 0x233   : > { %v3852_v38 = vadd.f32 %v3606_v12, %v315_v61  ;;  %v3980_v10 = vld [vmem:[#allocation2 + $0xb8] sm:$0xff]  ;;  %v3157_v19 = vpop.f32.mrf.mxu0 }
 0x234   : > { %4112 = vst.msk [vmem:[%s7076_s8 + $0xa0] sm:$0xff] %vm223_vm2, %v4048_v22  ;;  %v4051_v36 = vadd.f32 %v7067_v11, %v3980_v10  ;;  %v3851_v52 = vadd.f32 %v3600_v4, %v314_v37  ;;  %v3158_v20 = vadd.f32 %v3157_v19, %v6951_v14  ;;  %v3618_v50 = vadd.f32 %v5250_v57, %v3164_v45  ;;  %v319_v14 = vld [vmem:[#allocation2 + $0xf8] sm:$0xff]  ;;  %v5253_v17 = vpop.f32.mrf.mxu1 }
 0x235   : > { %3917 = vst.msk [vmem:[#allocation2 + $0xd8] sm:$0xff] %vm223_vm2, %v3852_v38  ;;  %v5147_v13 = vpop.f32.mrf.mxu0 }
 0x236   : > { %v3979_v40 = vld [vmem:[#allocation2 + $0xb0] sm:$0xff]  ;;  %4115 = vst.msk [vmem:[%s7076_s8 + $0xb8] sm:$0xff] %vm223_vm2, %v4051_v36  ;;  %3916 = vst.msk [vmem:[#allocation2 + $0xd0] sm:$0xff] %vm223_vm2, %v3851_v52  ;;  %v3854_v7 = vadd.f32 %v3618_v50, %v317_v59  ;;  %v3176_v6 = vadd.f32 %v5147_v13, %v6955_v41  ;;  %v3612_v53 = vadd.f32 %v3611_v32, %v3158_v20  ;;  %v3623_v5 = vpop.f32.mrf.mxu1 }
 0x237   : > { %v4050_v23 = vadd.f32 %v7067_v11, %v3979_v40  ;;  %v3982_v24 = vld [vmem:[#allocation2 + $0xc8] sm:$0xff]  ;;  %v3169_v2 = vpop.f32.mrf.mxu0  ;;  %v318_v41 = vld [vmem:[#allocation2 + $0xf0] sm:$0xff] }
 0x238   : > { %v4053_v42 = vadd.f32 %v7067_v11, %v3982_v24  ;;  %3919 = vst.msk [vmem:[#allocation2 + $0xe8] sm:$0xff] %vm223_vm2, %v3854_v7  ;;  %v3853_v54 = vadd.f32 %v3612_v53, %v316_v31  ;;  %v3170_v44 = vadd.f32 %v3169_v2, %v6958_v21  ;;  %v3630_v60 = vadd.f32 %v5253_v17, %v3176_v6  ;;  %v321_v21 = vld [vmem:[#allocation2 + $0x108] sm:$0xff]  ;;  %v5256_v33 = vpop.f32.mrf.mxu1 }
 0x239   : > { %4114 = vst.msk [vmem:[%s7076_s8 + $0xb0] sm:$0xff] %vm223_vm2, %v4050_v23  ;;  %v3981_v58 = vld [vmem:[#allocation2 + $0xc0] sm:$0xff]  ;;  %v5150_v56 = vpop.f32.mrf.mxu0 }
 0x23a   : > { %4117 = vst.msk [vmem:[%s7076_s8 + $0xc8] sm:$0xff] %vm223_vm2, %v4053_v42  ;;  %v4052_v48 = vadd.f32 %v7067_v11, %v3981_v58  ;;  %3918 = vst.msk [vmem:[#allocation2 + $0xe0] sm:$0xff] %vm223_vm2, %v3853_v54  ;;  %v3856_v43 = vadd.f32 %v3630_v60, %v319_v14  ;;  %v3188_v0 = vadd.f32 %v5150_v56, %v6961_v49  ;;  %v320_v49 = vld [vmem:[#allocation2 + $0x100] sm:$0xff]  ;;  %v3635_v1 = vpop.f32.mrf.mxu1 }
 0x23b   : > { %v3624_v25 = vadd.f32 %v3623_v5, %v3170_v44  ;;  %v3181_v34 = vpop.f32.mrf.mxu0 }
 0x23c   : > { %v3984_v46 = vld [vmem:[#allocation2 + $0xd8] sm:$0xff]  ;;  %4116 = vst.msk [vmem:[%s7076_s8 + $0xc0] sm:$0xff] %vm223_vm2, %v4052_v48  ;;  %3921 = vst.msk [vmem:[#allocation2 + $0xf8] sm:$0xff] %vm223_vm2, %v3856_v43  ;;  %v3182_v27 = vadd.f32 %v3181_v34, %v6964_v62  ;;  %v3642_v16 = vadd.f32 %v5256_v33, %v3188_v0  ;;  %v5259_v4 = vpop.f32.mrf.mxu1 }
 0x23d   : > { %v4055_v61 = vadd.f32 %v7067_v11, %v3984_v46  ;;  %v3855_v63 = vadd.f32 %v3624_v25, %v318_v41  ;;  %v3983_v8 = vld [vmem:[#allocation2 + $0xd0] sm:$0xff]  ;;  %v5153_v12 = vpop.f32.mrf.mxu0  ;;  %v323_v62 = vld [vmem:[#allocation2 + $0x118] sm:$0xff] }
 0x23e   : > { %v4054_v39 = vadd.f32 %v7067_v11, %v3983_v8  ;;  %v3858_v37 = vadd.f32 %v3642_v16, %v321_v21  ;;  %v3200_v55 = vadd.f32 %v5153_v12, %v6967_v15  ;;  %v3636_v22 = vadd.f32 %v3635_v1, %v3182_v27  ;;  %v322_v15 = vld [vmem:[#allocation2 + $0x110] sm:$0xff]  ;;  %v3647_v20 = vpop.f32.mrf.mxu1 }
 0x23f   : > { %4119 = vst.msk [vmem:[%s7076_s8 + $0xd8] sm:$0xff] %vm223_vm2, %v4055_v61  ;;  %3920 = vst.msk [vmem:[#allocation2 + $0xf0] sm:$0xff] %vm223_vm2, %v3855_v63  ;;  %v3986_v38 = vld [vmem:[#allocation2 + $0xe8] sm:$0xff]  ;;  %v3193_v45 = vpop.f32.mrf.mxu0 }
 0x240   : > { %4118 = vst.msk [vmem:[%s7076_s8 + $0xd0] sm:$0xff] %vm223_vm2, %v4054_v39  ;;  %v4057_v10 = vadd.f32 %v7067_v11, %v3986_v38  ;;  %3923 = vst.msk [vmem:[#allocation2 + $0x108] sm:$0xff] %vm223_vm2, %v3858_v37  ;;  %v3857_v19 = vadd.f32 %v3636_v22, %v320_v49  ;;  %v3194_v59 = vadd.f32 %v3193_v45, %v6970_v30  ;;  %v325_v30 = vld [vmem:[#allocation2 + $0x128] sm:$0xff]  ;;  %v5262_v7 = vpop.f32.mrf.mxu1 }
 0x241   : > { %v3654_v57 = vadd.f32 %v5259_v4, %v3200_v55  ;;  %v3985_v36 = vld [vmem:[#allocation2 + $0xe0] sm:$0xff]  ;;  %v5156_v52 = vpop.f32.mrf.mxu0 }
 0x242   : > { %4121 = vst.msk [vmem:[%s7076_s8 + $0xe8] sm:$0xff] %vm223_vm2, %v4057_v10  ;;  %v4056_v50 = vadd.f32 %v7067_v11, %v3985_v36  ;;  %3922 = vst.msk [vmem:[#allocation2 + $0x100] sm:$0xff] %vm223_vm2, %v3857_v19  ;;  %v3212_v13 = vadd.f32 %v5156_v52, %v6973_v9  ;;  %v3648_v31 = vadd.f32 %v3647_v20, %v3194_v59  ;;  %v324_v9 = vld [vmem:[#allocation2 + $0x120] sm:$0xff]  ;;  %v3659_v42 = vpop.f32.mrf.mxu1 }
 0x243   : > { %v3860_v40 = vadd.f32 %v3654_v57, %v323_v62  ;;  %v3988_v32 = vld [vmem:[#allocation2 + $0xf8] sm:$0xff]  ;;  %v3205_v23 = vpop.f32.mrf.mxu0 }
 0x244   : > { %4120 = vst.msk [vmem:[%s7076_s8 + $0xe0] sm:$0xff] %vm223_vm2, %v4056_v50  ;;  %v4059_v6 = vadd.f32 %v7067_v11, %v3988_v32  ;;  %v3859_v53 = vadd.f32 %v3648_v31, %v322_v15  ;;  %v3206_v24 = vadd.f32 %v3205_v23, %v6976_v18  ;;  %v3666_v2 = vadd.f32 %v5262_v7, %v3212_v13  ;;  %v327_v18 = vld [vmem:[#allocation2 + $0x138] sm:$0xff]  ;;  %v5265_v5 = vpop.f32.mrf.mxu1  ;;  %v7942_v15 = vld [vmem:[#allocation75_spill] sm:$0xff] }
 0x245   : > { %3925 = vst.msk [vmem:[#allocation2 + $0x118] sm:$0xff] %vm223_vm2, %v3860_v40  ;;  %v5159_v17 = vpop.f32.mrf.mxu0 }
 0x246   : > { %v3987_v14 = vld [vmem:[#allocation2 + $0xf0] sm:$0xff]  ;;  %4123 = vst.msk [vmem:[%s7076_s8 + $0xf8] sm:$0xff] %vm223_vm2, %v4059_v6  ;;  %3924 = vst.msk [vmem:[#allocation2 + $0x110] sm:$0xff] %vm223_vm2, %v3859_v53  ;;  %v3862_v44 = vadd.f32 %v3666_v2, %v325_v30  ;;  %v3224_v60 = vadd.f32 %v5159_v17, %v6979_v47  ;;  %v3660_v58 = vadd.f32 %v3659_v42, %v3206_v24  ;;  %v3671_v21 = vpop.f32.mrf.mxu1  ;;  %v7943_v30 = vld [vmem:[#allocation76_spill] sm:$0xff] }
 0x247   : > { %v4058_v54 = vadd.f32 %v7067_v11, %v3987_v14  ;;  %v3990_v56 = vld [vmem:[#allocation2 + $0x108] sm:$0xff]  ;;  %v3217_v41 = vpop.f32.mrf.mxu0  ;;  %v326_v47 = vld [vmem:[#allocation2 + $0x130] sm:$0xff] }
 0x248   : > { %v4061_v48 = vadd.f32 %v7067_v11, %v3990_v56  ;;  %3927 = vst.msk [vmem:[#allocation2 + $0x128] sm:$0xff] %vm223_vm2, %v3862_v44  ;;  %v3861_v43 = vadd.f32 %v3660_v58, %v324_v9  ;;  %v3218_v0 = vadd.f32 %v3217_v41, %v6982_v3  ;;  %v3678_v25 = vadd.f32 %v5265_v5, %v3224_v60  ;;  %v329_v3 = vld [vmem:[#allocation2 + $0x148] sm:$0xff]  ;;  %v5268_v12 = vpop.f32.mrf.mxu1  ;;  %v7944_v42 = vld [vmem:[#allocation77_spill] sm:$0xff]  ;;  %v332_v56 = vld [vmem:[#allocation2 + $0x160] sm:$0xff] }
 0x249   : > { %4122 = vst.msk [vmem:[%s7076_s8 + $0xf0] sm:$0xff] %vm223_vm2, %v4058_v54  ;;  %v3989_v46 = vld [vmem:[#allocation2 + $0x100] sm:$0xff]  ;;  %v5162_v34 = vpop.f32.mrf.mxu0  ;;  %v333_v2 = vld [vmem:[#allocation2 + $0x168] sm:$0xff] }
 0x24a   : > { %4125 = vst.msk [vmem:[%s7076_s8 + $0x108] sm:$0xff] %vm223_vm2, %v4061_v48  ;;  %v4060_v33 = vadd.f32 %v7067_v11, %v3989_v46  ;;  %3926 = vst.msk [vmem:[#allocation2 + $0x120] sm:$0xff] %vm223_vm2, %v3861_v43  ;;  %v3864_v61 = vadd.f32 %v3678_v25, %v327_v18  ;;  %v3236_v63 = vadd.f32 %v5162_v34, %v6985_v51  ;;  %v328_v51 = vld [vmem:[#allocation2 + $0x140] sm:$0xff]  ;;  %v3683_v38 = vpop.f32.mrf.mxu1  ;;  %v7945_v48 = vld [vmem:[#allocation80_spill] sm:$0xff] }
 0x24b   : > { %v3672_v27 = vadd.f32 %v3671_v21, %v3218_v0  ;;  %v3229_v8 = vpop.f32.mrf.mxu0  ;;  %v335_v34 = vld [vmem:[#allocation2 + $0x178] sm:$0xff] }
 0x24c   : > { %v3992_v16 = vld [vmem:[#allocation2 + $0x118] sm:$0xff]  ;;  %4124 = vst.msk [vmem:[%s7076_s8 + $0x100] sm:$0xff] %vm223_vm2, %v4060_v33  ;;  %3929 = vst.msk [vmem:[#allocation2 + $0x138] sm:$0xff] %vm223_vm2, %v3864_v61  ;;  %v3230_v39 = vadd.f32 %v3229_v8, %v6988_v29  ;;  %v3690_v37 = vadd.f32 %v5268_v12, %v3236_v63  ;;  %v5271_v57 = vpop.f32.mrf.mxu1 }
 0x24d   : > { %v4063_v49 = vadd.f32 %v7067_v11, %v3992_v16  ;;  %v3863_v1 = vadd.f32 %v3672_v27, %v326_v47  ;;  %v3991_v55 = vld [vmem:[#allocation2 + $0x110] sm:$0xff]  ;;  %v5165_v22 = vpop.f32.mrf.mxu0  ;;  %v331_v29 = vld [vmem:[#allocation2 + $0x158] sm:$0xff] }
 0x24e   : > { %v4062_v45 = vadd.f32 %v7067_v11, %v3991_v55  ;;  %v3866_v62 = vadd.f32 %v3690_v37, %v329_v3  ;;  %v3248_v4 = vadd.f32 %v5165_v22, %v6991_v35  ;;  %v3684_v10 = vadd.f32 %v3683_v38, %v3230_v39  ;;  %v330_v35 = vld [vmem:[#allocation2 + $0x150] sm:$0xff]  ;;  %v3695_v31 = vpop.f32.mrf.mxu1  ;;  %v7946_v61 = vld [vmem:[#allocation82_spill] sm:$0xff]  ;;  %v337_v38 = vld [vmem:[#allocation2 + $0x188] sm:$0xff] }
 0x24f   : > { %4127 = vst.msk [vmem:[%s7076_s8 + $0x118] sm:$0xff] %vm223_vm2, %v4063_v49  ;;  %3928 = vst.msk [vmem:[#allocation2 + $0x130] sm:$0xff] %vm223_vm2, %v3863_v1  ;;  %v3994_v19 = vld [vmem:[#allocation2 + $0x128] sm:$0xff]  ;;  %v3241_v59 = vpop.f32.mrf.mxu0  ;;  %v334_v3 = vld [vmem:[#allocation2 + $0x170] sm:$0xff] }
 0x250   : > { %4126 = vst.msk [vmem:[%s7076_s8 + $0x110] sm:$0xff] %vm223_vm2, %v4062_v45  ;;  %v4065_v36 = vadd.f32 %v7067_v11, %v3994_v19  ;;  %3931 = vst.msk [vmem:[#allocation2 + $0x148] sm:$0xff] %vm223_vm2, %v3866_v62  ;;  %v3865_v52 = vadd.f32 %v3684_v10, %v328_v51  ;;  %v3242_v20 = vadd.f32 %v3241_v59, %v7942_v15  ;;  %v5274_v14 = vpop.f32.mrf.mxu1  ;;  %v7947_v39 = vld [vmem:[#allocation85_spill] sm:$0xff]  ;;  %v7948_v10 = vld [vmem:[#allocation87_spill] sm:$0xff] }
 0x251   : > { %v3702_v50 = vadd.f32 %v5271_v57, %v3248_v4  ;;  %v3993_v40 = vld [vmem:[#allocation2 + $0x120] sm:$0xff]  ;;  %v5168_v13 = vpop.f32.mrf.mxu0 }
 0x252   : > { %4129 = vst.msk [vmem:[%s7076_s8 + $0x128] sm:$0xff] %vm223_vm2, %v4065_v36  ;;  %v4064_v32 = vadd.f32 %v7067_v11, %v3993_v40  ;;  %3930 = vst.msk [vmem:[#allocation2 + $0x140] sm:$0xff] %vm223_vm2, %v3865_v52  ;;  %v3260_v7 = vadd.f32 %v5168_v13, %v7943_v30  ;;  %v3696_v6 = vadd.f32 %v3695_v31, %v3242_v20  ;;  %v3707_v41 = vpop.f32.mrf.mxu1  ;;  %v336_v36 = vld [vmem:[#allocation2 + $0x180] sm:$0xff] }
 0x253   : > { %v3868_v23 = vadd.f32 %v3702_v50, %v331_v29  ;;  %v3996_v53 = vld [vmem:[#allocation2 + $0x138] sm:$0xff]  ;;  %v3253_v24 = vpop.f32.mrf.mxu0  ;;  %v7949_v50 = vld [vmem:[#allocation88_spill] sm:$0xff] }
 0x254   : > { %4128 = vst.msk [vmem:[%s7076_s8 + $0x120] sm:$0xff] %vm223_vm2, %v4064_v32  ;;  %v4067_v17 = vadd.f32 %v7067_v11, %v3996_v53  ;;  %v3867_v9 = vadd.f32 %v3696_v6, %v330_v35  ;;  %v3254_v54 = vadd.f32 %v3253_v24, %v7944_v42  ;;  %v3714_v44 = vadd.f32 %v5274_v14, %v3260_v7  ;;  %v5277_v47 = vpop.f32.mrf.mxu1  ;;  %v339_v32 = vld [vmem:[#allocation2 + $0x198] sm:$0xff]  ;;  %v7950_v6 = vld [vmem:[#allocation89_spill] sm:$0xff] }
 0x255   : > { %3933 = vst.msk [vmem:[#allocation2 + $0x158] sm:$0xff] %vm223_vm2, %v3868_v23  ;;  %v5171_v58 = vpop.f32.mrf.mxu0 }
 0x256   : > { %v3995_v60 = vld [vmem:[#allocation2 + $0x130] sm:$0xff]  ;;  %4131 = vst.msk [vmem:[%s7076_s8 + $0x138] sm:$0xff] %vm223_vm2, %v4067_v17  ;;  %3932 = vst.msk [vmem:[#allocation2 + $0x150] sm:$0xff] %vm223_vm2, %v3867_v9  ;;  %v3870_v5 = vadd.f32 %v3714_v44, %v333_v2  ;;  %v3272_v43 = vadd.f32 %v5171_v58, %v7945_v48  ;;  %v3708_v0 = vadd.f32 %v3707_v41, %v3254_v54  ;;  %v3719_v12 = vpop.f32.mrf.mxu1  ;;  %v7951_v44 = vld [vmem:[#allocation3_spill] sm:$0xff] }
 0x257   : > { %v4066_v18 = vadd.f32 %v7067_v11, %v3995_v60  ;;  %v3998_v25 = vld [vmem:[#allocation2 + $0x148] sm:$0xff]  ;;  %v3265_v46 = vpop.f32.mrf.mxu0  ;;  %v338_v17 = vld [vmem:[#allocation2 + $0x190] sm:$0xff] }
 0x258   : > { %v4069_v21 = vadd.f32 %v7067_v11, %v3998_v25  ;;  %3935 = vst.msk [vmem:[#allocation2 + $0x168] sm:$0xff] %vm223_vm2, %v3870_v5  ;;  %v3869_v33 = vadd.f32 %v3708_v0, %v332_v56  ;;  %v3266_v63 = vadd.f32 %v3265_v46, %v7946_v61  ;;  %v3726_v27 = vadd.f32 %v5277_v47, %v3272_v43  ;;  %v5280_v45 = vpop.f32.mrf.mxu1  ;;  %v7952_v0 = vld [vmem:[#allocation4_spill] sm:$0xff] }
 0x259   : > { %4130 = vst.msk [vmem:[%s7076_s8 + $0x130] sm:$0xff] %vm223_vm2, %v4066_v18  ;;  %v3997_v16 = vld [vmem:[#allocation2 + $0x140] sm:$0xff]  ;;  %v5174_v8 = vpop.f32.mrf.mxu0  ;;  %v341_v18 = vld [vmem:[#allocation2 + $0x1a8] sm:$0xff] }
 0x25a   : > { %4133 = vst.msk [vmem:[%s7076_s8 + $0x148] sm:$0xff] %vm223_vm2, %v4069_v21  ;;  %v4068_v49 = vadd.f32 %v7067_v11, %v3997_v16  ;;  %3934 = vst.msk [vmem:[#allocation2 + $0x160] sm:$0xff] %vm223_vm2, %v3869_v33  ;;  %v3872_v1 = vadd.f32 %v3726_v27, %v335_v34  ;;  %v3284_v37 = vadd.f32 %v5174_v8, %v7947_v39  ;;  %v3731_v52 = vpop.f32.mrf.mxu1  ;;  %v340_v21 = vld [vmem:[#allocation2 + $0x1a0] sm:$0xff]  ;;  %v7953_v27 = vld [vmem:[#allocation5_spill] sm:$0xff] }
 0x25b   : > { %v3720_v55 = vadd.f32 %v3719_v12, %v3266_v63  ;;  %v3277_v51 = vpop.f32.mrf.mxu0 }
 0x25c   : > { %v4000_v22 = vld [vmem:[#allocation2 + $0x158] sm:$0xff]  ;;  %4132 = vst.msk [vmem:[%s7076_s8 + $0x140] sm:$0xff] %vm223_vm2, %v4068_v49  ;;  %3937 = vst.msk [vmem:[#allocation2 + $0x178] sm:$0xff] %vm223_vm2, %v3872_v1  ;;  %v3278_v19 = vadd.f32 %v3277_v51, %v7948_v10  ;;  %v3738_v59 = vadd.f32 %v5280_v45, %v3284_v37  ;;  %v5283_v23 = vpop.f32.mrf.mxu1 }
 0x25d   : > { %v4071_v62 = vadd.f32 %v7067_v11, %v4000_v22  ;;  %v3871_v4 = vadd.f32 %v3720_v55, %v334_v3  ;;  %v3999_v29 = vld [vmem:[#allocation2 + $0x150] sm:$0xff]  ;;  %v5177_v57 = vpop.f32.mrf.mxu0  ;;  %v343_v49 = vld [vmem:[#allocation2 + $0x1b8] sm:$0xff] }
 0x25e   : > { %v4070_v15 = vadd.f32 %v7067_v11, %v3999_v29  ;;  %v3874_v20 = vadd.f32 %v3738_v59, %v337_v38  ;;  %v3296_v40 = vadd.f32 %v5177_v57, %v7949_v50  ;;  %v3732_v13 = vadd.f32 %v3731_v52, %v3278_v19  ;;  %v3743_v9 = vpop.f32.mrf.mxu1  ;;  %v7954_v55 = vld [vmem:[#allocation6_spill] sm:$0xff]  ;;  %v7955_v59 = vld [vmem:[#allocation7_spill] sm:$0xff] }
 0x25f   : > { %4135 = vst.msk [vmem:[%s7076_s8 + $0x158] sm:$0xff] %vm223_vm2, %v4071_v62  ;;  %3936 = vst.msk [vmem:[#allocation2 + $0x170] sm:$0xff] %vm223_vm2, %v3871_v4  ;;  %v4002_v35 = vld [vmem:[#allocation2 + $0x168] sm:$0xff]  ;;  %v3289_v31 = vpop.f32.mrf.mxu0  ;;  %v342_v62 = vld [vmem:[#allocation2 + $0x1b0] sm:$0xff] }
 0x260   : > { %4134 = vst.msk [vmem:[%s7076_s8 + $0x150] sm:$0xff] %vm223_vm2, %v4070_v15  ;;  %v4073_v30 = vadd.f32 %v7067_v11, %v4002_v35  ;;  %3939 = vst.msk [vmem:[#allocation2 + $0x188] sm:$0xff] %vm223_vm2, %v3874_v20  ;;  %v3873_v7 = vadd.f32 %v3732_v13, %v336_v36  ;;  %v3290_v53 = vadd.f32 %v3289_v31, %v7950_v6  ;;  %v5286_v5 = vpop.f32.mrf.mxu1  ;;  %v345_v15 = vld [vmem:[#allocation2 + $0x1c8] sm:$0xff]  ;;  %v7331_v50 = vld [vmem:[%s7403_s2] ss:$0 sm:$0xff] }
 0x261   : > { %v3750_v24 = vadd.f32 %v5283_v23, %v3296_v40  ;;  %v4001_v2 = vld [vmem:[#allocation2 + $0x160] sm:$0xff]  ;;  %v5180_v14 = vpop.f32.mrf.mxu0  ;;  %v7956_v13 = vld [vmem:[#allocation8_spill] sm:$0xff] }
 0x262   : > { %4137 = vst.msk [vmem:[%s7076_s8 + $0x168] sm:$0xff] %vm223_vm2, %v4073_v30  ;;  %v4072_v42 = vadd.f32 %v7067_v11, %v4001_v2  ;;  %3938 = vst.msk [vmem:[#allocation2 + $0x180] sm:$0xff] %vm223_vm2, %v3873_v7  ;;  %v3308_v60 = vadd.f32 %v5180_v14, %v7951_v44  ;;  %v3744_v58 = vadd.f32 %v3743_v9, %v3290_v53  ;;  %v3755_v33 = vpop.f32.mrf.mxu1  ;;  %v344_v30 = vld [vmem:[#allocation2 + $0x1c0] sm:$0xff] }
 0x263   : > { %v3876_v54 = vadd.f32 %v3750_v24, %v339_v32  ;;  %v4004_v56 = vld [vmem:[#allocation2 + $0x178] sm:$0xff]  ;;  %v3301_v41 = vpop.f32.mrf.mxu0  ;;  %v7957_v24 = vld [vmem:[#allocation9_spill] sm:$0xff] }
 0x264   : > { %4136 = vst.msk [vmem:[%s7076_s8 + $0x160] sm:$0xff] %vm223_vm2, %v4072_v42  ;;  %v4075_v48 = vadd.f32 %v7067_v11, %v4004_v56  ;;  %v3875_v43 = vadd.f32 %v3744_v58, %v338_v17  ;;  %v3302_v25 = vadd.f32 %v3301_v41, %v7952_v0  ;;  %v3762_v46 = vadd.f32 %v5286_v5, %v3308_v60  ;;  %v5289_v1 = vpop.f32.mrf.mxu1  ;;  %v347_v42 = vld [vmem:[#allocation2 + $0x1d8] sm:$0xff]  ;;  %v346_v5 = vld [vmem:[#allocation2 + $0x1d0] sm:$0xff] }
 0x265   : > { %3941 = vst.msk [vmem:[#allocation2 + $0x198] sm:$0xff] %vm223_vm2, %v3876_v54  ;;  %v5183_v47 = vpop.f32.mrf.mxu0 }
 0x266   : > { %v4003_v34 = vld [vmem:[#allocation2 + $0x170] sm:$0xff]  ;;  %4139 = vst.msk [vmem:[%s7076_s8 + $0x178] sm:$0xff] %vm223_vm2, %v4075_v48  ;;  %3940 = vst.msk [vmem:[#allocation2 + $0x190] sm:$0xff] %vm223_vm2, %v3875_v43  ;;  %v3878_v63 = vadd.f32 %v3762_v46, %v341_v18  ;;  %v3320_v16 = vadd.f32 %v5183_v47, %v7953_v27  ;;  %v3756_v8 = vadd.f32 %v3755_v33, %v3302_v25  ;;  %v3767_v4 = vpop.f32.mrf.mxu1 }
 0x267   : > { %v4074_v61 = vadd.f32 %v7067_v11, %v4003_v34  ;;  %v4006_v3 = vld [vmem:[#allocation2 + $0x188] sm:$0xff]  ;;  %v3313_v12 = vpop.f32.mrf.mxu0 }
 0x268   : > { %v4077_v39 = vadd.f32 %v7067_v11, %v4006_v3  ;;  %3943 = vst.msk [vmem:[#allocation2 + $0x1a8] sm:$0xff] %vm223_vm2, %v3878_v63  ;;  %v3877_v37 = vadd.f32 %v3756_v8, %v340_v21  ;;  %v3314_v22 = vadd.f32 %v3313_v12, %v7954_v55  ;;  %v3774_v51 = vadd.f32 %v5289_v1, %v3320_v16  ;;  %v5292_v20 = vpop.f32.mrf.mxu1  ;;  %v7958_v63 = vld [vmem:[#allocation10_spill] sm:$0xff] }
 0x269   : > { %4138 = vst.msk [vmem:[%s7076_s8 + $0x170] sm:$0xff] %vm223_vm2, %v4074_v61  ;;  %v4005_v38 = vld [vmem:[#allocation2 + $0x180] sm:$0xff]  ;;  %v5186_v45 = vpop.f32.mrf.mxu0 }
 0x26a   : > { %4141 = vst.msk [vmem:[%s7076_s8 + $0x188] sm:$0xff] %vm223_vm2, %v4077_v39  ;;  %v4076_v10 = vadd.f32 %v7067_v11, %v4005_v38  ;;  %3942 = vst.msk [vmem:[#allocation2 + $0x1a0] sm:$0xff] %vm223_vm2, %v3877_v37  ;;  %v3880_v19 = vadd.f32 %v3774_v51, %v343_v49  ;;  %v3332_v29 = vadd.f32 %v5186_v45, %v7955_v59  ;;  %v3779_v7 = vpop.f32.mrf.mxu1  ;;  %v7959_v39 = vld [vmem:[#allocation11_spill] sm:$0xff]  ;;  %v351_v38 = vld [vmem:[#allocation2 + $0x1f8] sm:$0xff] }
 0x26b   : > { %v3768_v57 = vadd.f32 %v3767_v4, %v3314_v22  ;;  %v3325_v52 = vpop.f32.mrf.mxu0 }
 0x26c   : > { %v4008_v36 = vld [vmem:[#allocation2 + $0x198] sm:$0xff]  ;;  %4140 = vst.msk [vmem:[%s7076_s8 + $0x180] sm:$0xff] %vm223_vm2, %v4076_v10  ;;  %3945 = vst.msk [vmem:[#allocation2 + $0x1b8] sm:$0xff] %vm223_vm2, %v3880_v19  ;;  %v3326_v35 = vadd.f32 %v3325_v52, %v7956_v13  ;;  %v3786_v31 = vadd.f32 %v5292_v20, %v3332_v29  ;;  %v5295_v54 = vpop.f32.mrf.mxu1  ;;  %v7960_v10 = vld [vmem:[#allocation12_spill] sm:$0xff] }
 0x26d   : > { %v4079_v11 = vadd.f32 %v7331_v50, %v4008_v36  ;;  %v3879_v40 = vadd.f32 %v3768_v57, %v342_v62  ;;  %v4007_v32 = vld [vmem:[#allocation2 + $0x190] sm:$0xff]  ;;  %v5189_v23 = vpop.f32.mrf.mxu0 }
 0x26e   : > { %v4078_v6 = vadd.f32 %v7331_v50, %v4007_v32  ;;  %v3882_v53 = vadd.f32 %v3786_v31, %v345_v15  ;;  %v3344_v2 = vadd.f32 %v5189_v23, %v7957_v24  ;;  %v3780_v14 = vadd.f32 %v3779_v7, %v3326_v35  ;;  %v3791_v48 = vpop.f32.mrf.mxu1  ;;  %v350_v57 = vld [vmem:[#allocation2 + $0x1f0] sm:$0xff] }
 0x26f   : > { %4143 = vst.msk [vmem:[%s7076_s8 + $0x198] sm:$0xff] %vm223_vm2, %v4079_v11  ;;  %3944 = vst.msk [vmem:[#allocation2 + $0x1b0] sm:$0xff] %vm223_vm2, %v3879_v40  ;;  %v4010_v17 = vld [vmem:[#allocation2 + $0x1a8] sm:$0xff]  ;;  %v3337_v9 = vpop.f32.mrf.mxu0 }
 0x270   : > { %4142 = vst.msk [vmem:[%s7076_s8 + $0x190] sm:$0xff] %vm223_vm2, %v4078_v6  ;;  %v4081_v44 = vadd.f32 %v7331_v50, %v4010_v17  ;;  %3947 = vst.msk [vmem:[#allocation2 + $0x1c8] sm:$0xff] %vm223_vm2, %v3882_v53  ;;  %v3881_v60 = vadd.f32 %v3780_v14, %v344_v30  ;;  %v3338_v58 = vadd.f32 %v3337_v9, %v7042_v26  ;;  %v349_v26 = vld [vmem:[#allocation2 + $0x1e8] sm:$0xff]  ;;  %v5298_v21 = vpop.f32.mrf.mxu1 }
 0x271   : > { %v3798_v56 = vadd.f32 %v5295_v54, %v3344_v2  ;;  %v4009_v41 = vld [vmem:[#allocation2 + $0x1a0] sm:$0xff]  ;;  %v5192_v18 = vpop.f32.mrf.mxu0 }
 0x272   : > { %4145 = vst.msk [vmem:[%s7076_s8 + $0x1a8] sm:$0xff] %vm223_vm2, %v4081_v44  ;;  %v4080_v43 = vadd.f32 %v7331_v50, %v4009_v41  ;;  %3946 = vst.msk [vmem:[#allocation2 + $0x1c0] sm:$0xff] %vm223_vm2, %v3881_v60  ;;  %v3356_v25 = vadd.f32 %v5192_v18, %v7045_v28  ;;  %v3792_v46 = vadd.f32 %v3791_v48, %v3338_v58  ;;  %v348_v28 = vld [vmem:[#allocation2 + $0x1e0] sm:$0xff]  ;;  %v3803_v12 = vpop.f32.mrf.mxu1 }
 0x273   : > { %v3884_v0 = vadd.f32 %v3798_v56, %v347_v42  ;;  %v4012_v34 = vld [vmem:[#allocation2 + $0x1b8] sm:$0xff]  ;;  %v3349_v47 = vpop.f32.mrf.mxu0 }
 0x274   : > { %4144 = vst.msk [vmem:[%s7076_s8 + $0x1a0] sm:$0xff] %vm223_vm2, %v4080_v43  ;;  %v4083_v33 = vadd.f32 %v7331_v50, %v4012_v34  ;;  %v3883_v61 = vadd.f32 %v3792_v46, %v346_v5  ;;  %v3350_v27 = vadd.f32 %v3349_v47, %v7958_v63  ;;  %v3810_v16 = vadd.f32 %v5298_v21, %v3356_v25  ;;  %v5301_v45 = vpop.f32.mrf.mxu1 }
 0x275   : > { %3949 = vst.msk [vmem:[#allocation2 + $0x1d8] sm:$0xff] %vm223_vm2, %v3884_v0  ;;  %v5195_v3 = vpop.f32.mrf.mxu0 }
 0x276   : > { %v4011_v8 = vld [vmem:[#allocation2 + $0x1b0] sm:$0xff]  ;;  %4147 = vst.msk [vmem:[%s7076_s8 + $0x1b8] sm:$0xff] %vm223_vm2, %v4083_v33  ;;  %3948 = vst.msk [vmem:[#allocation2 + $0x1d0] sm:$0xff] %vm223_vm2, %v3883_v61  ;;  %v3886_v1 = vadd.f32 %v3810_v16, %v349_v26  ;;  %v3368_v37 = vadd.f32 %v5195_v3, %v7959_v39  ;;  %v3804_v55 = vadd.f32 %v3803_v12, %v3350_v27  ;;  %v3815_v36 = vpop.f32.mrf.mxu1 }
 0x277   : > { %v4082_v49 = vadd.f32 %v7331_v50, %v4011_v8  ;;  %v4014_v22 = vld [vmem:[#allocation2 + $0x1c8] sm:$0xff]  ;;  %v3361_v51 = vpop.f32.mrf.mxu0 }
 0x278   : > { %v4085_v62 = vadd.f32 %v7331_v50, %v4014_v22  ;;  %3951 = vst.msk [vmem:[#allocation2 + $0x1e8] sm:$0xff] %vm223_vm2, %v3886_v1  ;;  %v3885_v4 = vadd.f32 %v3804_v55, %v348_v28  ;;  %v3362_v19 = vadd.f32 %v3361_v51, %v7960_v10  ;;  %v3822_v59 = vadd.f32 %v5301_v45, %v3368_v37 }
 0x279   : > { %4146 = vst.msk [vmem:[%s7076_s8 + $0x1b0] sm:$0xff] %vm223_vm2, %v4082_v49  ;;  %v4013_v29 = vld [vmem:[#allocation2 + $0x1c0] sm:$0xff] }
 0x27a   : > { %4149 = vst.msk [vmem:[%s7076_s8 + $0x1c8] sm:$0xff] %vm223_vm2, %v4085_v62  ;;  %v4084_v52 = vadd.f32 %v7331_v50, %v4013_v29  ;;  %3950 = vst.msk [vmem:[#allocation2 + $0x1e0] sm:$0xff] %vm223_vm2, %v3885_v4  ;;  %v3888_v15 = vadd.f32 %v3822_v59, %v351_v38  ;;  %v3816_v20 = vadd.f32 %v3815_v36, %v3362_v19 }
 0x27c   : > { %v4016_v11 = vld [vmem:[#allocation2 + $0x1d8] sm:$0xff]  ;;  %4148 = vst.msk [vmem:[%s7076_s8 + $0x1c0] sm:$0xff] %vm223_vm2, %v4084_v52  ;;  %3953 = vst.msk [vmem:[#allocation2 + $0x1f8] sm:$0xff] %vm223_vm2, %v3888_v15  ;;  %v3887_v13 = vadd.f32 %v3816_v20, %v350_v57 }
 0x27d   : > { %v4087_v40 = vadd.f32 %v7331_v50, %v4016_v11  ;;  %v4015_v35 = vld [vmem:[#allocation2 + $0x1d0] sm:$0xff] }
 0x27e   : > { %v4086_v31 = vadd.f32 %v7331_v50, %v4015_v35  ;;  %3952 = vst.msk [vmem:[#allocation2 + $0x1f0] sm:$0xff] %vm223_vm2, %v3887_v13 }
 0x27f   : > { %4151 = vst.msk [vmem:[%s7076_s8 + $0x1d8] sm:$0xff] %vm223_vm2, %v4087_v40  ;;  %v4018_v32 = vld [vmem:[#allocation2 + $0x1e8] sm:$0xff] }
 0x280   : > { %4150 = vst.msk [vmem:[%s7076_s8 + $0x1d0] sm:$0xff] %vm223_vm2, %v4086_v31  ;;  %v4089_v23 = vadd.f32 %v7331_v50, %v4018_v32 }
 0x281   : > { %v4017_v30 = vld [vmem:[#allocation2 + $0x1e0] sm:$0xff] }
 0x282   : > { %4153 = vst.msk [vmem:[%s7076_s8 + $0x1e8] sm:$0xff] %vm223_vm2, %v4089_v23  ;;  %v4088_v7 = vadd.f32 %v7331_v50, %v4017_v30 }
 0x283   : > { %v4020_v6 = vld [vmem:[#allocation2 + $0x1f8] sm:$0xff] }
 0x284   : > { %4152 = vst.msk [vmem:[%s7076_s8 + $0x1e0] sm:$0xff] %vm223_vm2, %v4088_v7  ;;  %v4091_v53 = vadd.f32 %v7331_v50, %v4020_v6 }
 0x285   : > { %v4019_v24 = vld [vmem:[#allocation2 + $0x1f0] sm:$0xff] }
 0x286   : > { %4155 = vst.msk [vmem:[%s7076_s8 + $0x1f8] sm:$0xff] %vm223_vm2, %v4091_v53  ;;  %v4090_v2 = vadd.f32 %v7331_v50, %v4019_v24 }
 0x288   : > { %4154 = vst.msk [vmem:[%s7076_s8 + $0x1f0] sm:$0xff] %vm223_vm2, %v4090_v2 }
 0x289 PF: > { %s13_s14 = sadd.s32 1, %s5350_s14   ;;  %s7961_s12 = smov %s5346_s13 }
 0x28a   : > { %p10_p5 = scmp.ge.s32.totalorder %s13_s14, 6   ;;  %s7962_s13 = smov %s7964_s15 }
 0x28c   :  { %12 = sbr.rel (!%p10_p5) target bundleno = 2 (0x2), region = 73 }

</bundles_post_ra>
